<compile_context>
chip_gen: v5e
topology: v5e:2x2
jax: 0.10.0
libtpu: 0.0.40
codegen_flags: <defaults>
</compile_context>

<pallas_src>
import jax
import jax.numpy as jnp
from jax import lax
from jax.experimental import pallas as pl
from jax.experimental.pallas import tpu as pltpu


# ----------------------------------------------------------------------------
# Model configuration (matches the PyTorch module hyper-parameters)
# ----------------------------------------------------------------------------
IMAGE_SIZE = 16
PATCH_SIZE = 4
IN_CHANNELS = 4
NUM_CLASSES = 10
EMBED_DIM = 32
NUM_HEADS = 4
HIDDEN_DIM = 64
NUM_LAYERS = 2
HEAD_DIM = EMBED_DIM // NUM_HEADS                       # 8
NUM_PATCHES = (IMAGE_SIZE // PATCH_SIZE) ** 2           # 16
SEQ_LEN = NUM_PATCHES + 1                               # 17 (cls + patches)
SEQ_PAD = ((SEQ_LEN + 7) // 8) * 8                      # 24 (sublane multiple)
PATCH_DIM = IN_CHANNELS * PATCH_SIZE * PATCH_SIZE       # 64
LN_EPS = 1e-5
NEG_INF = -1e9


def _layer_norm(x, g, b):
    mu = jnp.mean(x, axis=-1, keepdims=True)
    var = jnp.mean((x - mu) ** 2, axis=-1, keepdims=True)
    return (x - mu) * lax.rsqrt(var + LN_EPS) * g + b


# ----------------------------------------------------------------------------
# Fused forward-pass kernel
# ----------------------------------------------------------------------------
def _make_vit_kernel(B):
    """Build the fused ViT forward kernel for a static batch size B."""

    def kernel(*refs):
        out_ref = refs[-1]
        xp_ref, add_ref, pw_ref = refs[0], refs[1], refs[2]

        # --- patch embedding: pad rows are zero; add_ref carries
        #     cls_token / pos_embed / conv bias per sequence position. -------
        x = jnp.dot(xp_ref[...], pw_ref[...],
                    preferred_element_type=jnp.float32) + add_ref[...]

        # Bias masking padded key columns (positions >= SEQ_LEN).
        col = lax.broadcasted_iota(jnp.int32, (1, SEQ_PAD), 1)
        key_bias = jnp.where(col < SEQ_LEN, 0.0, NEG_INF).astype(jnp.float32)

        # --- transformer encoder layers (statically unrolled) ---------------
        for li in range(NUM_LAYERS):
            base = 3 + li * 12
            wqkv = refs[base + 0][...]
            bqkv = refs[base + 1][...]
            wo = refs[base + 2][...]
            bo = refs[base + 3][...]
            g1 = refs[base + 4][...]
            be1 = refs[base + 5][...]
            w1 = refs[base + 6][...]
            bf1 = refs[base + 7][...]
            w2 = refs[base + 8][...]
            bf2 = refs[base + 9][...]
            g2 = refs[base + 10][...]
            be2 = refs[base + 11][...]

            # Fused QKV projection over the full (B*SEQ_PAD, E) slab.
            qkv = jnp.dot(x, wqkv, preferred_element_type=jnp.float32) + bqkv

            # Attention: batch via aligned sublane slices, heads via 8-wide
            # lane slices.  W_o is applied per head and accumulated, so head
            # outputs are never concatenated along lanes.
            attn_parts = []
            for bi in range(B):
                r0 = bi * SEQ_PAD
                qkv_b = qkv[r0:r0 + SEQ_PAD, :]
                acc = None
                for h in range(NUM_HEADS):
                    c0 = h * HEAD_DIM
                    q_h = qkv_b[:, c0:c0 + HEAD_DIM]
                    k_h = qkv_b[:, EMBED_DIM + c0:EMBED_DIM + c0 + HEAD_DIM]
                    v_h = qkv_b[:, 2 * EMBED_DIM + c0:
                                 2 * EMBED_DIM + c0 + HEAD_DIM]
                    # q k^T (attention scale already folded into Q weights).
                    s = lax.dot_general(q_h, k_h, (((1,), (1,)), ((), ())),
                                        preferred_element_type=jnp.float32)
                    s = s + key_bias
                    m = jnp.max(s, axis=-1, keepdims=True)
                    p = jnp.exp(s - m)
                    p = p / jnp.sum(p, axis=-1, keepdims=True)
                    o_h = jnp.dot(p, v_h, preferred_element_type=jnp.float32)
                    contrib = jnp.dot(o_h, wo[c0:c0 + HEAD_DIM, :],
                                      preferred_element_type=jnp.float32)
                    acc = contrib if acc is None else acc + contrib
                attn_parts.append(acc)
            attn = (attn_parts[0] if B == 1
                    else jnp.concatenate(attn_parts, axis=0)) + bo

            # Residual + post-norm 1 (dropout == identity).
            x1 = _layer_norm(x + attn, g1, be1)
            # MLP: relu(x1 w1 + b1) w2 + b2.
            hdn = jnp.dot(x1, w1, preferred_element_type=jnp.float32) + bf1
            hdn = jnp.maximum(hdn, 0.0)
            ff = jnp.dot(hdn, w2, preferred_element_type=jnp.float32) + bf2
            # Residual + post-norm 2.
            x = _layer_norm(x1 + ff, g2, be2)

        # --- classifier head: final LN + fc on the cls rows only ------------
        hbase = 3 + NUM_LAYERS * 12
        lng, lnb = refs[hbase + 0][...], refs[hbase + 1][...]
        fcw, fcb = refs[hbase + 2][...], refs[hbase + 3][...]
        cls_rows = [x[bi * SEQ_PAD:bi * SEQ_PAD + 1, :] for bi in range(B)]
        cls = cls_rows[0] if B == 1 else jnp.concatenate(cls_rows, axis=0)
        y = _layer_norm(cls, lng, lnb)
        logits = jnp.dot(y, fcw, preferred_element_type=jnp.float32) + fcb
        out_ref[...] = logits.astype(out_ref.dtype)

    return kernel


# ----------------------------------------------------------------------------
# Parameters
# ----------------------------------------------------------------------------
def init_params(key):
    """Deterministic synthetic params with PyTorch-style shapes."""
    def nrm(k, shape, scale=0.02):
        return (scale * jax.random.normal(k, shape)).astype(jnp.float32)

    keys = jax.random.split(key, 4 + NUM_LAYERS)
    params = {
        "conv_w": nrm(keys[0], (EMBED_DIM, IN_CHANNELS, PATCH_SIZE, PATCH_SIZE), 0.1),
        "conv_b": jnp.zeros((EMBED_DIM,), jnp.float32),
        "cls_token": nrm(keys[1], (1, 1, EMBED_DIM), 1.0),
        "pos_embed": nrm(keys[2], (1, SEQ_LEN, EMBED_DIM), 1.0),
        "ln_g": jnp.ones((EMBED_DIM,), jnp.float32),
        "ln_b": jnp.zeros((EMBED_DIM,), jnp.float32),
        "fc_w": nrm(keys[3], (NUM_CLASSES, EMBED_DIM)),     # torch (out, in)
        "fc_b": jnp.zeros((NUM_CLASSES,), jnp.float32),
        "layers": [],
    }
    for li in range(NUM_LAYERS):
        lk = jax.random.split(keys[4 + li], 6)
        params["layers"].append({
            "wq": nrm(lk[0], (EMBED_DIM, EMBED_DIM)),
            "bq": jnp.zeros((EMBED_DIM,), jnp.float32),
            "wk": nrm(lk[1], (EMBED_DIM, EMBED_DIM)),
            "bk": jnp.zeros((EMBED_DIM,), jnp.float32),
            "wv": nrm(lk[2], (EMBED_DIM, EMBED_DIM)),
            "bv": jnp.zeros((EMBED_DIM,), jnp.float32),
            "wo": nrm(lk[3], (EMBED_DIM, EMBED_DIM)),
            "bo": jnp.zeros((EMBED_DIM,), jnp.float32),
            "ln1_g": jnp.ones((EMBED_DIM,), jnp.float32),
            "ln1_b": jnp.zeros((EMBED_DIM,), jnp.float32),
            "w1": nrm(lk[4], (HIDDEN_DIM, EMBED_DIM)),       # torch (out, in)
            "b1": jnp.zeros((HIDDEN_DIM,), jnp.float32),
            "w2": nrm(lk[5], (EMBED_DIM, HIDDEN_DIM)),
            "b2": jnp.zeros((EMBED_DIM,), jnp.float32),
            "ln2_g": jnp.ones((EMBED_DIM,), jnp.float32),
            "ln2_b": jnp.zeros((EMBED_DIM,), jnp.float32),
        })
    return params


def prepare_params(params):
    """One-time prep: transpose Linear weights, fuse QKV (scale folded into Q),
    and precompute the per-position additive term (cls/pos/conv-bias)."""
    scale = HEAD_DIM ** (-0.5)

    def row(v):
        return v.reshape(1, -1).astype(jnp.float32)

    patch_w = params["conv_w"].reshape(EMBED_DIM, PATCH_DIM).T      # (64, 32)
    cls = params["cls_token"].reshape(EMBED_DIM)
    pos = params["pos_embed"].reshape(SEQ_LEN, EMBED_DIM)
    seq_add = jnp.zeros((SEQ_PAD, EMBED_DIM), jnp.float32)
    seq_add = seq_add.at[0].set(cls + pos[0])
    seq_add = seq_add.at[1:SEQ_LEN].set(params["conv_b"][None, :] + pos[1:])

    prepped = {
        "patch_w": patch_w,
        "seq_add": seq_add,
        "ln_g": row(params["ln_g"]),
        "ln_b": row(params["ln_b"]),
        "fc_w": params["fc_w"].T,                                    # (E, 10)
        "fc_b": row(params["fc_b"]),
        "layers": [],
    }
    for lp in params["layers"]:
        wq_scaled = lp["wq"].T * scale
        wqkv = jnp.concatenate([wq_scaled, lp["wk"].T, lp["wv"].T], axis=1)
        bqkv = jnp.concatenate([lp["bq"] * scale, lp["bk"], lp["bv"]]).reshape(1, -1)
        prepped["layers"].append({
            "wqkv": wqkv, "bqkv": bqkv,
            "wo": lp["wo"].T, "bo": row(lp["bo"]),
            "ln1_g": row(lp["ln1_g"]), "ln1_b": row(lp["ln1_b"]),
            "w1": lp["w1"].T, "b1": row(lp["b1"]),
            "w2": lp["w2"].T, "b2": row(lp["b2"]),
            "ln2_g": row(lp["ln2_g"]), "ln2_b": row(lp["ln2_b"]),
        })
    return prepped


def _flatten_weights(params):
    flat = [params["patch_w"]]
    for lp in params["layers"]:
        flat += [lp["wqkv"], lp["bqkv"], lp["wo"], lp["bo"],
                 lp["ln1_g"], lp["ln1_b"], lp["w1"], lp["b1"],
                 lp["w2"], lp["b2"], lp["ln2_g"], lp["ln2_b"]]
    flat += [params["ln_g"], params["ln_b"], params["fc_w"], params["fc_b"]]
    return flat


# ----------------------------------------------------------------------------
# Forward pass (one pallas_call for the whole model)
# ----------------------------------------------------------------------------
def vit_forward(x, params):
    """x: (B, C, H, W) float32, NCHW as in the PyTorch module."""
    B = x.shape[0]
    p = PATCH_SIZE
    hp = IMAGE_SIZE // p

    # Conv2d(kernel=stride=p) == non-overlapping patch flatten + matmul.
    # TODO(synk): the 6-D patchify transpose stays as a (tiny) wrapper-side
    # XLA op; the projection matmul itself runs inside the fused kernel.
    xp = x.reshape(B, IN_CHANNELS, hp, p, hp, p)
    xp = xp.transpose(0, 2, 4, 1, 3, 5).reshape(B, NUM_PATCHES, PATCH_DIM)
    # Row 0 (cls slot) and rows SEQ_LEN..SEQ_PAD-1 (tail pad) are zero rows.
    xp = jnp.pad(xp, ((0, 0), (1, SEQ_PAD - SEQ_LEN), (0, 0)))
    xp = xp.reshape(B * SEQ_PAD, PATCH_DIM)

    seq_add = jnp.tile(params["seq_add"], (B, 1))        # (B*SEQ_PAD, E)
    weights = _flatten_weights(params)
    n_in = 2 + len(weights)

    return pl.pallas_call(
        _make_vit_kernel(B),
        out_shape=jax.ShapeDtypeStruct((B, NUM_CLASSES), jnp.float32),
        in_specs=[pl.BlockSpec(memory_space=pltpu.MemorySpace.VMEM)] * n_in,
        out_specs=pl.BlockSpec(memory_space=pltpu.MemorySpace.VMEM),
    )(xp, seq_add, *weights)


@jax.jit
def vit_apply(x, params):
    return vit_forward(x, params)


# ----------------------------------------------------------------------------
# Main
# ----------------------------------------------------------------------------
if __name__ == "__main__":
    key = jax.random.PRNGKey(0)
    k_x, k_p = jax.random.split(key)

    B = 2
    x = jax.random.normal(k_x, (B, IN_CHANNELS, IMAGE_SIZE, IMAGE_SIZE),
                          dtype=jnp.float32)
    params = prepare_params(init_params(k_p))

    logits = vit_apply(x, params)
    jax.block_until_ready(logits)

    assert logits.shape == (B, NUM_CLASSES), logits.shape
    assert bool(jnp.all(jnp.isfinite(logits)))
    print("KERNEL_OK")
</pallas_src>

<mosaic_0001>
module attributes {stable_mosaic.version = 11 : i64} {
  func.func @kernel(%arg0: memref<48x64xf32, #tpu.memory_space<vmem>>, %arg1: memref<48x32xf32, #tpu.memory_space<vmem>>, %arg2: memref<64x32xf32, #tpu.memory_space<vmem>>, %arg3: memref<32x96xf32, #tpu.memory_space<vmem>>, %arg4: memref<1x96xf32, #tpu.memory_space<vmem>>, %arg5: memref<32x32xf32, #tpu.memory_space<vmem>>, %arg6: memref<1x32xf32, #tpu.memory_space<vmem>>, %arg7: memref<1x32xf32, #tpu.memory_space<vmem>>, %arg8: memref<1x32xf32, #tpu.memory_space<vmem>>, %arg9: memref<32x64xf32, #tpu.memory_space<vmem>>, %arg10: memref<1x64xf32, #tpu.memory_space<vmem>>, %arg11: memref<64x32xf32, #tpu.memory_space<vmem>>, %arg12: memref<1x32xf32, #tpu.memory_space<vmem>>, %arg13: memref<1x32xf32, #tpu.memory_space<vmem>>, %arg14: memref<1x32xf32, #tpu.memory_space<vmem>>, %arg15: memref<32x96xf32, #tpu.memory_space<vmem>>, %arg16: memref<1x96xf32, #tpu.memory_space<vmem>>, %arg17: memref<32x32xf32, #tpu.memory_space<vmem>>, %arg18: memref<1x32xf32, #tpu.memory_space<vmem>>, %arg19: memref<1x32xf32, #tpu.memory_space<vmem>>, %arg20: memref<1x32xf32, #tpu.memory_space<vmem>>, %arg21: memref<32x64xf32, #tpu.memory_space<vmem>>, %arg22: memref<1x64xf32, #tpu.memory_space<vmem>>, %arg23: memref<64x32xf32, #tpu.memory_space<vmem>>, %arg24: memref<1x32xf32, #tpu.memory_space<vmem>>, %arg25: memref<1x32xf32, #tpu.memory_space<vmem>>, %arg26: memref<1x32xf32, #tpu.memory_space<vmem>>, %arg27: memref<1x32xf32, #tpu.memory_space<vmem>>, %arg28: memref<1x32xf32, #tpu.memory_space<vmem>>, %arg29: memref<32x10xf32, #tpu.memory_space<vmem>>, %arg30: memref<1x10xf32, #tpu.memory_space<vmem>>, %arg31: memref<2x10xf32, #tpu.memory_space<vmem>>) attributes {dimension_semantics = [], scalar_prefetch = 0 : i64, scratch_operands = 0 : i64, tpu.core_type = #tpu.core_type<tc>} {
    %c0 = arith.constant 0 : index
    %c0_0 = arith.constant 0 : index
    %0 = vector.load %arg0[%c0, %c0_0] : memref<48x64xf32, #tpu.memory_space<vmem>>, vector<48x64xf32>
    %c0_1 = arith.constant 0 : index
    %c0_2 = arith.constant 0 : index
    %1 = vector.load %arg2[%c0_1, %c0_2] : memref<64x32xf32, #tpu.memory_space<vmem>>, vector<64x32xf32>
    %cst = arith.constant dense<0.000000e+00> : vector<48x32xf32>
    %2 = tpu.matmul %0, %1, %cst {dimension_numbers = #tpu.dot_dimension_numbers<[1], [0], [0], [1], [0, 0, 1, 1], [], []>} : vector<48x64xf32>, vector<64x32xf32>, vector<48x32xf32> -> vector<48x32xf32>
    %c0_3 = arith.constant 0 : index
    %c0_4 = arith.constant 0 : index
    %3 = vector.load %arg1[%c0_3, %c0_4] : memref<48x32xf32, #tpu.memory_space<vmem>>, vector<48x32xf32>
    %4 = arith.addf %2, %3 : vector<48x32xf32>
    %5 = tpu.iota {dimensions = array<i32: 1>} : vector<1x24xi32>
    %c17_i32 = arith.constant 17 : i32
    %6 = vector.broadcast %c17_i32 : i32 to vector<1x24xi32>
    %7 = arith.cmpi slt, %5, %6 : vector<1x24xi32>
    %cst_5 = arith.constant 0.000000e+00 : f32
    %cst_6 = arith.constant -1.000000e+09 : f32
    %8 = vector.broadcast %cst_5 : f32 to vector<1x24xf32>
    %9 = vector.broadcast %cst_6 : f32 to vector<1x24xf32>
    %10 = arith.select %7, %8, %9 : vector<1x24xi1>, vector<1x24xf32>
    %c0_7 = arith.constant 0 : index
    %c0_8 = arith.constant 0 : index
    %11 = vector.load %arg3[%c0_7, %c0_8] : memref<32x96xf32, #tpu.memory_space<vmem>>, vector<32x96xf32>
    %c0_9 = arith.constant 0 : index
    %c0_10 = arith.constant 0 : index
    %12 = vector.load %arg4[%c0_9, %c0_10] : memref<1x96xf32, #tpu.memory_space<vmem>>, vector<1x96xf32>
    %c0_11 = arith.constant 0 : index
    %c0_12 = arith.constant 0 : index
    %13 = vector.load %arg5[%c0_11, %c0_12] : memref<32x32xf32, #tpu.memory_space<vmem>>, vector<32x32xf32>
    %c0_13 = arith.constant 0 : index
    %c0_14 = arith.constant 0 : index
    %14 = vector.load %arg6[%c0_13, %c0_14] : memref<1x32xf32, #tpu.memory_space<vmem>>, vector<1x32xf32>
    %c0_15 = arith.constant 0 : index
    %c0_16 = arith.constant 0 : index
    %15 = vector.load %arg7[%c0_15, %c0_16] : memref<1x32xf32, #tpu.memory_space<vmem>>, vector<1x32xf32>
    %c0_17 = arith.constant 0 : index
    %c0_18 = arith.constant 0 : index
    %16 = vector.load %arg8[%c0_17, %c0_18] : memref<1x32xf32, #tpu.memory_space<vmem>>, vector<1x32xf32>
    %c0_19 = arith.constant 0 : index
    %c0_20 = arith.constant 0 : index
    %17 = vector.load %arg9[%c0_19, %c0_20] : memref<32x64xf32, #tpu.memory_space<vmem>>, vector<32x64xf32>
    %c0_21 = arith.constant 0 : index
    %c0_22 = arith.constant 0 : index
    %18 = vector.load %arg10[%c0_21, %c0_22] : memref<1x64xf32, #tpu.memory_space<vmem>>, vector<1x64xf32>
    %c0_23 = arith.constant 0 : index
    %c0_24 = arith.constant 0 : index
    %19 = vector.load %arg11[%c0_23, %c0_24] : memref<64x32xf32, #tpu.memory_space<vmem>>, vector<64x32xf32>
    %c0_25 = arith.constant 0 : index
    %c0_26 = arith.constant 0 : index
    %20 = vector.load %arg12[%c0_25, %c0_26] : memref<1x32xf32, #tpu.memory_space<vmem>>, vector<1x32xf32>
    %c0_27 = arith.constant 0 : index
    %c0_28 = arith.constant 0 : index
    %21 = vector.load %arg13[%c0_27, %c0_28] : memref<1x32xf32, #tpu.memory_space<vmem>>, vector<1x32xf32>
    %c0_29 = arith.constant 0 : index
    %c0_30 = arith.constant 0 : index
    %22 = vector.load %arg14[%c0_29, %c0_30] : memref<1x32xf32, #tpu.memory_space<vmem>>, vector<1x32xf32>
    %cst_31 = arith.constant dense<0.000000e+00> : vector<48x96xf32>
    %23 = tpu.matmul %4, %11, %cst_31 {dimension_numbers = #tpu.dot_dimension_numbers<[1], [0], [0], [1], [0, 0, 1, 1], [], []>} : vector<48x32xf32>, vector<32x96xf32>, vector<48x96xf32> -> vector<48x96xf32>
    %24 = vector.broadcast %12 : vector<1x96xf32> to vector<48x96xf32>
    %25 = arith.addf %23, %24 : vector<48x96xf32>
    %26 = vector.extract_strided_slice %25 {offsets = [0, 0], sizes = [24, 96], strides = [1, 1]} : vector<48x96xf32> to vector<24x96xf32>
    %27 = vector.extract_strided_slice %26 {offsets = [0, 0], sizes = [24, 8], strides = [1, 1]} : vector<24x96xf32> to vector<24x8xf32>
    %28 = vector.extract_strided_slice %26 {offsets = [0, 32], sizes = [24, 8], strides = [1, 1]} : vector<24x96xf32> to vector<24x8xf32>
    %29 = vector.extract_strided_slice %26 {offsets = [0, 64], sizes = [24, 8], strides = [1, 1]} : vector<24x96xf32> to vector<24x8xf32>
    %cst_32 = arith.constant dense<0.000000e+00> : vector<24x24xf32>
    %30 = tpu.matmul %27, %28, %cst_32 {dimension_numbers = #tpu.dot_dimension_numbers<[1], [1], [0], [0], [0, 0, 1, 0], [], []>} : vector<24x8xf32>, vector<24x8xf32>, vector<24x24xf32> -> vector<24x24xf32>
    %31 = vector.broadcast %10 : vector<1x24xf32> to vector<24x24xf32>
    %32 = arith.addf %30, %31 : vector<24x24xf32>
    %cst_33 = arith.constant dense<0xFF800000> : vector<24xf32>
    %33 = vector.multi_reduction <maximumf>, %32, %cst_33 [1] : vector<24x24xf32> to vector<24xf32>
    %34 = vector.shape_cast %33 : vector<24xf32> to vector<24x1xf32>
    %35 = vector.broadcast %34 : vector<24x1xf32> to vector<24x24xf32>
    %36 = arith.subf %32, %35 : vector<24x24xf32>
    %37 = math.exp %36 : vector<24x24xf32>
    %cst_34 = arith.constant dense<0.000000e+00> : vector<24xf32>
    %38 = vector.multi_reduction <add>, %37, %cst_34 [1] : vector<24x24xf32> to vector<24xf32>
    %39 = vector.shape_cast %38 : vector<24xf32> to vector<24x1xf32>
    %40 = vector.broadcast %39 : vector<24x1xf32> to vector<24x24xf32>
    %41 = arith.divf %37, %40 : vector<24x24xf32>
    %cst_35 = arith.constant dense<0.000000e+00> : vector<24x8xf32>
    %42 = tpu.matmul %41, %29, %cst_35 {dimension_numbers = #tpu.dot_dimension_numbers<[1], [0], [0], [1], [0, 0, 1, 1], [], []>} : vector<24x24xf32>, vector<24x8xf32>, vector<24x8xf32> -> vector<24x8xf32>
    %43 = vector.extract_strided_slice %13 {offsets = [0, 0], sizes = [8, 32], strides = [1, 1]} : vector<32x32xf32> to vector<8x32xf32>
    %cst_36 = arith.constant dense<0.000000e+00> : vector<24x32xf32>
    %44 = tpu.matmul %42, %43, %cst_36 {dimension_numbers = #tpu.dot_dimension_numbers<[1], [0], [0], [1], [0, 0, 1, 1], [], []>} : vector<24x8xf32>, vector<8x32xf32>, vector<24x32xf32> -> vector<24x32xf32>
    %45 = vector.extract_strided_slice %26 {offsets = [0, 8], sizes = [24, 8], strides = [1, 1]} : vector<24x96xf32> to vector<24x8xf32>
    %46 = vector.extract_strided_slice %26 {offsets = [0, 40], sizes = [24, 8], strides = [1, 1]} : vector<24x96xf32> to vector<24x8xf32>
    %47 = vector.extract_strided_slice %26 {offsets = [0, 72], sizes = [24, 8], strides = [1, 1]} : vector<24x96xf32> to vector<24x8xf32>
    %cst_37 = arith.constant dense<0.000000e+00> : vector<24x24xf32>
    %48 = tpu.matmul %45, %46, %cst_37 {dimension_numbers = #tpu.dot_dimension_numbers<[1], [1], [0], [0], [0, 0, 1, 0], [], []>} : vector<24x8xf32>, vector<24x8xf32>, vector<24x24xf32> -> vector<24x24xf32>
    %49 = vector.broadcast %10 : vector<1x24xf32> to vector<24x24xf32>
    %50 = arith.addf %48, %49 : vector<24x24xf32>
    %cst_38 = arith.constant dense<0xFF800000> : vector<24xf32>
    %51 = vector.multi_reduction <maximumf>, %50, %cst_38 [1] : vector<24x24xf32> to vector<24xf32>
    %52 = vector.shape_cast %51 : vector<24xf32> to vector<24x1xf32>
    %53 = vector.broadcast %52 : vector<24x1xf32> to vector<24x24xf32>
    %54 = arith.subf %50, %53 : vector<24x24xf32>
    %55 = math.exp %54 : vector<24x24xf32>
    %cst_39 = arith.constant dense<0.000000e+00> : vector<24xf32>
    %56 = vector.multi_reduction <add>, %55, %cst_39 [1] : vector<24x24xf32> to vector<24xf32>
    %57 = vector.shape_cast %56 : vector<24xf32> to vector<24x1xf32>
    %58 = vector.broadcast %57 : vector<24x1xf32> to vector<24x24xf32>
    %59 = arith.divf %55, %58 : vector<24x24xf32>
    %cst_40 = arith.constant dense<0.000000e+00> : vector<24x8xf32>
    %60 = tpu.matmul %59, %47, %cst_40 {dimension_numbers = #tpu.dot_dimension_numbers<[1], [0], [0], [1], [0, 0, 1, 1], [], []>} : vector<24x24xf32>, vector<24x8xf32>, vector<24x8xf32> -> vector<24x8xf32>
    %61 = vector.extract_strided_slice %13 {offsets = [8, 0], sizes = [8, 32], strides = [1, 1]} : vector<32x32xf32> to vector<8x32xf32>
    %cst_41 = arith.constant dense<0.000000e+00> : vector<24x32xf32>
    %62 = tpu.matmul %60, %61, %cst_41 {dimension_numbers = #tpu.dot_dimension_numbers<[1], [0], [0], [1], [0, 0, 1, 1], [], []>} : vector<24x8xf32>, vector<8x32xf32>, vector<24x32xf32> -> vector<24x32xf32>
    %63 = arith.addf %44, %62 : vector<24x32xf32>
    %64 = vector.extract_strided_slice %26 {offsets = [0, 16], sizes = [24, 8], strides = [1, 1]} : vector<24x96xf32> to vector<24x8xf32>
    %65 = vector.extract_strided_slice %26 {offsets = [0, 48], sizes = [24, 8], strides = [1, 1]} : vector<24x96xf32> to vector<24x8xf32>
    %66 = vector.extract_strided_slice %26 {offsets = [0, 80], sizes = [24, 8], strides = [1, 1]} : vector<24x96xf32> to vector<24x8xf32>
    %cst_42 = arith.constant dense<0.000000e+00> : vector<24x24xf32>
    %67 = tpu.matmul %64, %65, %cst_42 {dimension_numbers = #tpu.dot_dimension_numbers<[1], [1], [0], [0], [0, 0, 1, 0], [], []>} : vector<24x8xf32>, vector<24x8xf32>, vector<24x24xf32> -> vector<24x24xf32>
    %68 = vector.broadcast %10 : vector<1x24xf32> to vector<24x24xf32>
    %69 = arith.addf %67, %68 : vector<24x24xf32>
    %cst_43 = arith.constant dense<0xFF800000> : vector<24xf32>
    %70 = vector.multi_reduction <maximumf>, %69, %cst_43 [1] : vector<24x24xf32> to vector<24xf32>
    %71 = vector.shape_cast %70 : vector<24xf32> to vector<24x1xf32>
    %72 = vector.broadcast %71 : vector<24x1xf32> to vector<24x24xf32>
    %73 = arith.subf %69, %72 : vector<24x24xf32>
    %74 = math.exp %73 : vector<24x24xf32>
    %cst_44 = arith.constant dense<0.000000e+00> : vector<24xf32>
    %75 = vector.multi_reduction <add>, %74, %cst_44 [1] : vector<24x24xf32> to vector<24xf32>
    %76 = vector.shape_cast %75 : vector<24xf32> to vector<24x1xf32>
    %77 = vector.broadcast %76 : vector<24x1xf32> to vector<24x24xf32>
    %78 = arith.divf %74, %77 : vector<24x24xf32>
    %cst_45 = arith.constant dense<0.000000e+00> : vector<24x8xf32>
    %79 = tpu.matmul %78, %66, %cst_45 {dimension_numbers = #tpu.dot_dimension_numbers<[1], [0], [0], [1], [0, 0, 1, 1], [], []>} : vector<24x24xf32>, vector<24x8xf32>, vector<24x8xf32> -> vector<24x8xf32>
    %80 = vector.extract_strided_slice %13 {offsets = [16, 0], sizes = [8, 32], strides = [1, 1]} : vector<32x32xf32> to vector<8x32xf32>
    %cst_46 = arith.constant dense<0.000000e+00> : vector<24x32xf32>
    %81 = tpu.matmul %79, %80, %cst_46 {dimension_numbers = #tpu.dot_dimension_numbers<[1], [0], [0], [1], [0, 0, 1, 1], [], []>} : vector<24x8xf32>, vector<8x32xf32>, vector<24x32xf32> -> vector<24x32xf32>
    %82 = arith.addf %63, %81 : vector<24x32xf32>
    %83 = vector.extract_strided_slice %26 {offsets = [0, 24], sizes = [24, 8], strides = [1, 1]} : vector<24x96xf32> to vector<24x8xf32>
    %84 = vector.extract_strided_slice %26 {offsets = [0, 56], sizes = [24, 8], strides = [1, 1]} : vector<24x96xf32> to vector<24x8xf32>
    %85 = vector.extract_strided_slice %26 {offsets = [0, 88], sizes = [24, 8], strides = [1, 1]} : vector<24x96xf32> to vector<24x8xf32>
    %cst_47 = arith.constant dense<0.000000e+00> : vector<24x24xf32>
    %86 = tpu.matmul %83, %84, %cst_47 {dimension_numbers = #tpu.dot_dimension_numbers<[1], [1], [0], [0], [0, 0, 1, 0], [], []>} : vector<24x8xf32>, vector<24x8xf32>, vector<24x24xf32> -> vector<24x24xf32>
    %87 = vector.broadcast %10 : vector<1x24xf32> to vector<24x24xf32>
    %88 = arith.addf %86, %87 : vector<24x24xf32>
    %cst_48 = arith.constant dense<0xFF800000> : vector<24xf32>
    %89 = vector.multi_reduction <maximumf>, %88, %cst_48 [1] : vector<24x24xf32> to vector<24xf32>
    %90 = vector.shape_cast %89 : vector<24xf32> to vector<24x1xf32>
    %91 = vector.broadcast %90 : vector<24x1xf32> to vector<24x24xf32>
    %92 = arith.subf %88, %91 : vector<24x24xf32>
    %93 = math.exp %92 : vector<24x24xf32>
    %cst_49 = arith.constant dense<0.000000e+00> : vector<24xf32>
    %94 = vector.multi_reduction <add>, %93, %cst_49 [1] : vector<24x24xf32> to vector<24xf32>
    %95 = vector.shape_cast %94 : vector<24xf32> to vector<24x1xf32>
    %96 = vector.broadcast %95 : vector<24x1xf32> to vector<24x24xf32>
    %97 = arith.divf %93, %96 : vector<24x24xf32>
    %cst_50 = arith.constant dense<0.000000e+00> : vector<24x8xf32>
    %98 = tpu.matmul %97, %85, %cst_50 {dimension_numbers = #tpu.dot_dimension_numbers<[1], [0], [0], [1], [0, 0, 1, 1], [], []>} : vector<24x24xf32>, vector<24x8xf32>, vector<24x8xf32> -> vector<24x8xf32>
    %99 = vector.extract_strided_slice %13 {offsets = [24, 0], sizes = [8, 32], strides = [1, 1]} : vector<32x32xf32> to vector<8x32xf32>
    %cst_51 = arith.constant dense<0.000000e+00> : vector<24x32xf32>
    %100 = tpu.matmul %98, %99, %cst_51 {dimension_numbers = #tpu.dot_dimension_numbers<[1], [0], [0], [1], [0, 0, 1, 1], [], []>} : vector<24x8xf32>, vector<8x32xf32>, vector<24x32xf32> -> vector<24x32xf32>
    %101 = arith.addf %82, %100 : vector<24x32xf32>
    %102 = vector.extract_strided_slice %25 {offsets = [24, 0], sizes = [24, 96], strides = [1, 1]} : vector<48x96xf32> to vector<24x96xf32>
    %103 = vector.extract_strided_slice %102 {offsets = [0, 0], sizes = [24, 8], strides = [1, 1]} : vector<24x96xf32> to vector<24x8xf32>
    %104 = vector.extract_strided_slice %102 {offsets = [0, 32], sizes = [24, 8], strides = [1, 1]} : vector<24x96xf32> to vector<24x8xf32>
    %105 = vector.extract_strided_slice %102 {offsets = [0, 64], sizes = [24, 8], strides = [1, 1]} : vector<24x96xf32> to vector<24x8xf32>
    %cst_52 = arith.constant dense<0.000000e+00> : vector<24x24xf32>
    %106 = tpu.matmul %103, %104, %cst_52 {dimension_numbers = #tpu.dot_dimension_numbers<[1], [1], [0], [0], [0, 0, 1, 0], [], []>} : vector<24x8xf32>, vector<24x8xf32>, vector<24x24xf32> -> vector<24x24xf32>
    %107 = vector.broadcast %10 : vector<1x24xf32> to vector<24x24xf32>
    %108 = arith.addf %106, %107 : vector<24x24xf32>
    %cst_53 = arith.constant dense<0xFF800000> : vector<24xf32>
    %109 = vector.multi_reduction <maximumf>, %108, %cst_53 [1] : vector<24x24xf32> to vector<24xf32>
    %110 = vector.shape_cast %109 : vector<24xf32> to vector<24x1xf32>
    %111 = vector.broadcast %110 : vector<24x1xf32> to vector<24x24xf32>
    %112 = arith.subf %108, %111 : vector<24x24xf32>
    %113 = math.exp %112 : vector<24x24xf32>
    %cst_54 = arith.constant dense<0.000000e+00> : vector<24xf32>
    %114 = vector.multi_reduction <add>, %113, %cst_54 [1] : vector<24x24xf32> to vector<24xf32>
    %115 = vector.shape_cast %114 : vector<24xf32> to vector<24x1xf32>
    %116 = vector.broadcast %115 : vector<24x1xf32> to vector<24x24xf32>
    %117 = arith.divf %113, %116 : vector<24x24xf32>
    %cst_55 = arith.constant dense<0.000000e+00> : vector<24x8xf32>
    %118 = tpu.matmul %117, %105, %cst_55 {dimension_numbers = #tpu.dot_dimension_numbers<[1], [0], [0], [1], [0, 0, 1, 1], [], []>} : vector<24x24xf32>, vector<24x8xf32>, vector<24x8xf32> -> vector<24x8xf32>
    %119 = vector.extract_strided_slice %13 {offsets = [0, 0], sizes = [8, 32], strides = [1, 1]} : vector<32x32xf32> to vector<8x32xf32>
    %cst_56 = arith.constant dense<0.000000e+00> : vector<24x32xf32>
    %120 = tpu.matmul %118, %119, %cst_56 {dimension_numbers = #tpu.dot_dimension_numbers<[1], [0], [0], [1], [0, 0, 1, 1], [], []>} : vector<24x8xf32>, vector<8x32xf32>, vector<24x32xf32> -> vector<24x32xf32>
    %121 = vector.extract_strided_slice %102 {offsets = [0, 8], sizes = [24, 8], strides = [1, 1]} : vector<24x96xf32> to vector<24x8xf32>
    %122 = vector.extract_strided_slice %102 {offsets = [0, 40], sizes = [24, 8], strides = [1, 1]} : vector<24x96xf32> to vector<24x8xf32>
    %123 = vector.extract_strided_slice %102 {offsets = [0, 72], sizes = [24, 8], strides = [1, 1]} : vector<24x96xf32> to vector<24x8xf32>
    %cst_57 = arith.constant dense<0.000000e+00> : vector<24x24xf32>
    %124 = tpu.matmul %121, %122, %cst_57 {dimension_numbers = #tpu.dot_dimension_numbers<[1], [1], [0], [0], [0, 0, 1, 0], [], []>} : vector<24x8xf32>, vector<24x8xf32>, vector<24x24xf32> -> vector<24x24xf32>
    %125 = vector.broadcast %10 : vector<1x24xf32> to vector<24x24xf32>
    %126 = arith.addf %124, %125 : vector<24x24xf32>
    %cst_58 = arith.constant dense<0xFF800000> : vector<24xf32>
    %127 = vector.multi_reduction <maximumf>, %126, %cst_58 [1] : vector<24x24xf32> to vector<24xf32>
    %128 = vector.shape_cast %127 : vector<24xf32> to vector<24x1xf32>
    %129 = vector.broadcast %128 : vector<24x1xf32> to vector<24x24xf32>
    %130 = arith.subf %126, %129 : vector<24x24xf32>
    %131 = math.exp %130 : vector<24x24xf32>
    %cst_59 = arith.constant dense<0.000000e+00> : vector<24xf32>
    %132 = vector.multi_reduction <add>, %131, %cst_59 [1] : vector<24x24xf32> to vector<24xf32>
    %133 = vector.shape_cast %132 : vector<24xf32> to vector<24x1xf32>
    %134 = vector.broadcast %133 : vector<24x1xf32> to vector<24x24xf32>
    %135 = arith.divf %131, %134 : vector<24x24xf32>
    %cst_60 = arith.constant dense<0.000000e+00> : vector<24x8xf32>
    %136 = tpu.matmul %135, %123, %cst_60 {dimension_numbers = #tpu.dot_dimension_numbers<[1], [0], [0], [1], [0, 0, 1, 1], [], []>} : vector<24x24xf32>, vector<24x8xf32>, vector<24x8xf32> -> vector<24x8xf32>
    %137 = vector.extract_strided_slice %13 {offsets = [8, 0], sizes = [8, 32], strides = [1, 1]} : vector<32x32xf32> to vector<8x32xf32>
    %cst_61 = arith.constant dense<0.000000e+00> : vector<24x32xf32>
    %138 = tpu.matmul %136, %137, %cst_61 {dimension_numbers = #tpu.dot_dimension_numbers<[1], [0], [0], [1], [0, 0, 1, 1], [], []>} : vector<24x8xf32>, vector<8x32xf32>, vector<24x32xf32> -> vector<24x32xf32>
    %139 = arith.addf %120, %138 : vector<24x32xf32>
    %140 = vector.extract_strided_slice %102 {offsets = [0, 16], sizes = [24, 8], strides = [1, 1]} : vector<24x96xf32> to vector<24x8xf32>
    %141 = vector.extract_strided_slice %102 {offsets = [0, 48], sizes = [24, 8], strides = [1, 1]} : vector<24x96xf32> to vector<24x8xf32>
    %142 = vector.extract_strided_slice %102 {offsets = [0, 80], sizes = [24, 8], strides = [1, 1]} : vector<24x96xf32> to vector<24x8xf32>
    %cst_62 = arith.constant dense<0.000000e+00> : vector<24x24xf32>
    %143 = tpu.matmul %140, %141, %cst_62 {dimension_numbers = #tpu.dot_dimension_numbers<[1], [1], [0], [0], [0, 0, 1, 0], [], []>} : vector<24x8xf32>, vector<24x8xf32>, vector<24x24xf32> -> vector<24x24xf32>
    %144 = vector.broadcast %10 : vector<1x24xf32> to vector<24x24xf32>
    %145 = arith.addf %143, %144 : vector<24x24xf32>
    %cst_63 = arith.constant dense<0xFF800000> : vector<24xf32>
    %146 = vector.multi_reduction <maximumf>, %145, %cst_63 [1] : vector<24x24xf32> to vector<24xf32>
    %147 = vector.shape_cast %146 : vector<24xf32> to vector<24x1xf32>
    %148 = vector.broadcast %147 : vector<24x1xf32> to vector<24x24xf32>
    %149 = arith.subf %145, %148 : vector<24x24xf32>
    %150 = math.exp %149 : vector<24x24xf32>
    %cst_64 = arith.constant dense<0.000000e+00> : vector<24xf32>
    %151 = vector.multi_reduction <add>, %150, %cst_64 [1] : vector<24x24xf32> to vector<24xf32>
    %152 = vector.shape_cast %151 : vector<24xf32> to vector<24x1xf32>
    %153 = vector.broadcast %152 : vector<24x1xf32> to vector<24x24xf32>
    %154 = arith.divf %150, %153 : vector<24x24xf32>
    %cst_65 = arith.constant dense<0.000000e+00> : vector<24x8xf32>
    %155 = tpu.matmul %154, %142, %cst_65 {dimension_numbers = #tpu.dot_dimension_numbers<[1], [0], [0], [1], [0, 0, 1, 1], [], []>} : vector<24x24xf32>, vector<24x8xf32>, vector<24x8xf32> -> vector<24x8xf32>
    %156 = vector.extract_strided_slice %13 {offsets = [16, 0], sizes = [8, 32], strides = [1, 1]} : vector<32x32xf32> to vector<8x32xf32>
    %cst_66 = arith.constant dense<0.000000e+00> : vector<24x32xf32>
    %157 = tpu.matmul %155, %156, %cst_66 {dimension_numbers = #tpu.dot_dimension_numbers<[1], [0], [0], [1], [0, 0, 1, 1], [], []>} : vector<24x8xf32>, vector<8x32xf32>, vector<24x32xf32> -> vector<24x32xf32>
    %158 = arith.addf %139, %157 : vector<24x32xf32>
    %159 = vector.extract_strided_slice %102 {offsets = [0, 24], sizes = [24, 8], strides = [1, 1]} : vector<24x96xf32> to vector<24x8xf32>
    %160 = vector.extract_strided_slice %102 {offsets = [0, 56], sizes = [24, 8], strides = [1, 1]} : vector<24x96xf32> to vector<24x8xf32>
    %161 = vector.extract_strided_slice %102 {offsets = [0, 88], sizes = [24, 8], strides = [1, 1]} : vector<24x96xf32> to vector<24x8xf32>
    %cst_67 = arith.constant dense<0.000000e+00> : vector<24x24xf32>
    %162 = tpu.matmul %159, %160, %cst_67 {dimension_numbers = #tpu.dot_dimension_numbers<[1], [1], [0], [0], [0, 0, 1, 0], [], []>} : vector<24x8xf32>, vector<24x8xf32>, vector<24x24xf32> -> vector<24x24xf32>
    %163 = vector.broadcast %10 : vector<1x24xf32> to vector<24x24xf32>
    %164 = arith.addf %162, %163 : vector<24x24xf32>
    %cst_68 = arith.constant dense<0xFF800000> : vector<24xf32>
    %165 = vector.multi_reduction <maximumf>, %164, %cst_68 [1] : vector<24x24xf32> to vector<24xf32>
    %166 = vector.shape_cast %165 : vector<24xf32> to vector<24x1xf32>
    %167 = vector.broadcast %166 : vector<24x1xf32> to vector<24x24xf32>
    %168 = arith.subf %164, %167 : vector<24x24xf32>
    %169 = math.exp %168 : vector<24x24xf32>
    %cst_69 = arith.constant dense<0.000000e+00> : vector<24xf32>
    %170 = vector.multi_reduction <add>, %169, %cst_69 [1] : vector<24x24xf32> to vector<24xf32>
    %171 = vector.shape_cast %170 : vector<24xf32> to vector<24x1xf32>
    %172 = vector.broadcast %171 : vector<24x1xf32> to vector<24x24xf32>
    %173 = arith.divf %169, %172 : vector<24x24xf32>
    %cst_70 = arith.constant dense<0.000000e+00> : vector<24x8xf32>
    %174 = tpu.matmul %173, %161, %cst_70 {dimension_numbers = #tpu.dot_dimension_numbers<[1], [0], [0], [1], [0, 0, 1, 1], [], []>} : vector<24x24xf32>, vector<24x8xf32>, vector<24x8xf32> -> vector<24x8xf32>
    %175 = vector.extract_strided_slice %13 {offsets = [24, 0], sizes = [8, 32], strides = [1, 1]} : vector<32x32xf32> to vector<8x32xf32>
    %cst_71 = arith.constant dense<0.000000e+00> : vector<24x32xf32>
    %176 = tpu.matmul %174, %175, %cst_71 {dimension_numbers = #tpu.dot_dimension_numbers<[1], [0], [0], [1], [0, 0, 1, 1], [], []>} : vector<24x8xf32>, vector<8x32xf32>, vector<24x32xf32> -> vector<24x32xf32>
    %177 = arith.addf %158, %176 : vector<24x32xf32>
    %178 = tpu.concatenate %101, %177 in 0 : vector<24x32xf32>, vector<24x32xf32> -> vector<48x32xf32>
    %179 = vector.broadcast %14 : vector<1x32xf32> to vector<48x32xf32>
    %180 = arith.addf %178, %179 : vector<48x32xf32>
    %181 = arith.addf %4, %180 : vector<48x32xf32>
    %cst_72 = arith.constant dense<0.000000e+00> : vector<48xf32>
    %182 = vector.multi_reduction <add>, %181, %cst_72 [1] : vector<48x32xf32> to vector<48xf32>
    %183 = vector.shape_cast %182 : vector<48xf32> to vector<48x1xf32>
    %cst_73 = arith.constant 3.200000e+01 : f32
    %184 = vector.broadcast %cst_73 : f32 to vector<48x1xf32>
    %185 = arith.divf %183, %184 : vector<48x1xf32>
    %186 = vector.broadcast %185 : vector<48x1xf32> to vector<48x32xf32>
    %187 = arith.subf %181, %186 : vector<48x32xf32>
    %188 = arith.mulf %187, %187 : vector<48x32xf32>
    %cst_74 = arith.constant dense<0.000000e+00> : vector<48xf32>
    %189 = vector.multi_reduction <add>, %188, %cst_74 [1] : vector<48x32xf32> to vector<48xf32>
    %190 = vector.shape_cast %189 : vector<48xf32> to vector<48x1xf32>
    %cst_75 = arith.constant 3.200000e+01 : f32
    %191 = vector.broadcast %cst_75 : f32 to vector<48x1xf32>
    %192 = arith.divf %190, %191 : vector<48x1xf32>
    %193 = vector.broadcast %185 : vector<48x1xf32> to vector<48x32xf32>
    %194 = arith.subf %181, %193 : vector<48x32xf32>
    %cst_76 = arith.constant 9.99999974E-6 : f32
    %195 = vector.broadcast %cst_76 : f32 to vector<48x1xf32>
    %196 = arith.addf %192, %195 : vector<48x1xf32>
    %197 = math.rsqrt %196 : vector<48x1xf32>
    %198 = vector.broadcast %197 : vector<48x1xf32> to vector<48x32xf32>
    %199 = arith.mulf %194, %198 : vector<48x32xf32>
    %200 = vector.broadcast %15 : vector<1x32xf32> to vector<48x32xf32>
    %201 = arith.mulf %199, %200 : vector<48x32xf32>
    %202 = vector.broadcast %16 : vector<1x32xf32> to vector<48x32xf32>
    %203 = arith.addf %201, %202 : vector<48x32xf32>
    %cst_77 = arith.constant dense<0.000000e+00> : vector<48x64xf32>
    %204 = tpu.matmul %203, %17, %cst_77 {dimension_numbers = #tpu.dot_dimension_numbers<[1], [0], [0], [1], [0, 0, 1, 1], [], []>} : vector<48x32xf32>, vector<32x64xf32>, vector<48x64xf32> -> vector<48x64xf32>
    %205 = vector.broadcast %18 : vector<1x64xf32> to vector<48x64xf32>
    %206 = arith.addf %204, %205 : vector<48x64xf32>
    %cst_78 = arith.constant 0.000000e+00 : f32
    %207 = vector.broadcast %cst_78 : f32 to vector<48x64xf32>
    %208 = arith.maximumf %206, %207 : vector<48x64xf32>
    %cst_79 = arith.constant dense<0.000000e+00> : vector<48x32xf32>
    %209 = tpu.matmul %208, %19, %cst_79 {dimension_numbers = #tpu.dot_dimension_numbers<[1], [0], [0], [1], [0, 0, 1, 1], [], []>} : vector<48x64xf32>, vector<64x32xf32>, vector<48x32xf32> -> vector<48x32xf32>
    %210 = vector.broadcast %20 : vector<1x32xf32> to vector<48x32xf32>
    %211 = arith.addf %209, %210 : vector<48x32xf32>
    %212 = arith.addf %203, %211 : vector<48x32xf32>
    %cst_80 = arith.constant dense<0.000000e+00> : vector<48xf32>
    %213 = vector.multi_reduction <add>, %212, %cst_80 [1] : vector<48x32xf32> to vector<48xf32>
    %214 = vector.shape_cast %213 : vector<48xf32> to vector<48x1xf32>
    %cst_81 = arith.constant 3.200000e+01 : f32
    %215 = vector.broadcast %cst_81 : f32 to vector<48x1xf32>
    %216 = arith.divf %214, %215 : vector<48x1xf32>
    %217 = vector.broadcast %216 : vector<48x1xf32> to vector<48x32xf32>
    %218 = arith.subf %212, %217 : vector<48x32xf32>
    %219 = arith.mulf %218, %218 : vector<48x32xf32>
    %cst_82 = arith.constant dense<0.000000e+00> : vector<48xf32>
    %220 = vector.multi_reduction <add>, %219, %cst_82 [1] : vector<48x32xf32> to vector<48xf32>
    %221 = vector.shape_cast %220 : vector<48xf32> to vector<48x1xf32>
    %cst_83 = arith.constant 3.200000e+01 : f32
    %222 = vector.broadcast %cst_83 : f32 to vector<48x1xf32>
    %223 = arith.divf %221, %222 : vector<48x1xf32>
    %224 = vector.broadcast %216 : vector<48x1xf32> to vector<48x32xf32>
    %225 = arith.subf %212, %224 : vector<48x32xf32>
    %cst_84 = arith.constant 9.99999974E-6 : f32
    %226 = vector.broadcast %cst_84 : f32 to vector<48x1xf32>
    %227 = arith.addf %223, %226 : vector<48x1xf32>
    %228 = math.rsqrt %227 : vector<48x1xf32>
    %229 = vector.broadcast %228 : vector<48x1xf32> to vector<48x32xf32>
    %230 = arith.mulf %225, %229 : vector<48x32xf32>
    %231 = vector.broadcast %21 : vector<1x32xf32> to vector<48x32xf32>
    %232 = arith.mulf %230, %231 : vector<48x32xf32>
    %233 = vector.broadcast %22 : vector<1x32xf32> to vector<48x32xf32>
    %234 = arith.addf %232, %233 : vector<48x32xf32>
    %c0_85 = arith.constant 0 : index
    %c0_86 = arith.constant 0 : index
    %235 = vector.load %arg15[%c0_85, %c0_86] : memref<32x96xf32, #tpu.memory_space<vmem>>, vector<32x96xf32>
    %c0_87 = arith.constant 0 : index
    %c0_88 = arith.constant 0 : index
    %236 = vector.load %arg16[%c0_87, %c0_88] : memref<1x96xf32, #tpu.memory_space<vmem>>, vector<1x96xf32>
    %c0_89 = arith.constant 0 : index
    %c0_90 = arith.constant 0 : index
    %237 = vector.load %arg17[%c0_89, %c0_90] : memref<32x32xf32, #tpu.memory_space<vmem>>, vector<32x32xf32>
    %c0_91 = arith.constant 0 : index
    %c0_92 = arith.constant 0 : index
    %238 = vector.load %arg18[%c0_91, %c0_92] : memref<1x32xf32, #tpu.memory_space<vmem>>, vector<1x32xf32>
    %c0_93 = arith.constant 0 : index
    %c0_94 = arith.constant 0 : index
    %239 = vector.load %arg19[%c0_93, %c0_94] : memref<1x32xf32, #tpu.memory_space<vmem>>, vector<1x32xf32>
    %c0_95 = arith.constant 0 : index
    %c0_96 = arith.constant 0 : index
    %240 = vector.load %arg20[%c0_95, %c0_96] : memref<1x32xf32, #tpu.memory_space<vmem>>, vector<1x32xf32>
    %c0_97 = arith.constant 0 : index
    %c0_98 = arith.constant 0 : index
    %241 = vector.load %arg21[%c0_97, %c0_98] : memref<32x64xf32, #tpu.memory_space<vmem>>, vector<32x64xf32>
    %c0_99 = arith.constant 0 : index
    %c0_100 = arith.constant 0 : index
    %242 = vector.load %arg22[%c0_99, %c0_100] : memref<1x64xf32, #tpu.memory_space<vmem>>, vector<1x64xf32>
    %c0_101 = arith.constant 0 : index
    %c0_102 = arith.constant 0 : index
    %243 = vector.load %arg23[%c0_101, %c0_102] : memref<64x32xf32, #tpu.memory_space<vmem>>, vector<64x32xf32>
    %c0_103 = arith.constant 0 : index
    %c0_104 = arith.constant 0 : index
    %244 = vector.load %arg24[%c0_103, %c0_104] : memref<1x32xf32, #tpu.memory_space<vmem>>, vector<1x32xf32>
    %c0_105 = arith.constant 0 : index
    %c0_106 = arith.constant 0 : index
    %245 = vector.load %arg25[%c0_105, %c0_106] : memref<1x32xf32, #tpu.memory_space<vmem>>, vector<1x32xf32>
    %c0_107 = arith.constant 0 : index
    %c0_108 = arith.constant 0 : index
    %246 = vector.load %arg26[%c0_107, %c0_108] : memref<1x32xf32, #tpu.memory_space<vmem>>, vector<1x32xf32>
    %cst_109 = arith.constant dense<0.000000e+00> : vector<48x96xf32>
    %247 = tpu.matmul %234, %235, %cst_109 {dimension_numbers = #tpu.dot_dimension_numbers<[1], [0], [0], [1], [0, 0, 1, 1], [], []>} : vector<48x32xf32>, vector<32x96xf32>, vector<48x96xf32> -> vector<48x96xf32>
    %248 = vector.broadcast %236 : vector<1x96xf32> to vector<48x96xf32>
    %249 = arith.addf %247, %248 : vector<48x96xf32>
    %250 = vector.extract_strided_slice %249 {offsets = [0, 0], sizes = [24, 96], strides = [1, 1]} : vector<48x96xf32> to vector<24x96xf32>
    %251 = vector.extract_strided_slice %250 {offsets = [0, 0], sizes = [24, 8], strides = [1, 1]} : vector<24x96xf32> to vector<24x8xf32>
    %252 = vector.extract_strided_slice %250 {offsets = [0, 32], sizes = [24, 8], strides = [1, 1]} : vector<24x96xf32> to vector<24x8xf32>
    %253 = vector.extract_strided_slice %250 {offsets = [0, 64], sizes = [24, 8], strides = [1, 1]} : vector<24x96xf32> to vector<24x8xf32>
    %cst_110 = arith.constant dense<0.000000e+00> : vector<24x24xf32>
    %254 = tpu.matmul %251, %252, %cst_110 {dimension_numbers = #tpu.dot_dimension_numbers<[1], [1], [0], [0], [0, 0, 1, 0], [], []>} : vector<24x8xf32>, vector<24x8xf32>, vector<24x24xf32> -> vector<24x24xf32>
    %255 = vector.broadcast %10 : vector<1x24xf32> to vector<24x24xf32>
    %256 = arith.addf %254, %255 : vector<24x24xf32>
    %cst_111 = arith.constant dense<0xFF800000> : vector<24xf32>
    %257 = vector.multi_reduction <maximumf>, %256, %cst_111 [1] : vector<24x24xf32> to vector<24xf32>
    %258 = vector.shape_cast %257 : vector<24xf32> to vector<24x1xf32>
    %259 = vector.broadcast %258 : vector<24x1xf32> to vector<24x24xf32>
    %260 = arith.subf %256, %259 : vector<24x24xf32>
    %261 = math.exp %260 : vector<24x24xf32>
    %cst_112 = arith.constant dense<0.000000e+00> : vector<24xf32>
    %262 = vector.multi_reduction <add>, %261, %cst_112 [1] : vector<24x24xf32> to vector<24xf32>
    %263 = vector.shape_cast %262 : vector<24xf32> to vector<24x1xf32>
    %264 = vector.broadcast %263 : vector<24x1xf32> to vector<24x24xf32>
    %265 = arith.divf %261, %264 : vector<24x24xf32>
    %cst_113 = arith.constant dense<0.000000e+00> : vector<24x8xf32>
    %266 = tpu.matmul %265, %253, %cst_113 {dimension_numbers = #tpu.dot_dimension_numbers<[1], [0], [0], [1], [0, 0, 1, 1], [], []>} : vector<24x24xf32>, vector<24x8xf32>, vector<24x8xf32> -> vector<24x8xf32>
    %267 = vector.extract_strided_slice %237 {offsets = [0, 0], sizes = [8, 32], strides = [1, 1]} : vector<32x32xf32> to vector<8x32xf32>
    %cst_114 = arith.constant dense<0.000000e+00> : vector<24x32xf32>
    %268 = tpu.matmul %266, %267, %cst_114 {dimension_numbers = #tpu.dot_dimension_numbers<[1], [0], [0], [1], [0, 0, 1, 1], [], []>} : vector<24x8xf32>, vector<8x32xf32>, vector<24x32xf32> -> vector<24x32xf32>
    %269 = vector.extract_strided_slice %250 {offsets = [0, 8], sizes = [24, 8], strides = [1, 1]} : vector<24x96xf32> to vector<24x8xf32>
    %270 = vector.extract_strided_slice %250 {offsets = [0, 40], sizes = [24, 8], strides = [1, 1]} : vector<24x96xf32> to vector<24x8xf32>
    %271 = vector.extract_strided_slice %250 {offsets = [0, 72], sizes = [24, 8], strides = [1, 1]} : vector<24x96xf32> to vector<24x8xf32>
    %cst_115 = arith.constant dense<0.000000e+00> : vector<24x24xf32>
    %272 = tpu.matmul %269, %270, %cst_115 {dimension_numbers = #tpu.dot_dimension_numbers<[1], [1], [0], [0], [0, 0, 1, 0], [], []>} : vector<24x8xf32>, vector<24x8xf32>, vector<24x24xf32> -> vector<24x24xf32>
    %273 = vector.broadcast %10 : vector<1x24xf32> to vector<24x24xf32>
    %274 = arith.addf %272, %273 : vector<24x24xf32>
    %cst_116 = arith.constant dense<0xFF800000> : vector<24xf32>
    %275 = vector.multi_reduction <maximumf>, %274, %cst_116 [1] : vector<24x24xf32> to vector<24xf32>
    %276 = vector.shape_cast %275 : vector<24xf32> to vector<24x1xf32>
    %277 = vector.broadcast %276 : vector<24x1xf32> to vector<24x24xf32>
    %278 = arith.subf %274, %277 : vector<24x24xf32>
    %279 = math.exp %278 : vector<24x24xf32>
    %cst_117 = arith.constant dense<0.000000e+00> : vector<24xf32>
    %280 = vector.multi_reduction <add>, %279, %cst_117 [1] : vector<24x24xf32> to vector<24xf32>
    %281 = vector.shape_cast %280 : vector<24xf32> to vector<24x1xf32>
    %282 = vector.broadcast %281 : vector<24x1xf32> to vector<24x24xf32>
    %283 = arith.divf %279, %282 : vector<24x24xf32>
    %cst_118 = arith.constant dense<0.000000e+00> : vector<24x8xf32>
    %284 = tpu.matmul %283, %271, %cst_118 {dimension_numbers = #tpu.dot_dimension_numbers<[1], [0], [0], [1], [0, 0, 1, 1], [], []>} : vector<24x24xf32>, vector<24x8xf32>, vector<24x8xf32> -> vector<24x8xf32>
    %285 = vector.extract_strided_slice %237 {offsets = [8, 0], sizes = [8, 32], strides = [1, 1]} : vector<32x32xf32> to vector<8x32xf32>
    %cst_119 = arith.constant dense<0.000000e+00> : vector<24x32xf32>
    %286 = tpu.matmul %284, %285, %cst_119 {dimension_numbers = #tpu.dot_dimension_numbers<[1], [0], [0], [1], [0, 0, 1, 1], [], []>} : vector<24x8xf32>, vector<8x32xf32>, vector<24x32xf32> -> vector<24x32xf32>
    %287 = arith.addf %268, %286 : vector<24x32xf32>
    %288 = vector.extract_strided_slice %250 {offsets = [0, 16], sizes = [24, 8], strides = [1, 1]} : vector<24x96xf32> to vector<24x8xf32>
    %289 = vector.extract_strided_slice %250 {offsets = [0, 48], sizes = [24, 8], strides = [1, 1]} : vector<24x96xf32> to vector<24x8xf32>
    %290 = vector.extract_strided_slice %250 {offsets = [0, 80], sizes = [24, 8], strides = [1, 1]} : vector<24x96xf32> to vector<24x8xf32>
    %cst_120 = arith.constant dense<0.000000e+00> : vector<24x24xf32>
    %291 = tpu.matmul %288, %289, %cst_120 {dimension_numbers = #tpu.dot_dimension_numbers<[1], [1], [0], [0], [0, 0, 1, 0], [], []>} : vector<24x8xf32>, vector<24x8xf32>, vector<24x24xf32> -> vector<24x24xf32>
    %292 = vector.broadcast %10 : vector<1x24xf32> to vector<24x24xf32>
    %293 = arith.addf %291, %292 : vector<24x24xf32>
    %cst_121 = arith.constant dense<0xFF800000> : vector<24xf32>
    %294 = vector.multi_reduction <maximumf>, %293, %cst_121 [1] : vector<24x24xf32> to vector<24xf32>
    %295 = vector.shape_cast %294 : vector<24xf32> to vector<24x1xf32>
    %296 = vector.broadcast %295 : vector<24x1xf32> to vector<24x24xf32>
    %297 = arith.subf %293, %296 : vector<24x24xf32>
    %298 = math.exp %297 : vector<24x24xf32>
    %cst_122 = arith.constant dense<0.000000e+00> : vector<24xf32>
    %299 = vector.multi_reduction <add>, %298, %cst_122 [1] : vector<24x24xf32> to vector<24xf32>
    %300 = vector.shape_cast %299 : vector<24xf32> to vector<24x1xf32>
    %301 = vector.broadcast %300 : vector<24x1xf32> to vector<24x24xf32>
    %302 = arith.divf %298, %301 : vector<24x24xf32>
    %cst_123 = arith.constant dense<0.000000e+00> : vector<24x8xf32>
    %303 = tpu.matmul %302, %290, %cst_123 {dimension_numbers = #tpu.dot_dimension_numbers<[1], [0], [0], [1], [0, 0, 1, 1], [], []>} : vector<24x24xf32>, vector<24x8xf32>, vector<24x8xf32> -> vector<24x8xf32>
    %304 = vector.extract_strided_slice %237 {offsets = [16, 0], sizes = [8, 32], strides = [1, 1]} : vector<32x32xf32> to vector<8x32xf32>
    %cst_124 = arith.constant dense<0.000000e+00> : vector<24x32xf32>
    %305 = tpu.matmul %303, %304, %cst_124 {dimension_numbers = #tpu.dot_dimension_numbers<[1], [0], [0], [1], [0, 0, 1, 1], [], []>} : vector<24x8xf32>, vector<8x32xf32>, vector<24x32xf32> -> vector<24x32xf32>
    %306 = arith.addf %287, %305 : vector<24x32xf32>
    %307 = vector.extract_strided_slice %250 {offsets = [0, 24], sizes = [24, 8], strides = [1, 1]} : vector<24x96xf32> to vector<24x8xf32>
    %308 = vector.extract_strided_slice %250 {offsets = [0, 56], sizes = [24, 8], strides = [1, 1]} : vector<24x96xf32> to vector<24x8xf32>
    %309 = vector.extract_strided_slice %250 {offsets = [0, 88], sizes = [24, 8], strides = [1, 1]} : vector<24x96xf32> to vector<24x8xf32>
    %cst_125 = arith.constant dense<0.000000e+00> : vector<24x24xf32>
    %310 = tpu.matmul %307, %308, %cst_125 {dimension_numbers = #tpu.dot_dimension_numbers<[1], [1], [0], [0], [0, 0, 1, 0], [], []>} : vector<24x8xf32>, vector<24x8xf32>, vector<24x24xf32> -> vector<24x24xf32>
    %311 = vector.broadcast %10 : vector<1x24xf32> to vector<24x24xf32>
    %312 = arith.addf %310, %311 : vector<24x24xf32>
    %cst_126 = arith.constant dense<0xFF800000> : vector<24xf32>
    %313 = vector.multi_reduction <maximumf>, %312, %cst_126 [1] : vector<24x24xf32> to vector<24xf32>
    %314 = vector.shape_cast %313 : vector<24xf32> to vector<24x1xf32>
    %315 = vector.broadcast %314 : vector<24x1xf32> to vector<24x24xf32>
    %316 = arith.subf %312, %315 : vector<24x24xf32>
    %317 = math.exp %316 : vector<24x24xf32>
    %cst_127 = arith.constant dense<0.000000e+00> : vector<24xf32>
    %318 = vector.multi_reduction <add>, %317, %cst_127 [1] : vector<24x24xf32> to vector<24xf32>
    %319 = vector.shape_cast %318 : vector<24xf32> to vector<24x1xf32>
    %320 = vector.broadcast %319 : vector<24x1xf32> to vector<24x24xf32>
    %321 = arith.divf %317, %320 : vector<24x24xf32>
    %cst_128 = arith.constant dense<0.000000e+00> : vector<24x8xf32>
    %322 = tpu.matmul %321, %309, %cst_128 {dimension_numbers = #tpu.dot_dimension_numbers<[1], [0], [0], [1], [0, 0, 1, 1], [], []>} : vector<24x24xf32>, vector<24x8xf32>, vector<24x8xf32> -> vector<24x8xf32>
    %323 = vector.extract_strided_slice %237 {offsets = [24, 0], sizes = [8, 32], strides = [1, 1]} : vector<32x32xf32> to vector<8x32xf32>
    %cst_129 = arith.constant dense<0.000000e+00> : vector<24x32xf32>
    %324 = tpu.matmul %322, %323, %cst_129 {dimension_numbers = #tpu.dot_dimension_numbers<[1], [0], [0], [1], [0, 0, 1, 1], [], []>} : vector<24x8xf32>, vector<8x32xf32>, vector<24x32xf32> -> vector<24x32xf32>
    %325 = arith.addf %306, %324 : vector<24x32xf32>
    %326 = vector.extract_strided_slice %249 {offsets = [24, 0], sizes = [24, 96], strides = [1, 1]} : vector<48x96xf32> to vector<24x96xf32>
    %327 = vector.extract_strided_slice %326 {offsets = [0, 0], sizes = [24, 8], strides = [1, 1]} : vector<24x96xf32> to vector<24x8xf32>
    %328 = vector.extract_strided_slice %326 {offsets = [0, 32], sizes = [24, 8], strides = [1, 1]} : vector<24x96xf32> to vector<24x8xf32>
    %329 = vector.extract_strided_slice %326 {offsets = [0, 64], sizes = [24, 8], strides = [1, 1]} : vector<24x96xf32> to vector<24x8xf32>
    %cst_130 = arith.constant dense<0.000000e+00> : vector<24x24xf32>
    %330 = tpu.matmul %327, %328, %cst_130 {dimension_numbers = #tpu.dot_dimension_numbers<[1], [1], [0], [0], [0, 0, 1, 0], [], []>} : vector<24x8xf32>, vector<24x8xf32>, vector<24x24xf32> -> vector<24x24xf32>
    %331 = vector.broadcast %10 : vector<1x24xf32> to vector<24x24xf32>
    %332 = arith.addf %330, %331 : vector<24x24xf32>
    %cst_131 = arith.constant dense<0xFF800000> : vector<24xf32>
    %333 = vector.multi_reduction <maximumf>, %332, %cst_131 [1] : vector<24x24xf32> to vector<24xf32>
    %334 = vector.shape_cast %333 : vector<24xf32> to vector<24x1xf32>
    %335 = vector.broadcast %334 : vector<24x1xf32> to vector<24x24xf32>
    %336 = arith.subf %332, %335 : vector<24x24xf32>
    %337 = math.exp %336 : vector<24x24xf32>
    %cst_132 = arith.constant dense<0.000000e+00> : vector<24xf32>
    %338 = vector.multi_reduction <add>, %337, %cst_132 [1] : vector<24x24xf32> to vector<24xf32>
    %339 = vector.shape_cast %338 : vector<24xf32> to vector<24x1xf32>
    %340 = vector.broadcast %339 : vector<24x1xf32> to vector<24x24xf32>
    %341 = arith.divf %337, %340 : vector<24x24xf32>
    %cst_133 = arith.constant dense<0.000000e+00> : vector<24x8xf32>
    %342 = tpu.matmul %341, %329, %cst_133 {dimension_numbers = #tpu.dot_dimension_numbers<[1], [0], [0], [1], [0, 0, 1, 1], [], []>} : vector<24x24xf32>, vector<24x8xf32>, vector<24x8xf32> -> vector<24x8xf32>
    %343 = vector.extract_strided_slice %237 {offsets = [0, 0], sizes = [8, 32], strides = [1, 1]} : vector<32x32xf32> to vector<8x32xf32>
    %cst_134 = arith.constant dense<0.000000e+00> : vector<24x32xf32>
    %344 = tpu.matmul %342, %343, %cst_134 {dimension_numbers = #tpu.dot_dimension_numbers<[1], [0], [0], [1], [0, 0, 1, 1], [], []>} : vector<24x8xf32>, vector<8x32xf32>, vector<24x32xf32> -> vector<24x32xf32>
    %345 = vector.extract_strided_slice %326 {offsets = [0, 8], sizes = [24, 8], strides = [1, 1]} : vector<24x96xf32> to vector<24x8xf32>
    %346 = vector.extract_strided_slice %326 {offsets = [0, 40], sizes = [24, 8], strides = [1, 1]} : vector<24x96xf32> to vector<24x8xf32>
    %347 = vector.extract_strided_slice %326 {offsets = [0, 72], sizes = [24, 8], strides = [1, 1]} : vector<24x96xf32> to vector<24x8xf32>
    %cst_135 = arith.constant dense<0.000000e+00> : vector<24x24xf32>
    %348 = tpu.matmul %345, %346, %cst_135 {dimension_numbers = #tpu.dot_dimension_numbers<[1], [1], [0], [0], [0, 0, 1, 0], [], []>} : vector<24x8xf32>, vector<24x8xf32>, vector<24x24xf32> -> vector<24x24xf32>
    %349 = vector.broadcast %10 : vector<1x24xf32> to vector<24x24xf32>
    %350 = arith.addf %348, %349 : vector<24x24xf32>
    %cst_136 = arith.constant dense<0xFF800000> : vector<24xf32>
    %351 = vector.multi_reduction <maximumf>, %350, %cst_136 [1] : vector<24x24xf32> to vector<24xf32>
    %352 = vector.shape_cast %351 : vector<24xf32> to vector<24x1xf32>
    %353 = vector.broadcast %352 : vector<24x1xf32> to vector<24x24xf32>
    %354 = arith.subf %350, %353 : vector<24x24xf32>
    %355 = math.exp %354 : vector<24x24xf32>
    %cst_137 = arith.constant dense<0.000000e+00> : vector<24xf32>
    %356 = vector.multi_reduction <add>, %355, %cst_137 [1] : vector<24x24xf32> to vector<24xf32>
    %357 = vector.shape_cast %356 : vector<24xf32> to vector<24x1xf32>
    %358 = vector.broadcast %357 : vector<24x1xf32> to vector<24x24xf32>
    %359 = arith.divf %355, %358 : vector<24x24xf32>
    %cst_138 = arith.constant dense<0.000000e+00> : vector<24x8xf32>
    %360 = tpu.matmul %359, %347, %cst_138 {dimension_numbers = #tpu.dot_dimension_numbers<[1], [0], [0], [1], [0, 0, 1, 1], [], []>} : vector<24x24xf32>, vector<24x8xf32>, vector<24x8xf32> -> vector<24x8xf32>
    %361 = vector.extract_strided_slice %237 {offsets = [8, 0], sizes = [8, 32], strides = [1, 1]} : vector<32x32xf32> to vector<8x32xf32>
    %cst_139 = arith.constant dense<0.000000e+00> : vector<24x32xf32>
    %362 = tpu.matmul %360, %361, %cst_139 {dimension_numbers = #tpu.dot_dimension_numbers<[1], [0], [0], [1], [0, 0, 1, 1], [], []>} : vector<24x8xf32>, vector<8x32xf32>, vector<24x32xf32> -> vector<24x32xf32>
    %363 = arith.addf %344, %362 : vector<24x32xf32>
    %364 = vector.extract_strided_slice %326 {offsets = [0, 16], sizes = [24, 8], strides = [1, 1]} : vector<24x96xf32> to vector<24x8xf32>
    %365 = vector.extract_strided_slice %326 {offsets = [0, 48], sizes = [24, 8], strides = [1, 1]} : vector<24x96xf32> to vector<24x8xf32>
    %366 = vector.extract_strided_slice %326 {offsets = [0, 80], sizes = [24, 8], strides = [1, 1]} : vector<24x96xf32> to vector<24x8xf32>
    %cst_140 = arith.constant dense<0.000000e+00> : vector<24x24xf32>
    %367 = tpu.matmul %364, %365, %cst_140 {dimension_numbers = #tpu.dot_dimension_numbers<[1], [1], [0], [0], [0, 0, 1, 0], [], []>} : vector<24x8xf32>, vector<24x8xf32>, vector<24x24xf32> -> vector<24x24xf32>
    %368 = vector.broadcast %10 : vector<1x24xf32> to vector<24x24xf32>
    %369 = arith.addf %367, %368 : vector<24x24xf32>
    %cst_141 = arith.constant dense<0xFF800000> : vector<24xf32>
    %370 = vector.multi_reduction <maximumf>, %369, %cst_141 [1] : vector<24x24xf32> to vector<24xf32>
    %371 = vector.shape_cast %370 : vector<24xf32> to vector<24x1xf32>
    %372 = vector.broadcast %371 : vector<24x1xf32> to vector<24x24xf32>
    %373 = arith.subf %369, %372 : vector<24x24xf32>
    %374 = math.exp %373 : vector<24x24xf32>
    %cst_142 = arith.constant dense<0.000000e+00> : vector<24xf32>
    %375 = vector.multi_reduction <add>, %374, %cst_142 [1] : vector<24x24xf32> to vector<24xf32>
    %376 = vector.shape_cast %375 : vector<24xf32> to vector<24x1xf32>
    %377 = vector.broadcast %376 : vector<24x1xf32> to vector<24x24xf32>
    %378 = arith.divf %374, %377 : vector<24x24xf32>
    %cst_143 = arith.constant dense<0.000000e+00> : vector<24x8xf32>
    %379 = tpu.matmul %378, %366, %cst_143 {dimension_numbers = #tpu.dot_dimension_numbers<[1], [0], [0], [1], [0, 0, 1, 1], [], []>} : vector<24x24xf32>, vector<24x8xf32>, vector<24x8xf32> -> vector<24x8xf32>
    %380 = vector.extract_strided_slice %237 {offsets = [16, 0], sizes = [8, 32], strides = [1, 1]} : vector<32x32xf32> to vector<8x32xf32>
    %cst_144 = arith.constant dense<0.000000e+00> : vector<24x32xf32>
    %381 = tpu.matmul %379, %380, %cst_144 {dimension_numbers = #tpu.dot_dimension_numbers<[1], [0], [0], [1], [0, 0, 1, 1], [], []>} : vector<24x8xf32>, vector<8x32xf32>, vector<24x32xf32> -> vector<24x32xf32>
    %382 = arith.addf %363, %381 : vector<24x32xf32>
    %383 = vector.extract_strided_slice %326 {offsets = [0, 24], sizes = [24, 8], strides = [1, 1]} : vector<24x96xf32> to vector<24x8xf32>
    %384 = vector.extract_strided_slice %326 {offsets = [0, 56], sizes = [24, 8], strides = [1, 1]} : vector<24x96xf32> to vector<24x8xf32>
    %385 = vector.extract_strided_slice %326 {offsets = [0, 88], sizes = [24, 8], strides = [1, 1]} : vector<24x96xf32> to vector<24x8xf32>
    %cst_145 = arith.constant dense<0.000000e+00> : vector<24x24xf32>
    %386 = tpu.matmul %383, %384, %cst_145 {dimension_numbers = #tpu.dot_dimension_numbers<[1], [1], [0], [0], [0, 0, 1, 0], [], []>} : vector<24x8xf32>, vector<24x8xf32>, vector<24x24xf32> -> vector<24x24xf32>
    %387 = vector.broadcast %10 : vector<1x24xf32> to vector<24x24xf32>
    %388 = arith.addf %386, %387 : vector<24x24xf32>
    %cst_146 = arith.constant dense<0xFF800000> : vector<24xf32>
    %389 = vector.multi_reduction <maximumf>, %388, %cst_146 [1] : vector<24x24xf32> to vector<24xf32>
    %390 = vector.shape_cast %389 : vector<24xf32> to vector<24x1xf32>
    %391 = vector.broadcast %390 : vector<24x1xf32> to vector<24x24xf32>
    %392 = arith.subf %388, %391 : vector<24x24xf32>
    %393 = math.exp %392 : vector<24x24xf32>
    %cst_147 = arith.constant dense<0.000000e+00> : vector<24xf32>
    %394 = vector.multi_reduction <add>, %393, %cst_147 [1] : vector<24x24xf32> to vector<24xf32>
    %395 = vector.shape_cast %394 : vector<24xf32> to vector<24x1xf32>
    %396 = vector.broadcast %395 : vector<24x1xf32> to vector<24x24xf32>
    %397 = arith.divf %393, %396 : vector<24x24xf32>
    %cst_148 = arith.constant dense<0.000000e+00> : vector<24x8xf32>
    %398 = tpu.matmul %397, %385, %cst_148 {dimension_numbers = #tpu.dot_dimension_numbers<[1], [0], [0], [1], [0, 0, 1, 1], [], []>} : vector<24x24xf32>, vector<24x8xf32>, vector<24x8xf32> -> vector<24x8xf32>
    %399 = vector.extract_strided_slice %237 {offsets = [24, 0], sizes = [8, 32], strides = [1, 1]} : vector<32x32xf32> to vector<8x32xf32>
    %cst_149 = arith.constant dense<0.000000e+00> : vector<24x32xf32>
    %400 = tpu.matmul %398, %399, %cst_149 {dimension_numbers = #tpu.dot_dimension_numbers<[1], [0], [0], [1], [0, 0, 1, 1], [], []>} : vector<24x8xf32>, vector<8x32xf32>, vector<24x32xf32> -> vector<24x32xf32>
    %401 = arith.addf %382, %400 : vector<24x32xf32>
    %402 = tpu.concatenate %325, %401 in 0 : vector<24x32xf32>, vector<24x32xf32> -> vector<48x32xf32>
    %403 = vector.broadcast %238 : vector<1x32xf32> to vector<48x32xf32>
    %404 = arith.addf %402, %403 : vector<48x32xf32>
    %405 = arith.addf %234, %404 : vector<48x32xf32>
    %cst_150 = arith.constant dense<0.000000e+00> : vector<48xf32>
    %406 = vector.multi_reduction <add>, %405, %cst_150 [1] : vector<48x32xf32> to vector<48xf32>
    %407 = vector.shape_cast %406 : vector<48xf32> to vector<48x1xf32>
    %cst_151 = arith.constant 3.200000e+01 : f32
    %408 = vector.broadcast %cst_151 : f32 to vector<48x1xf32>
    %409 = arith.divf %407, %408 : vector<48x1xf32>
    %410 = vector.broadcast %409 : vector<48x1xf32> to vector<48x32xf32>
    %411 = arith.subf %405, %410 : vector<48x32xf32>
    %412 = arith.mulf %411, %411 : vector<48x32xf32>
    %cst_152 = arith.constant dense<0.000000e+00> : vector<48xf32>
    %413 = vector.multi_reduction <add>, %412, %cst_152 [1] : vector<48x32xf32> to vector<48xf32>
    %414 = vector.shape_cast %413 : vector<48xf32> to vector<48x1xf32>
    %cst_153 = arith.constant 3.200000e+01 : f32
    %415 = vector.broadcast %cst_153 : f32 to vector<48x1xf32>
    %416 = arith.divf %414, %415 : vector<48x1xf32>
    %417 = vector.broadcast %409 : vector<48x1xf32> to vector<48x32xf32>
    %418 = arith.subf %405, %417 : vector<48x32xf32>
    %cst_154 = arith.constant 9.99999974E-6 : f32
    %419 = vector.broadcast %cst_154 : f32 to vector<48x1xf32>
    %420 = arith.addf %416, %419 : vector<48x1xf32>
    %421 = math.rsqrt %420 : vector<48x1xf32>
    %422 = vector.broadcast %421 : vector<48x1xf32> to vector<48x32xf32>
    %423 = arith.mulf %418, %422 : vector<48x32xf32>
    %424 = vector.broadcast %239 : vector<1x32xf32> to vector<48x32xf32>
    %425 = arith.mulf %423, %424 : vector<48x32xf32>
    %426 = vector.broadcast %240 : vector<1x32xf32> to vector<48x32xf32>
    %427 = arith.addf %425, %426 : vector<48x32xf32>
    %cst_155 = arith.constant dense<0.000000e+00> : vector<48x64xf32>
    %428 = tpu.matmul %427, %241, %cst_155 {dimension_numbers = #tpu.dot_dimension_numbers<[1], [0], [0], [1], [0, 0, 1, 1], [], []>} : vector<48x32xf32>, vector<32x64xf32>, vector<48x64xf32> -> vector<48x64xf32>
    %429 = vector.broadcast %242 : vector<1x64xf32> to vector<48x64xf32>
    %430 = arith.addf %428, %429 : vector<48x64xf32>
    %cst_156 = arith.constant 0.000000e+00 : f32
    %431 = vector.broadcast %cst_156 : f32 to vector<48x64xf32>
    %432 = arith.maximumf %430, %431 : vector<48x64xf32>
    %cst_157 = arith.constant dense<0.000000e+00> : vector<48x32xf32>
    %433 = tpu.matmul %432, %243, %cst_157 {dimension_numbers = #tpu.dot_dimension_numbers<[1], [0], [0], [1], [0, 0, 1, 1], [], []>} : vector<48x64xf32>, vector<64x32xf32>, vector<48x32xf32> -> vector<48x32xf32>
    %434 = vector.broadcast %244 : vector<1x32xf32> to vector<48x32xf32>
    %435 = arith.addf %433, %434 : vector<48x32xf32>
    %436 = arith.addf %427, %435 : vector<48x32xf32>
    %cst_158 = arith.constant dense<0.000000e+00> : vector<48xf32>
    %437 = vector.multi_reduction <add>, %436, %cst_158 [1] : vector<48x32xf32> to vector<48xf32>
    %438 = vector.shape_cast %437 : vector<48xf32> to vector<48x1xf32>
    %cst_159 = arith.constant 3.200000e+01 : f32
    %439 = vector.broadcast %cst_159 : f32 to vector<48x1xf32>
    %440 = arith.divf %438, %439 : vector<48x1xf32>
    %441 = vector.broadcast %440 : vector<48x1xf32> to vector<48x32xf32>
    %442 = arith.subf %436, %441 : vector<48x32xf32>
    %443 = arith.mulf %442, %442 : vector<48x32xf32>
    %cst_160 = arith.constant dense<0.000000e+00> : vector<48xf32>
    %444 = vector.multi_reduction <add>, %443, %cst_160 [1] : vector<48x32xf32> to vector<48xf32>
    %445 = vector.shape_cast %444 : vector<48xf32> to vector<48x1xf32>
    %cst_161 = arith.constant 3.200000e+01 : f32
    %446 = vector.broadcast %cst_161 : f32 to vector<48x1xf32>
    %447 = arith.divf %445, %446 : vector<48x1xf32>
    %448 = vector.broadcast %440 : vector<48x1xf32> to vector<48x32xf32>
    %449 = arith.subf %436, %448 : vector<48x32xf32>
    %cst_162 = arith.constant 9.99999974E-6 : f32
    %450 = vector.broadcast %cst_162 : f32 to vector<48x1xf32>
    %451 = arith.addf %447, %450 : vector<48x1xf32>
    %452 = math.rsqrt %451 : vector<48x1xf32>
    %453 = vector.broadcast %452 : vector<48x1xf32> to vector<48x32xf32>
    %454 = arith.mulf %449, %453 : vector<48x32xf32>
    %455 = vector.broadcast %245 : vector<1x32xf32> to vector<48x32xf32>
    %456 = arith.mulf %454, %455 : vector<48x32xf32>
    %457 = vector.broadcast %246 : vector<1x32xf32> to vector<48x32xf32>
    %458 = arith.addf %456, %457 : vector<48x32xf32>
    %c0_163 = arith.constant 0 : index
    %c0_164 = arith.constant 0 : index
    %459 = vector.load %arg27[%c0_163, %c0_164] : memref<1x32xf32, #tpu.memory_space<vmem>>, vector<1x32xf32>
    %c0_165 = arith.constant 0 : index
    %c0_166 = arith.constant 0 : index
    %460 = vector.load %arg28[%c0_165, %c0_166] : memref<1x32xf32, #tpu.memory_space<vmem>>, vector<1x32xf32>
    %c0_167 = arith.constant 0 : index
    %c0_168 = arith.constant 0 : index
    %461 = vector.load %arg29[%c0_167, %c0_168] : memref<32x10xf32, #tpu.memory_space<vmem>>, vector<32x10xf32>
    %c0_169 = arith.constant 0 : index
    %c0_170 = arith.constant 0 : index
    %462 = vector.load %arg30[%c0_169, %c0_170] : memref<1x10xf32, #tpu.memory_space<vmem>>, vector<1x10xf32>
    %463 = vector.extract_strided_slice %458 {offsets = [0, 0], sizes = [1, 32], strides = [1, 1]} : vector<48x32xf32> to vector<1x32xf32>
    %464 = vector.extract_strided_slice %458 {offsets = [24, 0], sizes = [1, 32], strides = [1, 1]} : vector<48x32xf32> to vector<1x32xf32>
    %465 = tpu.concatenate %463, %464 in 0 : vector<1x32xf32>, vector<1x32xf32> -> vector<2x32xf32>
    %cst_171 = arith.constant dense<0.000000e+00> : vector<2xf32>
    %466 = vector.multi_reduction <add>, %465, %cst_171 [1] : vector<2x32xf32> to vector<2xf32>
    %467 = vector.shape_cast %466 : vector<2xf32> to vector<2x1xf32>
    %cst_172 = arith.constant 3.200000e+01 : f32
    %468 = vector.broadcast %cst_172 : f32 to vector<2x1xf32>
    %469 = arith.divf %467, %468 : vector<2x1xf32>
    %470 = vector.broadcast %469 : vector<2x1xf32> to vector<2x32xf32>
    %471 = arith.subf %465, %470 : vector<2x32xf32>
    %472 = arith.mulf %471, %471 : vector<2x32xf32>
    %cst_173 = arith.constant dense<0.000000e+00> : vector<2xf32>
    %473 = vector.multi_reduction <add>, %472, %cst_173 [1] : vector<2x32xf32> to vector<2xf32>
    %474 = vector.shape_cast %473 : vector<2xf32> to vector<2x1xf32>
    %cst_174 = arith.constant 3.200000e+01 : f32
    %475 = vector.broadcast %cst_174 : f32 to vector<2x1xf32>
    %476 = arith.divf %474, %475 : vector<2x1xf32>
    %477 = vector.broadcast %469 : vector<2x1xf32> to vector<2x32xf32>
    %478 = arith.subf %465, %477 : vector<2x32xf32>
    %cst_175 = arith.constant 9.99999974E-6 : f32
    %479 = vector.broadcast %cst_175 : f32 to vector<2x1xf32>
    %480 = arith.addf %476, %479 : vector<2x1xf32>
    %481 = math.rsqrt %480 : vector<2x1xf32>
    %482 = vector.broadcast %481 : vector<2x1xf32> to vector<2x32xf32>
    %483 = arith.mulf %478, %482 : vector<2x32xf32>
    %484 = vector.broadcast %459 : vector<1x32xf32> to vector<2x32xf32>
    %485 = arith.mulf %483, %484 : vector<2x32xf32>
    %486 = vector.broadcast %460 : vector<1x32xf32> to vector<2x32xf32>
    %487 = arith.addf %485, %486 : vector<2x32xf32>
    %cst_176 = arith.constant dense<0.000000e+00> : vector<2x10xf32>
    %488 = tpu.matmul %487, %461, %cst_176 {dimension_numbers = #tpu.dot_dimension_numbers<[1], [0], [0], [1], [0, 0, 1, 1], [], []>} : vector<2x32xf32>, vector<32x10xf32>, vector<2x10xf32> -> vector<2x10xf32>
    %489 = vector.broadcast %462 : vector<1x10xf32> to vector<2x10xf32>
    %490 = arith.addf %488, %489 : vector<2x10xf32>
    %c0_177 = arith.constant 0 : index
    %c0_178 = arith.constant 0 : index
    %491 = vector.load %arg31[%c0_177, %c0_178] : memref<2x10xf32, #tpu.memory_space<vmem>>, vector<2x10xf32>
    tpu.vector_store %arg31[%c0_177, %c0_178], %490 {strides = array<i32>} : memref<2x10xf32, #tpu.memory_space<vmem>>, vector<2x10xf32>,
    return
  }
}

</mosaic_0001>

<bundles_post_ra>
// kernel: vit_apply.1
= control target key start
LH: loop header
LB: loop body
LE: loop exit
PB: predicated region body
PF: predicated region fallthrough
CT: control target
= control target key end

     0   :  { %s5154_s6 = smov 1   ;;  %s5155_s10 = smov 2   ;;  %s6960_s0 = inlined_call_operand.smem [shape: u32[32], index: -1, kind: input, shape index: {}] }
   0x1   :  { %s5207_s5 = sld [smem:[%s6960_s0]]   ;;  %s5156_s14 = smov 3  }
   0x2   :  { %s5212_s9 = sld [smem:[%s6960_s0 + %s5154_s6]]   ;;  %s5157_s18 = smov 4  }
   0x3   :  { %s5217_s13 = sld [smem:[%s6960_s0 + %s5155_s10]]   ;;  %s5158_s22 = smov 5  }
   0x4   :  { %s5222_s17 = sld [smem:[%s6960_s0 + %s5156_s14]]   ;;  %s5159_s26 = smov 6  }
   0x5   :  { %s5227_s21 = sld [smem:[%s6960_s0 + %s5157_s18]]   ;;  %s5160_s30 = smov 7  }
   0x6   :  { %s5232_s25 = sld [smem:[%s6960_s0 + %s5158_s22]]   ;;  %s5161_s4 = smov 8  }
   0x7   :  { %s5237_s29 = sld [smem:[%s6960_s0 + %s5159_s26]]   ;;  %s5162_s10 = smov 9  }
   0x8   :  { %s5242_s3 = sld [smem:[%s6960_s0 + %s5160_s30]]   ;;  %s5163_s15 = smov 10  }
   0x9   :  { %s5247_s8 = sld [smem:[%s6960_s0 + %s5161_s4]]   ;;  %s5164_s20 = smov 11  }
   0xa   :  { %s5252_s14 = sld [smem:[%s6960_s0 + %s5162_s10]]   ;;  %s5165_s26 = smov 12  }
   0xb   :  { %s5257_s19 = sld [smem:[%s6960_s0 + %s5163_s15]]   ;;  %s5166_s1 = smov 13  }
   0xc   :  { %s5262_s24 = sld [smem:[%s6960_s0 + %s5164_s20]]   ;;  %s5167_s7 = smov 14  }
   0xd   :  { %s5267_s30 = sld [smem:[%s6960_s0 + %s5165_s26]]   ;;  %s5168_s15 = smov 15  }
   0xe   :  { %s5272_s6 = sld [smem:[%s6960_s0 + %s5166_s1]]   ;;  %s5169_s22 = smov 16  }
   0xf   :  { %s5277_s12 = sld [smem:[%s6960_s0 + %s5167_s7]]   ;;  %s5170_s28 = smov 17  }
  0x10   :  { %s5282_s20 = sld [smem:[%s6960_s0 + %s5168_s15]]   ;;  %s5171_s7 = smov 18  }
  0x11   :  { %s5287_s27 = sld [smem:[%s6960_s0 + %s5169_s22]]   ;;  %s5172_s15 = smov 19  }
  0x12   :  { %s5292_s4 = sld [smem:[%s6960_s0 + %s5170_s28]]   ;;  %s5173_s22 = smov 20  }
  0x13   :  { %s5174_s28 = smov 21  }
  0x14   :  { %6964 = sst [smem:[#allocation5_spill]] %s5272_s6 }
  0x15   :  { %6965 = sst [smem:[#allocation6_spill]] %s5277_s12 }
  0x16   :  { %s5297_s12 = sld [smem:[%s6960_s0 + %s5171_s7]]   ;;  %s5175_s7 = smov 22  }
  0x17   :  { %6966 = sst [smem:[#allocation7_spill]] %s5287_s27 }
  0x18   :  { %6967 = sst [smem:[#allocation8_spill]] %s5292_s4 }
  0x19   :  { %s5302_s6 = sld [smem:[%s6960_s0 + %s5172_s15]]   ;;  %s5176_s15 = smov 23  }
  0x1a   :  { %s5307_s27 = sld [smem:[%s6960_s0 + %s5173_s22]]   ;;  %s5177_s22 = smov 24  }
  0x1b   :  { %s5312_s4 = sld [smem:[%s6960_s0 + %s5174_s28]]   ;;  %s5178_s28 = smov 25  }
  0x1c   :  { %6968 = sst [smem:[#allocation9_spill]] %s5297_s12 }
  0x1d   :  { %s5317_s12 = sld [smem:[%s6960_s0 + %s5175_s7]]   ;;  %s5179_s7 = smov 26  }
  0x1f   :  { %6969 = sst [smem:[#allocation10_spill]] %s5302_s6 }
  0x20   :  { %6970 = sst [smem:[#allocation11_spill]] %s5307_s27 }
  0x21   :  { %6971 = sst [smem:[#allocation12_spill]] %s5312_s4 }
  0x22   :  { %s5322_s6 = sld [smem:[%s6960_s0 + %s5176_s15]]   ;;  %s5180_s15 = smov 27  }
  0x23   :  { %6972 = sst [smem:[#allocation13_spill]] %s5317_s12 }
  0x24   :  { %s5327_s27 = sld [smem:[%s6960_s0 + %s5177_s22]]   ;;  %s5181_s22 = smov 28  }
  0x25   :  { %s5332_s4 = sld [smem:[%s6960_s0 + %s5178_s28]]   ;;  %s5182_s28 = smov 29  }
  0x26   :  { %s5337_s12 = sld [smem:[%s6960_s0 + %s5179_s7]]   ;;  %s5183_s7 = smov 30  }
  0x28   :  { %6973 = sst [smem:[#allocation14_spill]] %s5322_s6 }
  0x29   :  { %s5342_s6 = sld [smem:[%s6960_s0 + %s5180_s15]]   ;;  %s5184_s15 = smov 31  }
  0x2a   :  { %6974 = sst [smem:[#allocation15_spill]] %s5327_s27 }
  0x2b   :  { %6975 = sst [smem:[#allocation16_spill]] %s5332_s4 }
  0x2c   :  { %6976 = sst [smem:[#allocation17_spill]] %s5337_s12 }
  0x2d   :  { %s5347_s27 = sld [smem:[%s6960_s0 + %s5181_s22]]  }
  0x2e   :  { %s5352_s4 = sld [smem:[%s6960_s0 + %s5182_s28]]  }
  0x2f   :  { %6977 = sst [smem:[#allocation18_spill]] %s5342_s6 }
  0x30   :  { %s5357_s12 = sld [smem:[%s6960_s0 + %s5183_s7]]  }
  0x31   :  { %s5362_s6 = sld [smem:[%s6960_s0 + %s5184_s15]]  }
  0x32   :  { %v144_v0 = vld [vmem:[%s5217_s13 + $0x38] sm:$0xff]  ;;  %v143_v1 = vld [vmem:[%s5217_s13 + $0x30] sm:$0xff]  ;;  %v142_v2 = vld [vmem:[%s5217_s13 + $0x28] sm:$0xff] }
  0x33   :  { %178 = vmatpush.msra.mxu0 %v144_v0  ;;  %v141_v3 = vld [vmem:[%s5217_s13 + $0x20] sm:$0xff]  ;;  %v212_v4 = vld [vmem:[%s5222_s17 + $0x18] sm:$0xff]  ;;  %v211_v6 = vld [vmem:[%s5222_s17 + $0x10] sm:$0xff] }
  0x34   :  { %v140_v5 = vld [vmem:[%s5217_s13 + $0x18] sm:$0xff]  ;;  %271 = vmatpush.msra.mxu1 %v212_v4  ;;  %v139_v7 = vld [vmem:[%s5217_s13 + $0x10] sm:$0xff]  ;;  %v138_v8 = vld [vmem:[%s5217_s13 + $0x8] sm:$0xff] }
  0x35   :  { %179 = vmatpush.msra.mxu0 %v143_v1 }
  0x36   :  { %272 = vmatpush.msra.mxu1 %v211_v6 }
  0x37   :  { %180 = vmatpush.msra.mxu0 %v142_v2 }
  0x39   :  { %181 = vmatpush.msra.mxu0 %v141_v3 }
  0x3b   :  { %182 = vmatpush.msra.mxu0 %v140_v5 }
  0x3d   :  { %183 = vmatpush.msra.mxu0 %v139_v7 }
  0x3e   :  { %68 = vsyncpa [#allocation3], 0  ;;  %v137_v9 = vld [vmem:[%s5217_s13] sm:$0xff]  ;;  %vm151_vm0 = vcmask 523264   ;;  %v132_v11 = vld [vmem:[%s5207_s5 + $0x8] sm:$0xff]  ;;  %vm240_vm1 = vcmask 261120   ;;  %v205_v34 = vlaneseq }
  0x3f   :  { %184 = vmatpush.msra.mxu0 %v138_v8  ;;  %v131_v10 = vld [vmem:[%s5207_s5] sm:$0xff]  ;;  %v133_v12 = vld [vmem:[%s5207_s5 + $0x10] sm:$0xff]  ;;  %v210_v13 = vld [vmem:[%s5222_s17 + $0x8] sm:$0xff]  ;;  %s5185_s0 = smov 96   ;;  %vm303_vm2 = vcmask 64512   ;;  %vm342_vm4 = vcmask 195584  }
  0x40   :  { %273 = vmatpush.msra.mxu1 %v210_v13  ;;  %v209_v14 = vld [vmem:[%s5222_s17] sm:$0xff]  ;;  %v146_v18 = vld [vmem:[%s5212_s9 + $0x8] sm:$0xff]  ;;  %v147_v21 = vld [vmem:[%s5212_s9 + $0x10] sm:$0xff]  ;;  %v206_v35 = vand.u32 127, %v205_v34  ;;  %v5186_v36 = vmov -1e+09  }
  0x41   :  { %185 = vmatpush.msra.mxu0 %v137_v9  ;;  %v145_v15 = vld [vmem:[%s5212_s9] sm:$0xff]  ;;  %s5187_s13 = smov 64   ;;  %s5188_s17 = smov 88   ;;  %v134_v0 = vld [vmem:[%s5207_s5 + $0x18] sm:$0xff]  ;;  %v136_v5 = vld [vmem:[%s5207_s5 + $0x28] sm:$0xff] }
  0x42   :  { %4507 = vmatmul.msk.f32.vlgmr.msra.gmra.mxu0 %vm151_vm0, %v131_v10  ;;  %274 = vmatpush.msra.mxu1 %v209_v14  ;;  %v5398_v24 = vld [vmem:[%s5227_s21] ss:$0 sm:$0xff]  ;;  %vm207_vm3 = vcmp.lt.s32.totalorder %v206_v35, 17  ;;  %s5189_s21 = smov 120   ;;  %s5192_s22 = smov 112  }
  0x43   :  { %v5427_v37 = vsel %vm207_vm3, 0.0, %v5186_v36  ;;  %v135_v4 = vld [vmem:[%s5207_s5 + $0x20] sm:$0xff]  ;;  %s5190_s5 = smov 56   ;;  %s5193_s23 = smov 48  }
  0x44   :  { %s5194_s26 = smov 72   ;;  %s5195_s28 = smov 104  }
  0x45   :  { %s5196_s1 = smov 40   ;;  %s6987_s2 = sld [smem:[#allocation13_spill]] }
  0x46   :  { %s6988_s7 = sld [smem:[#allocation15_spill]]  ;;  %s4467_s18 = sshll.u32 %s5362_s6, 4  ;;  %s4468_s18 = int_to_ptr.hbm [resolvable:$true] %s4467_s18 }
  0x47   :  { %s6989_s10 = sld [smem:[#allocation16_spill]] }
  0x48   :  { %s6990_s11 = sld [smem:[#allocation17_spill]] }
  0x49   :  { %s6991_s15 = sld [smem:[#allocation18_spill]] }
  0x4a   :  { %4508 = vmatmul.msk.f32.gmra.mxu0 %vm151_vm0, %v132_v11 }
  0x52   :  { %4509 = vmatmul.msk.f32.gmra.mxu0 %vm151_vm0, %v133_v12 }
  0x5a   :  { %4510 = vmatmul.msk.f32.gmra.mxu0 %vm151_vm0, %v134_v0 }
  0x62   :  { %4511 = vmatmul.msk.f32.gmra.mxu0 %vm151_vm0, %v135_v4 }
  0x6a   :  { %4512 = vmatmul.msk.f32.gmra.mxu0 %vm151_vm0, %v136_v5 }
  0xbf   :  { %v187_v16 = vpop.f32.mrf.mxu0 }
  0xc0   :  { %v5383_v17 = vadd.f32 %v187_v16, %v145_v15 }
  0xc2   :  { %4513 = vmatmul.msk.f32.vlgmr.msra.gmra.mxu1 %vm240_vm1, %v5383_v17 }
  0xc7   :  { %v190_v19 = vpop.f32.mrf.mxu0 }
  0xc8   :  { %v5388_v20 = vadd.f32 %v190_v19, %v146_v18 }
  0xca   :  { %4514 = vmatmul.msk.f32.gmra.mxu1 %vm240_vm1, %v5388_v20 }
  0xcf   :  { %v193_v22 = vpop.f32.mrf.mxu0 }
  0xd0   :  { %v5393_v23 = vadd.f32 %v193_v22, %v147_v21 }
  0xd2   :  { %4515 = vmatmul.msk.f32.gmra.mxu1 %vm240_vm1, %v5393_v23 }
 0x13f   :  { %v276_v25 = vpop.f32.mrf.mxu1 }
 0x140   :  { %v5401_v26 = vadd.f32 %v5398_v24, %v276_v25 }
 0x142   :  { %297 = vrot.lane.b32.xlu1 %v5401_v26, %s5185_s0 }
 0x147   :  { %v279_v27 = vpop.f32.mrf.mxu1 }
 0x148   :  { %v5411_v30 = vadd.f32 %v5398_v24, %v279_v27 }
 0x14f   :  { %v282_v28 = vpop.f32.mrf.mxu1 }
 0x150   :  { %v5406_v29 = vadd.f32 %v5398_v24, %v282_v28 }
 0x152   :  { %301 = vrot.lane.b32.xlu0 %v5406_v29, %s5185_s0  ;;  %v5439_v47 = vpack.i.bf16 %v5411_v30, %v5406_v29 }
 0x15a   :  { %299 = vrot.lane.b32.xlu0 %v5411_v30, %s5185_s0 }
 0x1b4   :  { %v298_v33 = vpop.permute.xlu1 %297 }
 0x1c4   :  { %v302_v31 = vpop.permute.xlu0 %301 }
 0x1c5   :  { %4519 = vmatpush.xpose.msk.msra.mxu2 %vm303_vm2, %v302_v31  ;;  %4742 = vmatpush.xpose.msk.msra.mxu3 %vm303_vm2, %v302_v31 }
 0x1cc   :  { %v300_v32 = vpop.permute.xlu0 %299 }
 0x1cd   :  { %4520 = vmatpush.xpose.msk.msra.mxu2 %vm303_vm2, %v300_v32  ;;  %4743 = vmatpush.xpose.msk.msra.mxu3 %vm303_vm2, %v300_v32 }
 0x1d1   :  { %4521 = vmatpush.xpose.msk.msra.mxu2 %vm303_vm2, %v298_v33  ;;  %4744 = vmatpush.xpose.msk.msra.mxu3 %vm303_vm2, %v298_v33 }
 0x1d4   :  { %4522 = vmatmul.msk.f32.vlgmr.msra.gmra.mxu2 %vm303_vm2, %v5401_v26  ;;  %4524 = vmatmul.msk.f32.vlgmr.msra.gmra.mxu3 %vm303_vm2, %v5406_v29 }
 0x1dc   :  { %4523 = vmatmul.msk.f32.gmra.mxu2 %vm303_vm2, %v5411_v30 }
 0x257   :  { %v333_v38 = vpop.f32.mrf.mxu2  ;;  %v339_v39 = vpop.f32.mrf.mxu3 }
 0x258   :  { %v334_v40 = vadd.f32 %v333_v38, %v5427_v37  ;;  %v340_v41 = vadd.f32 %v339_v39, %v5427_v37 }
 0x25a   :  { %v349_v42 = vsel %vm342_vm4, %v340_v41, -inf  ;;  %v343_v43 = vsel %vm342_vm4, %v334_v40, -inf }
 0x25b   :  { %350 = vmax.xlane.f32.xlu2 %v349_v42  ;;  %344 = vmax.xlane.f32.xlu1 %v343_v43 }
 0x25f   :  { %v336_v44 = vpop.f32.mrf.mxu2 }
 0x260   :  { %v337_v45 = vadd.f32 %v336_v44, %v5427_v37 }
 0x262   :  { %v346_v46 = vsel %vm342_vm4, %v337_v45, -inf }
 0x263   :  { %347 = vmax.xlane.f32.xlu2 %v346_v46 }
 0x274   :  { %415 = vrot.lane.b32.xlu1 %v5401_v26, %s5187_s13 }
 0x27b   :  { %4794 = vrot.lane.b32.xlu2 %v5439_v47, %s5187_s13 }
 0x27c   :  { %467 = vrot.lane.b32.xlu1 %v5411_v30, %s5188_s17 }
 0x284   :  { %459 = vrot.lane.b32.xlu1 %v5401_v26, %s5189_s21 }
 0x2ce   :  { %v351_v48 = vpop.xlane.xlu2 %350  ;;  %v345_v49 = vpop.xlane.xlu1 %344 }
 0x2cf   :  { %v352_v50 = vsub.f32 %v334_v40, %v345_v49  ;;  %v354_v54 = vsub.f32 %v340_v41, %v351_v48  ;;  %v148_v49 = vld [vmem:[%s5212_s9 + $0x18] sm:$0xff] }
 0x2d1   :  { %v355_v51 = vmul.f32 1.442695, %v352_v50  ;;  %v359_v58 = vmul.f32 1.442695, %v354_v54  ;;  %v196_v50 = vpop.f32.mrf.mxu0 }
 0x2d3   :  { %4892 = vpow2.f32 %v355_v51 }
 0x2d6   :  { %v348_v52 = vpop.xlane.xlu2 %347 }
 0x2d7   :  { %v353_v53 = vsub.f32 %v337_v45, %v348_v52  ;;  %v5477_v52 = vadd.f32 %v196_v50, %v148_v49 }
 0x2d9   :  { %v357_v55 = vmul.f32 1.442695, %v353_v53  ;;  %v4893_v56 = vpop.eup %4892  ;;  %4516 = vmatmul.msk.f32.gmra.mxu1 %vm240_vm1, %v5477_v52 }
 0x2da   :  { %v361_v57 = vsel %vm342_vm4, %v4893_v56, 0.0 }
 0x2db   :  { %4894 = vpow2.f32 %v357_v55  ;;  %362 = vadd.xlane.f32.xlu0 %v361_v57 }
 0x2dc   :  { %4896 = vpow2.f32 %v359_v58 }
 0x2de   :  { %v4795_v59 = vpop.permute.xlu2 %4794 }
 0x2df   :  { %v4796_v60 = vunpack.i.l.bf16 %v4795_v59  ;;  %v4797_v62 = vunpack.i.h.bf16 %v4795_v59 }
 0x2e1   :  { %v5448_v61 = vpop.eup %4894  ;;  %446 = vmatpush.msrb.mxu3 %v4796_v60  ;;  %v149_v60 = vld [vmem:[%s5212_s9 + $0x20] sm:$0xff] }
 0x2e2   :  { %v364_v63 = vsel %vm342_vm4, %v5448_v61, 0.0  ;;  %v5454_v2 = vpop.eup %4896 }
 0x2e3   :  { %365 = vadd.xlane.f32.xlu2 %v364_v63  ;;  %447 = vmatpush.msrb.mxu3 %v4797_v62  ;;  %v367_v3 = vsel %vm342_vm4, %v5454_v2, 0.0  ;;  %v150_v63 = vld [vmem:[%s5212_s9 + $0x28] sm:$0xff]  ;;  %s5191_s9 = smov 80  }
 0x2e6   :  { %v416_v1 = vpop.permute.xlu1 %415 }
 0x2e7   :  { %448 = vmatpush.msrb.mxu3 %v416_v1 }
 0x2eb   :  { %368 = vadd.xlane.f32.xlu2 %v367_v3 }
 0x2ee   :  { %v468_v40 = vpop.permute.xlu1 %467 }
 0x2ef   :  { %469 = vrot.lane.b32.xlu0 %v5406_v29, %s5188_s17 }
 0x2f6   :  { %v460_v57 = vpop.permute.xlu1 %459 }
 0x2f7   :  { %465 = vrot.lane.b32.xlu0 %v5401_v26, %s5188_s17 }
 0x2ff   :  { %461 = vrot.lane.b32.xlu0 %v5411_v30, %s5189_s21 }
 0x303   :  { %463 = vrot.lane.b32.xlu2 %v5406_v29, %s5189_s21 }
 0x34e   :  { %v363_v6 = vpop.xlane.xlu0 %362 }
 0x34f   :  { %4898 = vrcp.f32 %v363_v6  ;;  %v381_v11 = vand.u32 2147483648, %v363_v6  ;;  %v379_v13 = vand.u32 2147483647, %v363_v6  ;;  %vm375_vm6 = vweird.f32 %v363_v6 }
 0x351   :  { %v382_v16 = vor.u32 1.1754944e-38, %v381_v11  ;;  %vm380_vm8 = vcmp.eq.f32.partialorder %v379_v13, 8.507059e+37 }
 0x355   :  { %v4899_v7 = vpop.eup %4898 }
 0x356   :  { %v366_v8 = vpop.xlane.xlu2 %365  ;;  %v371_v9 = vmul.f32 %v4899_v7, %v363_v6  ;;  %vm376_vm5 = vweird.f32 %v4899_v7 }
 0x357   :  { %4900 = vrcp.f32 %v366_v8  ;;  %vm377_vm7 = vmor %vm375_vm6, %vm376_vm5  ;;  %v396_v28 = vand.u32 2147483648, %v366_v8  ;;  %v394_v33 = vand.u32 2147483647, %v366_v8  ;;  %vm390_vm10 = vweird.f32 %v366_v8 }
 0x358   :  { %v372_v10 = vsub.f32 1.0, %v371_v9 }
 0x359   :  { %v397_v36 = vor.u32 1.1754944e-38, %v396_v28  ;;  %vm395_vm12 = vcmp.eq.f32.partialorder %v394_v33, 8.507059e+37 }
 0x35a   :  { %v373_v12 = vmul.f32 %v4899_v7, %v372_v10 }
 0x35c   :  { %v374_v15 = vadd.f32 %v4899_v7, %v373_v12 }
 0x35d   :  { %v4901_v14 = vpop.eup %4900 }
 0x35e   :  { %v386_v18 = vmul.f32 %v4901_v14, %v366_v8  ;;  %v369_v19 = vpop.xlane.xlu2 %368  ;;  %v378_v21 = vsel %vm377_vm7, %v4899_v7, %v374_v15  ;;  %vm391_vm9 = vweird.f32 %v4901_v14 }
 0x35f   :  { %4902 = vrcp.f32 %v369_v19  ;;  %v383_v25 = vsel %vm380_vm8, %v382_v16, %v378_v21  ;;  %vm392_vm11 = vmor %vm390_vm10, %vm391_vm9  ;;  %v411_v44 = vand.u32 2147483648, %v369_v19  ;;  %v409_v48 = vand.u32 2147483647, %v369_v19 }
 0x360   :  { %v387_v22 = vsub.f32 1.0, %v386_v18  ;;  %v384_v27 = vmul.f32 %v4893_v56, %v383_v25  ;;  %vm405_vm14 = vweird.f32 %v369_v19 }
 0x361   :  { %v470_v31 = vpop.permute.xlu0 %469  ;;  %v412_v53 = vor.u32 1.1754944e-38, %v411_v44  ;;  %vm410_vm3 = vcmp.eq.f32.partialorder %v409_v48, 8.507059e+37 }
 0x362   :  { %v388_v32 = vmul.f32 %v4901_v14, %v387_v22  ;;  %4525 = vmatmul.msk.f32.vlgmr.msrb.gmra.mxu3 %vm342_vm4, %v384_v27 }
 0x363   :  { %4528 = vmatpush.xpose.msk.msra.mxu3 %vm303_vm2, %v470_v31 }
 0x364   :  { %v389_v34 = vadd.f32 %v4901_v14, %v388_v32 }
 0x365   :  { %v4903_v35 = vpop.eup %4902 }
 0x366   :  { %v401_v38 = vmul.f32 %v4903_v35, %v369_v19  ;;  %v393_v39 = vsel %vm392_vm11, %v4901_v14, %v389_v34  ;;  %vm406_vm13 = vweird.f32 %v4903_v35  ;;  %v464_v59 = vpop.permute.xlu2 %463 }
 0x367   :  { %v398_v41 = vsel %vm395_vm12, %v397_v36, %v393_v39  ;;  %4529 = vmatpush.xpose.msk.msra.mxu3 %vm303_vm2, %v468_v40  ;;  %vm407_vm15 = vmor %vm405_vm14, %vm406_vm13 }
 0x368   :  { %v402_v42 = vsub.f32 1.0, %v401_v38  ;;  %v399_v43 = vmul.f32 %v5448_v61, %v398_v41  ;;  %v199_v61 = vpop.f32.mrf.mxu0 }
 0x369   :  { %v466_v45 = vpop.permute.xlu0 %465  ;;  %v5487_v62 = vadd.f32 %v199_v61, %v149_v60 }
 0x36a   :  { %v403_v46 = vmul.f32 %v4903_v35, %v402_v42  ;;  %4526 = vmatmul.msk.f32.gmra.mxu3 %vm342_vm4, %v399_v43 }
 0x36b   :  { %4530 = vmatpush.xpose.msk.msra.mxu3 %vm303_vm2, %v466_v45  ;;  %4517 = vmatmul.msk.f32.gmra.mxu1 %vm240_vm1, %v5487_v62 }
 0x36c   :  { %v404_v51 = vadd.f32 %v4903_v35, %v403_v46 }
 0x36e   :  { %v408_v54 = vsel %vm407_vm15, %v4903_v35, %v404_v51 }
 0x36f   :  { %v413_v55 = vsel %vm410_vm3, %v412_v53, %v408_v54 }
 0x370   :  { %v414_v56 = vmul.f32 %v5454_v2, %v413_v55  ;;  %v202_v0 = vpop.f32.mrf.mxu0  ;;  %v5497_v2 = vld [vmem:[%s5232_s25] sm:$0xff] }
 0x371   :  { %v462_v58 = vpop.permute.xlu0 %461  ;;  %v5492_v1 = vadd.f32 %v202_v0, %v150_v63  ;;  %684 = vmatpush.msrb.mxu1 %v5497_v2 }
 0x372   :  { %4527 = vmatmul.msk.f32.gmra.mxu3 %vm342_vm4, %v414_v56 }
 0x373   :  { %4518 = vmatmul.msk.f32.gmra.mxu1 %vm240_vm1, %v5492_v1 }
 0x37a   :  { %4531 = vmatmul.msk.f32.vlgmr.msra.gmra.mxu3 %vm303_vm2, %v460_v57 }
 0x382   :  { %4532 = vmatmul.msk.f32.gmra.mxu3 %vm303_vm2, %v462_v58 }
 0x38a   :  { %4533 = vmatmul.msk.f32.gmra.mxu3 %vm303_vm2, %v464_v59 }
 0x3e5   :  { %v450_v3 = vpop.f32.mrf.mxu3 }
 0x3e6   :  { %4540 = vmatmul.msk.f32.vlgmr.msrb.gmra.mxu1 %vm303_vm2, %v450_v3 }
 0x3ed   :  { %v453_v4 = vpop.f32.mrf.mxu3 }
 0x3ee   :  { %4541 = vmatmul.msk.f32.gmra.mxu1 %vm303_vm2, %v453_v4 }
 0x3f5   :  { %v456_v5 = vpop.f32.mrf.mxu3 }
 0x3f6   :  { %4542 = vmatmul.msk.f32.gmra.mxu1 %vm303_vm2, %v456_v5 }
 0x3fd   :  { %v500_v6 = vpop.f32.mrf.mxu3 }
 0x3fe   :  { %v501_v7 = vadd.f32 %v500_v6, %v5427_v37 }
 0x400   :  { %v509_v8 = vsel %vm342_vm4, %v501_v7, -inf }
 0x401   :  { %510 = vmax.xlane.f32.xlu1 %v509_v8 }
 0x405   :  { %v503_v9 = vpop.f32.mrf.mxu3 }
 0x406   :  { %v504_v10 = vadd.f32 %v503_v9, %v5427_v37 }
 0x408   :  { %v512_v11 = vsel %vm342_vm4, %v504_v10, -inf }
 0x409   :  { %513 = vmax.xlane.f32.xlu0 %v512_v11 }
 0x40d   :  { %v506_v12 = vpop.f32.mrf.mxu3 }
 0x40e   :  { %v507_v13 = vadd.f32 %v506_v12, %v5427_v37 }
 0x410   :  { %v515_v14 = vsel %vm342_vm4, %v507_v13, -inf }
 0x411   :  { %516 = vmax.xlane.f32.xlu2 %v515_v14 }
 0x41a   :  { %4799 = vrot.lane.b32.xlu1 %v5439_v47, %s5190_s5 }
 0x41d   :  { %581 = vrot.lane.b32.xlu0 %v5401_v26, %s5190_s5 }
 0x429   :  { %705 = vrot.lane.b32.xlu2 %v5406_v29, %s5191_s9 }
 0x431   :  { %697 = vrot.lane.b32.xlu2 %v5411_v30, %s5192_s22 }
 0x474   :  { %v511_v15 = vpop.xlane.xlu1 %510 }
 0x475   :  { %v518_v16 = vsub.f32 %v501_v7, %v511_v15 }
 0x477   :  { %v521_v18 = vmul.f32 1.442695, %v518_v16 }
 0x479   :  { %4904 = vpow2.f32 %v521_v18 }
 0x47c   :  { %v514_v19 = vpop.xlane.xlu0 %513 }
 0x47d   :  { %v519_v21 = vsub.f32 %v504_v10, %v514_v19 }
 0x47f   :  { %v4905_v22 = vpop.eup %4904  ;;  %v523_v25 = vmul.f32 1.442695, %v519_v21 }
 0x480   :  { %v527_v27 = vsel %vm342_vm4, %v4905_v22, 0.0 }
 0x481   :  { %4906 = vpow2.f32 %v523_v25  ;;  %528 = vadd.xlane.f32.xlu1 %v527_v27 }
 0x484   :  { %v517_v28 = vpop.xlane.xlu2 %516 }
 0x485   :  { %v520_v31 = vsub.f32 %v507_v13, %v517_v28 }
 0x487   :  { %v4907_v32 = vpop.eup %4906  ;;  %v525_v33 = vmul.f32 1.442695, %v520_v31 }
 0x488   :  { %v530_v34 = vsel %vm342_vm4, %v4907_v32, 0.0 }
 0x489   :  { %4908 = vpow2.f32 %v525_v33  ;;  %531 = vadd.xlane.f32.xlu0 %v530_v34 }
 0x48c   :  { %v4800_v35 = vpop.permute.xlu1 %4799  ;;  %v706_v42 = vpop.permute.xlu2 %705 }
 0x48d   :  { %v4801_v36 = vunpack.i.l.bf16 %v4800_v35  ;;  %v4802_v39 = vunpack.i.h.bf16 %v4800_v35 }
 0x48f   :  { %v5519_v38 = vpop.eup %4908  ;;  %612 = vmatpush.msrb.mxu2 %v4801_v36  ;;  %v582_v41 = vpop.permute.xlu0 %581 }
 0x490   :  { %v533_v40 = vsel %vm342_vm4, %v5519_v38, 0.0 }
 0x491   :  { %534 = vadd.xlane.f32.xlu0 %v533_v40  ;;  %613 = vmatpush.msrb.mxu2 %v4802_v39 }
 0x493   :  { %614 = vmatpush.msrb.mxu2 %v582_v41 }
 0x494   :  { %v698_v28 = vpop.permute.xlu2 %697 }
 0x495   :  { %4543 = vmatpush.xpose.msk.msra.mxu2 %vm303_vm2, %v706_v42 }
 0x49a   :  { %703 = vrot.lane.b32.xlu1 %v5411_v30, %s5191_s9 }
 0x4a2   :  { %695 = vrot.lane.b32.xlu1 %v5401_v26, %s5192_s22 }
 0x4a5   :  { %701 = vrot.lane.b32.xlu0 %v5401_v26, %s5191_s9 }
 0x4ad   :  { %699 = vrot.lane.b32.xlu0 %v5406_v29, %s5192_s22 }
 0x4f4   :  { %v529_v43 = vpop.xlane.xlu1 %528 }
 0x4f5   :  { %4910 = vrcp.f32 %v529_v43  ;;  %v547_v49 = vand.u32 2147483648, %v529_v43  ;;  %v545_v51 = vand.u32 2147483647, %v529_v43  ;;  %vm541_vm6 = vweird.f32 %v529_v43 }
 0x4f7   :  { %v548_v55 = vor.u32 1.1754944e-38, %v547_v49  ;;  %vm546_vm8 = vcmp.eq.f32.partialorder %v545_v51, 8.507059e+37 }
 0x4fb   :  { %v4911_v44 = vpop.eup %4910 }
 0x4fc   :  { %v537_v45 = vmul.f32 %v4911_v44, %v529_v43  ;;  %v532_v46 = vpop.xlane.xlu0 %531  ;;  %vm542_vm5 = vweird.f32 %v4911_v44 }
 0x4fd   :  { %4912 = vrcp.f32 %v532_v46  ;;  %vm543_vm7 = vmor %vm541_vm6, %vm542_vm5  ;;  %v562_v63 = vand.u32 2147483648, %v532_v46  ;;  %v560_v3 = vand.u32 2147483647, %v532_v46  ;;  %vm556_vm10 = vweird.f32 %v532_v46 }
 0x4fe   :  { %v538_v48 = vsub.f32 1.0, %v537_v45 }
 0x4ff   :  { %v563_v6 = vor.u32 1.1754944e-38, %v562_v63  ;;  %vm561_vm12 = vcmp.eq.f32.partialorder %v560_v3, 8.507059e+37 }
 0x500   :  { %v539_v50 = vmul.f32 %v4911_v44, %v538_v48 }
 0x502   :  { %v540_v53 = vadd.f32 %v4911_v44, %v539_v50 }
 0x503   :  { %v4913_v54 = vpop.eup %4912 }
 0x504   :  { %v552_v56 = vmul.f32 %v4913_v54, %v532_v46  ;;  %v535_v57 = vpop.xlane.xlu0 %534  ;;  %v544_v58 = vsel %vm543_vm7, %v4911_v44, %v540_v53  ;;  %vm557_vm9 = vweird.f32 %v4913_v54  ;;  %v285_v46 = vpop.f32.mrf.mxu1 }
 0x505   :  { %4914 = vrcp.f32 %v535_v57  ;;  %v549_v59 = vsel %vm546_vm8, %v548_v55, %v544_v58  ;;  %vm558_vm11 = vmor %vm556_vm10, %vm557_vm9  ;;  %v577_v13 = vand.u32 2147483648, %v535_v57  ;;  %v575_v15 = vand.u32 2147483647, %v535_v57 }
 0x506   :  { %v553_v60 = vsub.f32 1.0, %v552_v56  ;;  %v550_v61 = vmul.f32 %v4905_v22, %v549_v59  ;;  %vm571_vm14 = vweird.f32 %v535_v57  ;;  %v5563_v48 = vadd.f32 %v5398_v24, %v285_v46 }
 0x507   :  { %v578_v18 = vor.u32 1.1754944e-38, %v577_v13  ;;  %vm576_vm3 = vcmp.eq.f32.partialorder %v575_v15, 8.507059e+37 }
 0x508   :  { %4534 = vmatmul.msk.f32.vlgmr.msrb.gmra.mxu2 %vm342_vm4, %v550_v61  ;;  %v554_v0 = vmul.f32 %v4913_v54, %v553_v60 }
 0x50a   :  { %v555_v4 = vadd.f32 %v4913_v54, %v554_v0 }
 0x50b   :  { %v4915_v5 = vpop.eup %4914 }
 0x50c   :  { %v567_v7 = vmul.f32 %v4915_v5, %v535_v57  ;;  %v704_v8 = vpop.permute.xlu1 %703  ;;  %v559_v9 = vsel %vm558_vm11, %v4913_v54, %v555_v4  ;;  %vm572_vm13 = vweird.f32 %v4915_v5  ;;  %v288_v49 = vpop.f32.mrf.mxu1 }
 0x50d   :  { %4544 = vmatpush.xpose.msk.msra.mxu2 %vm303_vm2, %v704_v8  ;;  %v564_v10 = vsel %vm561_vm12, %v563_v6, %v559_v9  ;;  %vm573_vm15 = vmor %vm571_vm14, %vm572_vm13  ;;  %v5570_v50 = vadd.f32 %v5398_v24, %v288_v49 }
 0x50e   :  { %v568_v11 = vsub.f32 1.0, %v567_v7  ;;  %v565_v12 = vmul.f32 %v4907_v32, %v564_v10  ;;  %v5542_v32 = vld [vmem:[%s5232_s25 + $0x8] sm:$0xff] }
 0x50f   :  { %649 = vmatpush.msrb.mxu3 %v5542_v32 }
 0x510   :  { %4535 = vmatmul.msk.f32.gmra.mxu2 %vm342_vm4, %v565_v12  ;;  %v569_v14 = vmul.f32 %v4915_v5, %v568_v11 }
 0x512   :  { %v570_v16 = vadd.f32 %v4915_v5, %v569_v14 }
 0x514   :  { %v574_v19 = vsel %vm573_vm15, %v4915_v5, %v570_v16  ;;  %v696_v27 = vpop.permute.xlu1 %695  ;;  %v291_v10 = vpop.f32.mrf.mxu1 }
 0x515   :  { %v579_v21 = vsel %vm576_vm3, %v578_v18, %v574_v19  ;;  %v5599_v11 = vadd.f32 %v5398_v24, %v291_v10 }
 0x516   :  { %v580_v22 = vmul.f32 %v5519_v38, %v579_v21 }
 0x517   :  { %v702_v25 = vpop.permute.xlu0 %701 }
 0x518   :  { %4536 = vmatmul.msk.f32.gmra.mxu2 %vm342_vm4, %v580_v22 }
 0x519   :  { %4545 = vmatpush.xpose.msk.msra.mxu2 %vm303_vm2, %v702_v25 }
 0x51f   :  { %v700_v31 = vpop.permute.xlu0 %699 }
 0x520   :  { %4546 = vmatmul.msk.f32.vlgmr.msra.gmra.mxu2 %vm303_vm2, %v696_v27 }
 0x528   :  { %4547 = vmatmul.msk.f32.gmra.mxu2 %vm303_vm2, %v698_v28 }
 0x530   :  { %4548 = vmatmul.msk.f32.gmra.mxu2 %vm303_vm2, %v700_v31 }
 0x58b   :  { %v616_v33 = vpop.f32.mrf.mxu2 }
 0x58c   :  { %4537 = vmatmul.msk.f32.vlgmr.msrb.gmra.mxu3 %vm303_vm2, %v616_v33 }
 0x593   :  { %v619_v34 = vpop.f32.mrf.mxu2 }
 0x594   :  { %4538 = vmatmul.msk.f32.gmra.mxu3 %vm303_vm2, %v619_v34 }
 0x59b   :  { %v622_v35 = vpop.f32.mrf.mxu2 }
 0x59c   :  { %4539 = vmatmul.msk.f32.gmra.mxu3 %vm303_vm2, %v622_v35 }
 0x5a3   :  { %v736_v36 = vpop.f32.mrf.mxu2 }
 0x5a4   :  { %v737_v38 = vadd.f32 %v736_v36, %v5427_v37 }
 0x5a6   :  { %v745_v39 = vsel %vm342_vm4, %v737_v38, -inf }
 0x5a7   :  { %746 = vmax.xlane.f32.xlu1 %v745_v39 }
 0x5ab   :  { %v739_v40 = vpop.f32.mrf.mxu2 }
 0x5ac   :  { %v740_v41 = vadd.f32 %v739_v40, %v5427_v37 }
 0x5ae   :  { %v748_v42 = vsel %vm342_vm4, %v740_v41, -inf }
 0x5af   :  { %749 = vmax.xlane.f32.xlu2 %v748_v42 }
 0x5b3   :  { %v742_v43 = vpop.f32.mrf.mxu2 }
 0x5b4   :  { %v743_v44 = vadd.f32 %v742_v43, %v5427_v37 }
 0x5b6   :  { %v751_v45 = vsel %vm342_vm4, %v743_v44, -inf }
 0x5b7   :  { %752 = vmax.xlane.f32.xlu0 %v751_v45 }
 0x5cb   :  { %4804 = vrot.lane.b32.xlu0 %v5439_v47, %s5193_s23 }
 0x5d3   :  { %907 = vrot.lane.b32.xlu0 %v5411_v30, %s5194_s26 }
 0x5db   :  { %905 = vrot.lane.b32.xlu0 %v5401_v26, %s5194_s26 }
 0x5e3   :  { %903 = vrot.lane.b32.xlu0 %v5406_v29, %s5195_s28 }
 0x5eb   :  { %1106 = vrot.lane.b32.xlu0 %v5563_v48, %s5185_s0 }
 0x5f3   :  { %4809 = vrot.lane.b32.xlu0 %v5439_v47, %s5196_s1 }
 0x5fb   :  { %1274 = vrot.lane.b32.xlu0 %v5570_v50, %s5188_s17 }
 0x603   :  { %1272 = vrot.lane.b32.xlu0 %v5563_v48, %s5188_s17 }
 0x61a   :  { %v747_v51 = vpop.xlane.xlu1 %746 }
 0x61b   :  { %v754_v53 = vsub.f32 %v737_v38, %v747_v51 }
 0x61d   :  { %v757_v54 = vmul.f32 1.442695, %v754_v53 }
 0x61f   :  { %4916 = vpow2.f32 %v757_v54 }
 0x622   :  { %v750_v55 = vpop.xlane.xlu2 %749 }
 0x623   :  { %v755_v56 = vsub.f32 %v740_v41, %v750_v55 }
 0x625   :  { %v5576_v57 = vpop.eup %4916  ;;  %v759_v58 = vmul.f32 1.442695, %v755_v56 }
 0x626   :  { %v763_v47 = vsel %vm342_vm4, %v5576_v57, 0.0 }
 0x627   :  { %4918 = vpow2.f32 %v759_v58  ;;  %764 = vadd.xlane.f32.xlu1 %v763_v47 }
 0x62a   :  { %v753_v59 = vpop.xlane.xlu0 %752 }
 0x62b   :  { %v756_v60 = vsub.f32 %v743_v44, %v753_v59 }
 0x62d   :  { %v5580_v61 = vpop.eup %4918  ;;  %v761_v63 = vmul.f32 1.442695, %v756_v60 }
 0x62e   :  { %v766_v0 = vsel %vm342_vm4, %v5580_v61, 0.0 }
 0x62f   :  { %4920 = vpow2.f32 %v761_v63  ;;  %767 = vadd.xlane.f32.xlu2 %v766_v0 }
 0x635   :  { %v5584_v3 = vpop.eup %4920 }
 0x636   :  { %v769_v4 = vsel %vm342_vm4, %v5584_v3, 0.0 }
 0x637   :  { %770 = vadd.xlane.f32.xlu1 %v769_v4 }
 0x63d   :  { %v4805_v5 = vpop.permute.xlu0 %4804 }
 0x63e   :  { %v4806_v6 = vunpack.i.l.bf16 %v4805_v5  ;;  %v4807_v7 = vunpack.i.h.bf16 %v4805_v5 }
 0x640   :  { %848 = vmatpush.msrb.mxu0 %v4806_v6  ;;  %4745 = vmatpush.msra.mxu1 %v4806_v6 }
 0x642   :  { %849 = vmatpush.msrb.mxu0 %v4807_v7  ;;  %4746 = vmatpush.msra.mxu1 %v4807_v7 }
 0x645   :  { %v5588_v8 = vpop.permute.xlu0 %907 }
 0x647   :  { %817 = vrot.lane.b32.xlu2 %v5401_v26, %s5193_s23 }
 0x64d   :  { %v5592_v9 = vpop.permute.xlu0 %905 }
 0x64f   :  { %899 = vrot.lane.b32.xlu2 %v5401_v26, %s5195_s28 }
 0x650   :  { %909 = vrot.lane.b32.xlu1 %v5406_v29, %s5194_s26 }
 0x655   :  { %v5601_v12 = vpop.permute.xlu0 %903 }
 0x657   :  { %1110 = vrot.lane.b32.xlu2 %v5599_v11, %s5185_s0 }
 0x658   :  { %901 = vrot.lane.b32.xlu1 %v5411_v30, %s5195_s28 }
 0x65d   :  { %v5607_v13 = vpop.permute.xlu0 %1106 }
 0x65f   :  { %1276 = vrot.lane.b32.xlu2 %v5599_v11, %s5188_s17 }
 0x660   :  { %1108 = vrot.lane.b32.xlu1 %v5570_v50, %s5185_s0 }
 0x665   :  { %v4810_v29 = vpop.permute.xlu0 %4809 }
 0x666   :  { %v4811_v14 = vunpack.i.l.bf16 %v4810_v29  ;;  %v4812_v24 = vunpack.i.h.bf16 %v4810_v29 }
 0x667   :  { %1266 = vrot.lane.b32.xlu2 %v5563_v48, %s5189_s21 }
 0x668   :  { %1052 = vmatpush.msrb.mxu2 %v4811_v14  ;;  %1021 = vrot.lane.b32.xlu1 %v5401_v26, %s5196_s1 }
 0x66a   :  { %1053 = vmatpush.msrb.mxu2 %v4812_v24 }
 0x66d   :  { %v1275_v14 = vpop.permute.xlu0 %1274 }
 0x66f   :  { %1268 = vrot.lane.b32.xlu2 %v5570_v50, %s5189_s21 }
 0x69a   :  { %v765_v30 = vpop.xlane.xlu1 %764 }
 0x69b   :  { %4922 = vrcp.f32 %v765_v30  ;;  %v783_v21 = vand.u32 2147483648, %v765_v30  ;;  %v781_v25 = vand.u32 2147483647, %v765_v30  ;;  %vm777_vm6 = vweird.f32 %v765_v30 }
 0x69d   :  { %v784_v26 = vor.u32 1.1754944e-38, %v783_v21  ;;  %vm782_vm8 = vcmp.eq.f32.partialorder %v781_v25, 8.507059e+37 }
 0x6a1   :  { %v4923_v15 = vpop.eup %4922 }
 0x6a2   :  { %v773_v16 = vmul.f32 %v4923_v15, %v765_v30  ;;  %v768_v18 = vpop.xlane.xlu2 %767  ;;  %vm778_vm5 = vweird.f32 %v4923_v15 }
 0x6a3   :  { %4924 = vrcp.f32 %v768_v18  ;;  %vm779_vm7 = vmor %vm777_vm6, %vm778_vm5  ;;  %v798_v40 = vand.u32 2147483648, %v768_v18  ;;  %v796_v42 = vand.u32 2147483647, %v768_v18  ;;  %vm792_vm10 = vweird.f32 %v768_v18 }
 0x6a4   :  { %v774_v19 = vsub.f32 1.0, %v773_v16 }
 0x6a5   :  { %v799_v45 = vor.u32 1.1754944e-38, %v798_v40  ;;  %vm797_vm12 = vcmp.eq.f32.partialorder %v796_v42, 8.507059e+37 }
 0x6a6   :  { %v775_v22 = vmul.f32 %v4923_v15, %v774_v19 }
 0x6a8   :  { %v776_v27 = vadd.f32 %v4923_v15, %v775_v22 }
 0x6a9   :  { %v4925_v28 = vpop.eup %4924 }
 0x6aa   :  { %v788_v31 = vmul.f32 %v4925_v28, %v768_v18  ;;  %v818_v33 = vpop.permute.xlu2 %817  ;;  %v771_v34 = vpop.xlane.xlu1 %770  ;;  %v780_v35 = vsel %vm779_vm7, %v4923_v15, %v776_v27  ;;  %vm793_vm9 = vweird.f32 %v4925_v28 }
 0x6ab   :  { %4926 = vrcp.f32 %v771_v34  ;;  %850 = vmatpush.msrb.mxu0 %v818_v33  ;;  %4747 = vmatpush.msra.mxu1 %v818_v33  ;;  %v785_v36 = vsel %vm782_vm8, %v784_v26, %v780_v35  ;;  %vm794_vm11 = vmor %vm792_vm10, %vm793_vm9  ;;  %v813_v55 = vand.u32 2147483648, %v771_v34  ;;  %vm807_vm14 = vweird.f32 %v771_v34 }
 0x6ac   :  { %v789_v38 = vsub.f32 1.0, %v788_v31  ;;  %v786_v39 = vmul.f32 %v5576_v57, %v785_v36  ;;  %v811_v57 = vand.u32 2147483647, %v771_v34 }
 0x6ad   :  { %v814_v47 = vor.u32 1.1754944e-38, %v813_v55 }
 0x6ae   :  { %v790_v41 = vmul.f32 %v4925_v28, %v789_v38  ;;  %4549 = vmatmul.msk.f32.vlgmr.msrb.gmra.mxu0 %vm342_vm4, %v786_v39  ;;  %vm812_vm3 = vcmp.eq.f32.partialorder %v811_v57, 8.507059e+37 }
 0x6b0   :  { %v791_v43 = vadd.f32 %v4925_v28, %v790_v41 }
 0x6b1   :  { %v4927_v44 = vpop.eup %4926 }
 0x6b2   :  { %v795_v46 = vsel %vm794_vm11, %v4925_v28, %v791_v43  ;;  %v803_v49 = vmul.f32 %v4927_v44, %v771_v34  ;;  %vm808_vm13 = vweird.f32 %v4927_v44  ;;  %v900_v4 = vpop.permute.xlu2 %899  ;;  %v5670_v28 = vpop.f32.mrf.mxu3 }
 0x6b3   :  { %v800_v51 = vsel %vm797_vm12, %v799_v45, %v795_v46  ;;  %vm809_vm15 = vmor %vm807_vm14, %vm808_vm13 }
 0x6b4   :  { %v804_v53 = vsub.f32 1.0, %v803_v49  ;;  %v801_v54 = vmul.f32 %v5580_v61, %v800_v51 }
 0x6b6   :  { %4550 = vmatmul.msk.f32.vlgmr.msra.gmra.mxu1 %vm342_vm4, %v801_v54  ;;  %v805_v56 = vmul.f32 %v4927_v44, %v804_v53 }
 0x6b8   :  { %v806_v58 = vadd.f32 %v4927_v44, %v805_v56 }
 0x6ba   :  { %v810_v59 = vsel %vm809_vm15, %v4927_v44, %v806_v58  ;;  %v1111_v7 = vpop.permute.xlu2 %1110  ;;  %v5672_v26 = vpop.f32.mrf.mxu3 }
 0x6bb   :  { %v815_v60 = vsel %vm812_vm3, %v814_v47, %v810_v59 }
 0x6bc   :  { %v816_v63 = vmul.f32 %v5584_v3, %v815_v60  ;;  %v216_v3 = vld [vmem:[%s5232_s25 + $0x10] sm:$0xff] }
 0x6bd   :  { %885 = vmatpush.msra.mxu3 %v216_v3 }
 0x6be   :  { %4551 = vmatmul.msk.f32.gmra.mxu1 %vm342_vm4, %v816_v63 }
 0x6bf   :  { %4567 = vmatpush.xpose.msk.msrb.mxu3 %vm303_vm2, %v1111_v7 }
 0x6c2   :  { %v910_v0 = vpop.permute.xlu1 %909  ;;  %v5674_v31 = vpop.f32.mrf.mxu3 }
 0x6c3   :  { %4555 = vmatpush.xpose.msk.msrb.mxu1 %vm303_vm2, %v910_v0 }
 0x6c7   :  { %4556 = vmatpush.xpose.msk.msrb.mxu1 %vm303_vm2, %v5588_v8  ;;  %v1277_v8 = vpop.permute.xlu2 %1276 }
 0x6ca   :  { %v902_v61 = vpop.permute.xlu1 %901 }
 0x6cb   :  { %4557 = vmatpush.xpose.msk.msrb.mxu1 %vm303_vm2, %v5592_v9  ;;  %v5640_v9 = vpop.f32.mrf.mxu1 }
 0x6ce   :  { %4558 = vmatmul.msk.f32.vlgmr.msrb.gmra.mxu1 %vm303_vm2, %v900_v4 }
 0x6cf   :  { %v5678_v34 = vpop.permute.xlu2 %1266 }
 0x6d2   :  { %v1109_v5 = vpop.permute.xlu1 %1108 }
 0x6d3   :  { %4568 = vmatpush.xpose.msk.msrb.mxu3 %vm303_vm2, %v1109_v5  ;;  %v5642_v10 = vpop.f32.mrf.mxu1 }
 0x6d6   :  { %4559 = vmatmul.msk.f32.gmra.mxu1 %vm303_vm2, %v902_v61 }
 0x6d7   :  { %4569 = vmatpush.xpose.msk.msrb.mxu3 %vm303_vm2, %v5607_v13  ;;  %v1273_v13 = vpop.permute.xlu0 %1272  ;;  %v5682_v36 = vpop.permute.xlu2 %1268 }
 0x6da   :  { %v1022_v6 = vpop.permute.xlu1 %1021 }
 0x6db   :  { %1054 = vmatpush.msrb.mxu2 %v1022_v6  ;;  %v5644_v29 = vpop.f32.mrf.mxu1 }
 0x6dd   :  { %4576 = vmatpush.xpose.msk.msra.mxu2 %vm303_vm2, %v1277_v8 }
 0x6de   :  { %4560 = vmatmul.msk.f32.gmra.mxu1 %vm303_vm2, %v5601_v12 }
 0x6e1   :  { %4577 = vmatpush.xpose.msk.msra.mxu2 %vm303_vm2, %v1275_v14 }
 0x6e5   :  { %4578 = vmatpush.xpose.msk.msra.mxu2 %vm303_vm2, %v1273_v13 }
 0x72b   :  { %v852_v12 = vpop.f32.mrf.mxu0 }
 0x72c   :  { %4552 = vmatmul.msk.f32.vlgmr.msra.gmra.mxu3 %vm303_vm2, %v852_v12 }
 0x72d   :  { %1456 = vmatpush.msra.mxu3 %v5542_v32 }
 0x733   :  { %v855_v24 = vpop.f32.mrf.mxu1 }
 0x734   :  { %4553 = vmatmul.msk.f32.gmra.mxu3 %vm303_vm2, %v855_v24 }
 0x73b   :  { %v858_v30 = vpop.f32.mrf.mxu1 }
 0x73c   :  { %4554 = vmatmul.msk.f32.gmra.mxu3 %vm303_vm2, %v858_v30 }
 0x744   :  { %4570 = vmatmul.msk.f32.vlgmr.msrb.gmra.mxu3 %vm303_vm2, %v5563_v48 }
 0x745   :  { %1692 = vmatpush.msrb.mxu3 %v216_v3  ;;  %v5719_v3 = vpack.i.bf16 %v5570_v50, %v5599_v11 }
 0x74b   :  { %v940_v15 = vpop.f32.mrf.mxu1 }
 0x74c   :  { %v941_v16 = vadd.f32 %v940_v15, %v5427_v37  ;;  %4571 = vmatmul.msk.f32.gmra.mxu3 %vm303_vm2, %v5570_v50 }
 0x74e   :  { %v949_v32 = vsel %vm342_vm4, %v941_v16, -inf }
 0x74f   :  { %950 = vmax.xlane.f32.xlu2 %v949_v32 }
 0x753   :  { %v943_v18 = vpop.f32.mrf.mxu1 }
 0x754   :  { %v944_v19 = vadd.f32 %v943_v18, %v5427_v37  ;;  %4572 = vmatmul.msk.f32.gmra.mxu3 %vm303_vm2, %v5599_v11 }
 0x756   :  { %v952_v21 = vsel %vm342_vm4, %v944_v19, -inf }
 0x757   :  { %953 = vmax.xlane.f32.xlu1 %v952_v21 }
 0x75b   :  { %v946_v22 = vpop.f32.mrf.mxu1 }
 0x75c   :  { %v947_v25 = vadd.f32 %v946_v22, %v5427_v37 }
 0x75e   :  { %v955_v27 = vsel %vm342_vm4, %v947_v25, -inf }
 0x75f   :  { %956 = vmax.xlane.f32.xlu0 %v955_v27 }
 0x767   :  { %1512 = vrot.lane.b32.xlu2 %v5599_v11, %s5191_s9 }
 0x770   :  { %1270 = vrot.lane.b32.xlu1 %v5599_v11, %s5189_s21 }
 0x773   :  { %1510 = vrot.lane.b32.xlu0 %v5570_v50, %s5191_s9 }
 0x7af   :  { %v5676_v33 = vpop.f32.mrf.mxu3 }
 0x7b7   :  { %v5680_v35 = vpop.f32.mrf.mxu3 }
 0x7bf   :  { %v5684_v38 = vpop.f32.mrf.mxu3 }
 0x7c2   :  { %v951_v39 = vpop.xlane.xlu2 %950 }
 0x7c3   :  { %v958_v40 = vsub.f32 %v941_v16, %v951_v39 }
 0x7c5   :  { %v961_v41 = vmul.f32 1.442695, %v958_v40 }
 0x7c7   :  { %4928 = vpow2.f32 %v961_v41  ;;  %v1141_v42 = vpop.f32.mrf.mxu3 }
 0x7c8   :  { %v1142_v43 = vadd.f32 %v1141_v42, %v5427_v37 }
 0x7ca   :  { %v954_v44 = vpop.xlane.xlu1 %953  ;;  %v1150_v45 = vsel %vm342_vm4, %v1142_v43, -inf  ;;  %v1513_v7 = vpop.permute.xlu2 %1512 }
 0x7cb   :  { %v959_v46 = vsub.f32 %v944_v19, %v954_v44  ;;  %1151 = vmax.xlane.f32.xlu1 %v1150_v45 }
 0x7cd   :  { %v5688_v49 = vpop.eup %4928  ;;  %v963_v51 = vmul.f32 1.442695, %v959_v46 }
 0x7ce   :  { %v967_v53 = vsel %vm342_vm4, %v5688_v49, 0.0 }
 0x7cf   :  { %4930 = vpow2.f32 %v963_v51  ;;  %968 = vadd.xlane.f32.xlu2 %v967_v53  ;;  %v1144_v54 = vpop.f32.mrf.mxu3 }
 0x7d0   :  { %v1145_v55 = vadd.f32 %v1144_v54, %v5427_v37 }
 0x7d2   :  { %v957_v56 = vpop.xlane.xlu0 %956  ;;  %v1153_v57 = vsel %vm342_vm4, %v1145_v55, -inf }
 0x7d3   :  { %v960_v58 = vsub.f32 %v947_v25, %v957_v56  ;;  %1154 = vmax.xlane.f32.xlu0 %v1153_v57 }
 0x7d5   :  { %v5694_v47 = vpop.eup %4930  ;;  %v965_v59 = vmul.f32 1.442695, %v960_v58 }
 0x7d6   :  { %v970_v60 = vsel %vm342_vm4, %v5694_v47, 0.0 }
 0x7d7   :  { %4932 = vpow2.f32 %v965_v59  ;;  %971 = vadd.xlane.f32.xlu1 %v970_v60  ;;  %v1147_v61 = vpop.f32.mrf.mxu3 }
 0x7d8   :  { %v5711_v4 = vadd.f32 %v1147_v61, %v5427_v37 }
 0x7da   :  { %v1156_v5 = vsel %vm342_vm4, %v5711_v4, -inf }
 0x7dd   :  { %v5698_v63 = vpop.eup %4932 }
 0x7de   :  { %v973_v0 = vsel %vm342_vm4, %v5698_v63, 0.0 }
 0x7df   :  { %974 = vadd.xlane.f32.xlu2 %v973_v0 }
 0x7e2   :  { %v5715_v6 = vpop.permute.xlu1 %1270 }
 0x7e5   :  { %v1511_v8 = vpop.permute.xlu0 %1510 }
 0x7e7   :  { %1502 = vrot.lane.b32.xlu0 %v5563_v48, %s5192_s22 }
 0x7ef   :  { %1506 = vrot.lane.b32.xlu0 %v5599_v11, %s5192_s22 }
 0x7f0   :  { %1504 = vrot.lane.b32.xlu1 %v5570_v50, %s5192_s22 }
 0x7f7   :  { %1508 = vrot.lane.b32.xlu2 %v5563_v48, %s5191_s9 }
 0x820   :  { %1157 = vmax.xlane.f32.xlu2 %v1156_v5 }
 0x838   :  { %4814 = vrot.lane.b32.xlu2 %v5719_v3, %s5187_s13 }
 0x83e   :  { %v1152_v12 = vpop.xlane.xlu1 %1151 }
 0x83f   :  { %v1159_v14 = vsub.f32 %v1142_v43, %v1152_v12 }
 0x841   :  { %v1162_v24 = vmul.f32 1.442695, %v1159_v14 }
 0x842   :  { %v969_v13 = vpop.xlane.xlu2 %968 }
 0x843   :  { %4934 = vpow2.f32 %v1162_v24  ;;  %v987_v27 = vand.u32 2147483648, %v969_v13  ;;  %v985_v40 = vand.u32 2147483647, %v969_v13  ;;  %vm981_vm6 = vweird.f32 %v969_v13 }
 0x844   :  { %4936 = vrcp.f32 %v969_v13 }
 0x845   :  { %v988_v44 = vor.u32 1.1754944e-38, %v987_v27  ;;  %vm986_vm8 = vcmp.eq.f32.partialorder %v985_v40, 8.507059e+37 }
 0x846   :  { %v1155_v30 = vpop.xlane.xlu0 %1154 }
 0x847   :  { %v1160_v15 = vsub.f32 %v1145_v55, %v1155_v30 }
 0x849   :  { %v5723_v16 = vpop.eup %4934  ;;  %v1164_v32 = vmul.f32 1.442695, %v1160_v15 }
 0x84a   :  { %v4937_v18 = vpop.eup %4936  ;;  %v972_v19 = vpop.xlane.xlu1 %971  ;;  %v1168_v21 = vsel %vm342_vm4, %v5723_v16, 0.0 }
 0x84b   :  { %v977_v22 = vmul.f32 %v4937_v18, %v969_v13  ;;  %4938 = vpow2.f32 %v1164_v32  ;;  %1169 = vadd.xlane.f32.xlu1 %v1168_v21  ;;  %vm982_vm5 = vweird.f32 %v4937_v18  ;;  %v1002_v57 = vand.u32 2147483648, %v972_v19 }
 0x84c   :  { %4940 = vrcp.f32 %v972_v19  ;;  %vm983_vm7 = vmor %vm981_vm6, %vm982_vm5  ;;  %v1000_v59 = vand.u32 2147483647, %v972_v19  ;;  %vm996_vm10 = vweird.f32 %v972_v19 }
 0x84d   :  { %v978_v25 = vsub.f32 1.0, %v977_v22  ;;  %v1003_v5 = vor.u32 1.1754944e-38, %v1002_v57 }
 0x84e   :  { %vm1001_vm12 = vcmp.eq.f32.partialorder %v1000_v59, 8.507059e+37 }
 0x84f   :  { %v979_v39 = vmul.f32 %v4937_v18, %v978_v25 }
 0x851   :  { %v5727_v41 = vpop.eup %4938  ;;  %v980_v42 = vadd.f32 %v4937_v18, %v979_v39 }
 0x852   :  { %v4941_v43 = vpop.eup %4940  ;;  %v975_v45 = vpop.xlane.xlu2 %974  ;;  %v1171_v46 = vsel %vm342_vm4, %v5727_v41, 0.0 }
 0x853   :  { %v984_v51 = vsel %vm983_vm7, %v4937_v18, %v980_v42  ;;  %v992_v53 = vmul.f32 %v4941_v43, %v972_v19  ;;  %4942 = vrcp.f32 %v975_v45  ;;  %1172 = vadd.xlane.f32.xlu0 %v1171_v46  ;;  %vm997_vm9 = vweird.f32 %v4941_v43 }
 0x854   :  { %v989_v54 = vsel %vm986_vm8, %v988_v44, %v984_v51  ;;  %vm998_vm11 = vmor %vm996_vm10, %vm997_vm9  ;;  %v1017_v13 = vand.u32 2147483648, %v975_v45  ;;  %v1015_v15 = vand.u32 2147483647, %v975_v45  ;;  %vm1011_vm14 = vweird.f32 %v975_v45 }
 0x855   :  { %v993_v55 = vsub.f32 1.0, %v992_v53  ;;  %v990_v56 = vmul.f32 %v5688_v49, %v989_v54 }
 0x856   :  { %v1018_v18 = vor.u32 1.1754944e-38, %v1017_v13  ;;  %vm1016_vm3 = vcmp.eq.f32.partialorder %v1015_v15, 8.507059e+37 }
 0x857   :  { %4561 = vmatmul.msk.f32.vlgmr.msrb.gmra.mxu2 %vm342_vm4, %v990_v56  ;;  %v994_v58 = vmul.f32 %v4941_v43, %v993_v55 }
 0x858   :  { %4591 = vmatpush.xpose.msk.msrb.mxu2 %vm303_vm2, %v1513_v7 }
 0x859   :  { %v4943_v60 = vpop.eup %4942  ;;  %v995_v0 = vadd.f32 %v4941_v43, %v994_v58 }
 0x85a   :  { %v1007_v61 = vmul.f32 %v4943_v60, %v975_v45  ;;  %vm1012_vm13 = vweird.f32 %v4943_v60  ;;  %v1509_v32 = vpop.permute.xlu2 %1508 }
 0x85b   :  { %v999_v12 = vsel %vm998_vm11, %v4941_v43, %v995_v0  ;;  %vm1013_vm15 = vmor %vm1011_vm14, %vm1012_vm13 }
 0x85c   :  { %v1008_v14 = vsub.f32 1.0, %v1007_v61  ;;  %4592 = vmatpush.xpose.msk.msrb.mxu2 %vm303_vm2, %v1511_v8  ;;  %v1004_v49 = vsel %vm1001_vm12, %v1003_v5, %v999_v12  ;;  %v1503_v8 = vpop.permute.xlu0 %1502 }
 0x85d   :  { %v1005_v24 = vmul.f32 %v5694_v47, %v1004_v49 }
 0x85e   :  { %v1009_v30 = vmul.f32 %v4943_v60, %v1008_v14 }
 0x85f   :  { %4562 = vmatmul.msk.f32.gmra.mxu2 %vm342_vm4, %v1005_v24 }
 0x860   :  { %4593 = vmatpush.xpose.msk.msrb.mxu2 %vm303_vm2, %v1509_v32  ;;  %v1010_v7 = vadd.f32 %v4943_v60, %v1009_v30 }
 0x862   :  { %v1014_v19 = vsel %vm1013_vm15, %v4943_v60, %v1010_v7  ;;  %v1505_v22 = vpop.permute.xlu1 %1504 }
 0x863   :  { %v1019_v21 = vsel %vm1016_vm3, %v1018_v18, %v1014_v19 }
 0x864   :  { %1222 = vrot.lane.b32.xlu1 %v5563_v48, %s5187_s13  ;;  %v1020_v47 = vmul.f32 %v5698_v63, %v1019_v21  ;;  %v1507_v27 = vpop.permute.xlu0 %1506 }
 0x867   :  { %4563 = vmatmul.msk.f32.gmra.mxu2 %vm342_vm4, %v1020_v47  ;;  %1714 = vrot.lane.b32.xlu0 %v5570_v50, %s5194_s26 }
 0x86f   :  { %4579 = vmatmul.msk.f32.vlgmr.msra.gmra.mxu2 %vm303_vm2, %v5678_v34 }
 0x877   :  { %4580 = vmatmul.msk.f32.gmra.mxu2 %vm303_vm2, %v5682_v36 }
 0x87f   :  { %4581 = vmatmul.msk.f32.gmra.mxu2 %vm303_vm2, %v5715_v6 }
 0x887   :  { %4594 = vmatmul.msk.f32.vlgmr.msrb.gmra.mxu2 %vm303_vm2, %v1503_v8 }
 0x88f   :  { %4595 = vmatmul.msk.f32.gmra.mxu2 %vm303_vm2, %v1505_v22 }
 0x893   :  { %v1158_v63 = vpop.xlane.xlu2 %1157 }
 0x894   :  { %v1161_v25 = vsub.f32 %v5711_v4, %v1158_v63  ;;  %v5761_v4 = vld [vmem:[%s5232_s25 + $0x18] sm:$0xff]  ;;  %s6978_s25 = sld [smem:[#allocation5_spill]] }
 0x895   :  { %1089 = vmatpush.msra.mxu0 %v5761_v4 }
 0x896   :  { %v1166_v39 = vmul.f32 1.442695, %v1161_v25 }
 0x897   :  { %4596 = vmatmul.msk.f32.gmra.mxu2 %vm303_vm2, %v1507_v27 }
 0x898   :  { %4944 = vpow2.f32 %v1166_v39 }
 0x89b   :  { %v4815_v34 = vpop.permute.xlu2 %4814 }
 0x89c   :  { %v4816_v36 = vunpack.i.l.bf16 %v4815_v34  ;;  %v4817_v6 = vunpack.i.h.bf16 %v4815_v34 }
 0x89e   :  { %v5754_v40 = vpop.eup %4944  ;;  %1253 = vmatpush.msra.mxu1 %v4816_v36 }
 0x89f   :  { %v1174_v42 = vsel %vm342_vm4, %v5754_v40, 0.0 }
 0x8a0   :  { %1175 = vadd.xlane.f32.xlu2 %v1174_v42  ;;  %1254 = vmatpush.msra.mxu1 %v4817_v6 }
 0x8b8   :  { %1716 = vrot.lane.b32.xlu2 %v5599_v11, %s5194_s26 }
 0x8be   :  { %v1170_v43 = vpop.xlane.xlu1 %1169 }
 0x8bf   :  { %4946 = vrcp.f32 %v1170_v43  ;;  %v1188_v56 = vand.u32 2147483648, %v1170_v43  ;;  %vm1182_vm6 = vweird.f32 %v1170_v43  ;;  %v1186_v57 = vand.u32 2147483647, %v1170_v43 }
 0x8c0   :  { %1712 = vrot.lane.b32.xlu2 %v5563_v48, %s5194_s26 }
 0x8c1   :  { %v1189_v0 = vor.u32 1.1754944e-38, %v1188_v56  ;;  %vm1187_vm8 = vcmp.eq.f32.partialorder %v1186_v57, 8.507059e+37 }
 0x8c5   :  { %v4947_v44 = vpop.eup %4946 }
 0x8c6   :  { %v1178_v45 = vmul.f32 %v4947_v44, %v1170_v43  ;;  %v1173_v46 = vpop.xlane.xlu0 %1172  ;;  %vm1183_vm5 = vweird.f32 %v4947_v44 }
 0x8c7   :  { %4948 = vrcp.f32 %v1173_v46  ;;  %vm1184_vm7 = vmor %vm1182_vm6, %vm1183_vm5  ;;  %v1203_v14 = vand.u32 2147483648, %v1173_v46  ;;  %vm1197_vm10 = vweird.f32 %v1173_v46  ;;  %v1201_v13 = vand.u32 2147483647, %v1173_v46 }
 0x8c8   :  { %v1179_v51 = vsub.f32 1.0, %v1178_v45  ;;  %1706 = vrot.lane.b32.xlu2 %v5563_v48, %s5195_s28 }
 0x8c9   :  { %v1204_v15 = vor.u32 1.1754944e-38, %v1203_v14  ;;  %vm1202_vm12 = vcmp.eq.f32.partialorder %v1201_v13, 8.507059e+37 }
 0x8ca   :  { %v1180_v53 = vmul.f32 %v4947_v44, %v1179_v51 }
 0x8cc   :  { %v1181_v54 = vadd.f32 %v4947_v44, %v1180_v53 }
 0x8cd   :  { %v4949_v55 = vpop.eup %4948 }
 0x8ce   :  { %v1193_v58 = vmul.f32 %v4949_v55, %v1173_v46  ;;  %v1185_v59 = vsel %vm1184_vm7, %v4947_v44, %v1181_v54  ;;  %vm1198_vm9 = vweird.f32 %v4949_v55 }
 0x8cf   :  { %v1190_v5 = vsel %vm1187_vm8, %v1189_v0, %v1185_v59  ;;  %vm1199_vm11 = vmor %vm1197_vm10, %vm1198_vm9 }
 0x8d0   :  { %v1194_v60 = vsub.f32 1.0, %v1193_v58  ;;  %1708 = vrot.lane.b32.xlu2 %v5570_v50, %s5195_s28  ;;  %v1191_v24 = vmul.f32 %v5723_v16, %v1190_v5 }
 0x8d2   :  { %v1195_v61 = vmul.f32 %v4949_v55, %v1194_v60 }
 0x8d4   :  { %v1196_v12 = vadd.f32 %v4949_v55, %v1195_v61 }
 0x8d6   :  { %v1223_v49 = vpop.permute.xlu1 %1222  ;;  %v1200_v30 = vsel %vm1199_vm11, %v4949_v55, %v1196_v12 }
 0x8d7   :  { %1255 = vmatpush.msra.mxu1 %v1223_v49  ;;  %v1205_v32 = vsel %vm1202_vm12, %v1204_v15, %v1200_v30 }
 0x8d8   :  { %4573 = vmatmul.msk.f32.vlgmr.msra.gmra.mxu1 %vm342_vm4, %v1191_v24  ;;  %v1206_v7 = vmul.f32 %v5727_v41, %v1205_v32 }
 0x8d9   :  { %1491 = vmatpush.msrb.mxu1 %v5497_v2  ;;  %v1715_v57 = vpop.permute.xlu0 %1714 }
 0x8da   :  { %v1056_v50 = vpop.f32.mrf.mxu2 }
 0x8db   :  { %4564 = vmatmul.msk.f32.vlgmr.msra.gmra.mxu0 %vm303_vm2, %v1056_v50 }
 0x8e0   :  { %4574 = vmatmul.msk.f32.gmra.mxu1 %vm342_vm4, %v1206_v7 }
 0x8e2   :  { %v1059_v16 = vpop.f32.mrf.mxu2 }
 0x8e3   :  { %4565 = vmatmul.msk.f32.gmra.mxu0 %vm303_vm2, %v1059_v16 }
 0x8ea   :  { %v1062_v18 = vpop.f32.mrf.mxu2 }
 0x8eb   :  { %4566 = vmatmul.msk.f32.gmra.mxu0 %vm303_vm2, %v1062_v18 }
 0x8f2   :  { %v1307_v19 = vpop.f32.mrf.mxu2 }
 0x8f3   :  { %v1308_v21 = vadd.f32 %v1307_v19, %v5427_v37 }
 0x8f5   :  { %v1316_v2 = vsel %vm342_vm4, %v1308_v21, -inf }
 0x8f6   :  { %1317 = vmax.xlane.f32.xlu0 %v1316_v2 }
 0x8fa   :  { %v1310_v47 = vpop.f32.mrf.mxu2 }
 0x8fb   :  { %v1311_v8 = vadd.f32 %v1310_v47, %v5427_v37 }
 0x8fd   :  { %v1319_v22 = vsel %vm342_vm4, %v1311_v8, -inf }
 0x8fe   :  { %1320 = vmax.xlane.f32.xlu0 %v1319_v22 }
 0x902   :  { %v1313_v41 = vpop.f32.mrf.mxu2 }
 0x903   :  { %v1314_v63 = vadd.f32 %v1313_v41, %v5427_v37 }
 0x905   :  { %v1322_v25 = vsel %vm342_vm4, %v1314_v63, -inf }
 0x906   :  { %1323 = vmax.xlane.f32.xlu2 %v1322_v25 }
 0x90a   :  { %v1543_v27 = vpop.f32.mrf.mxu2 }
 0x90b   :  { %v5785_v39 = vadd.f32 %v1543_v27, %v5427_v37 }
 0x90d   :  { %v1552_v34 = vsel %vm342_vm4, %v5785_v39, -inf }
 0x90e   :  { %1553 = vmax.xlane.f32.xlu0 %v1552_v34 }
 0x912   :  { %v1546_v36 = vpop.f32.mrf.mxu2 }
 0x913   :  { %v1547_v6 = vadd.f32 %v1546_v36, %v5427_v37  ;;  %v1176_v42 = vpop.xlane.xlu2 %1175 }
 0x914   :  { %4950 = vrcp.f32 %v1176_v42  ;;  %v1218_v56 = vand.u32 2147483648, %v1176_v42  ;;  %v1216_v59 = vand.u32 2147483647, %v1176_v42  ;;  %vm1212_vm14 = vweird.f32 %v1176_v42 }
 0x915   :  { %v1555_v43 = vsel %vm342_vm4, %v1547_v6, -inf }
 0x916   :  { %1556 = vmax.xlane.f32.xlu1 %v1555_v43  ;;  %v1219_v0 = vor.u32 1.1754944e-38, %v1218_v56  ;;  %vm1217_vm3 = vcmp.eq.f32.partialorder %v1216_v59, 8.507059e+37 }
 0x91a   :  { %v4951_v44 = vpop.eup %4950  ;;  %v1549_v45 = vpop.f32.mrf.mxu2 }
 0x91b   :  { %v1208_v46 = vmul.f32 %v4951_v44, %v1176_v42  ;;  %v5792_v51 = vadd.f32 %v1549_v45, %v5427_v37  ;;  %v1717_v53 = vpop.permute.xlu2 %1716  ;;  %vm1213_vm13 = vweird.f32 %v4951_v44 }
 0x91c   :  { %4603 = vmatpush.xpose.msk.msra.mxu1 %vm303_vm2, %v1717_v53  ;;  %vm1214_vm15 = vmor %vm1212_vm14, %vm1213_vm13 }
 0x91d   :  { %v1209_v54 = vsub.f32 1.0, %v1208_v46  ;;  %v1558_v55 = vsel %vm342_vm4, %v5792_v51, -inf }
 0x91e   :  { %1710 = vrot.lane.b32.xlu2 %v5599_v11, %s5195_s28  ;;  %1559 = vmax.xlane.f32.xlu0 %v1558_v55 }
 0x91f   :  { %v1210_v58 = vmul.f32 %v4951_v44, %v1209_v54 }
 0x920   :  { %4604 = vmatpush.xpose.msk.msra.mxu1 %vm303_vm2, %v1715_v57 }
 0x921   :  { %v1211_v60 = vadd.f32 %v4951_v44, %v1210_v58 }
 0x923   :  { %v1713_v61 = vpop.permute.xlu2 %1712  ;;  %v1215_v5 = vsel %vm1214_vm15, %v4951_v44, %v1211_v60  ;;  %v5823_v44 = vld [vmem:[%s5237_s29] ss:$0 sm:$0xff]  ;;  %s6979_s29 = sld [smem:[#allocation6_spill]] }
 0x924   :  { %4605 = vmatpush.xpose.msk.msra.mxu1 %vm303_vm2, %v1713_v61  ;;  %v1220_v12 = vsel %vm1217_vm3, %v1219_v0, %v1215_v5  ;;  %v693_v0 = vadd.f32 %v5644_v29, %v5674_v31 }
 0x925   :  { %v1221_v11 = vmul.f32 %v5754_v40, %v1220_v12 }
 0x926   :  { %v898_v5 = vadd.f32 %v5684_v38, %v693_v0 }
 0x927   :  { %4575 = vmatmul.msk.f32.gmra.mxu1 %vm342_vm4, %v1221_v11 }
 0x92b   :  { %v1707_v24 = vpop.permute.xlu2 %1706 }
 0x932   :  { %1388 = vrot.lane.b32.xlu0 %v5563_v48, %s5190_s5 }
 0x933   :  { %v1709_v50 = vpop.permute.xlu2 %1708 }
 0x955   :  { %v1257_v14 = vpop.f32.mrf.mxu1 }
 0x956   :  { %4588 = vmatmul.msk.f32.vlgmr.msrb.gmra.mxu1 %vm303_vm2, %v1257_v14 }
 0x958   :  { %v1091_v36 = vpop.f32.mrf.mxu0 }
 0x95d   :  { %v1260_v49 = vpop.f32.mrf.mxu1 }
 0x95e   :  { %4589 = vmatmul.msk.f32.gmra.mxu1 %vm303_vm2, %v1260_v49 }
 0x960   :  { %v1094_v56 = vpop.f32.mrf.mxu0 }
 0x968   :  { %v1097_v61 = vpop.f32.mrf.mxu0 }
 0x969   :  { %v1318_v13 = vpop.xlane.xlu0 %1317  ;;  %v1102_v11 = vadd.f32 %v1097_v61, %v898_v5 }
 0x96a   :  { %v1325_v30 = vsub.f32 %v1308_v21, %v1318_v13 }
 0x96c   :  { %v1328_v15 = vmul.f32 1.442695, %v1325_v30 }
 0x96e   :  { %4952 = vpow2.f32 %v1328_v15  ;;  %v5197_v15 = vmov 32.0  }
 0x971   :  { %v1321_v32 = vpop.xlane.xlu0 %1320 }
 0x972   :  { %v1326_v7 = vsub.f32 %v1311_v8, %v1321_v32 }
 0x974   :  { %v5807_v40 = vpop.eup %4952  ;;  %v1330_v16 = vmul.f32 1.442695, %v1326_v7 }
 0x975   :  { %v1334_v18 = vsel %vm342_vm4, %v5807_v40, 0.0 }
 0x976   :  { %4954 = vpow2.f32 %v1330_v16  ;;  %1335 = vadd.xlane.f32.xlu1 %v1334_v18 }
 0x979   :  { %v1324_v19 = vpop.xlane.xlu2 %1323 }
 0x97a   :  { %v1327_v2 = vsub.f32 %v1314_v63, %v1324_v19  ;;  %v687_v63 = vadd.f32 %v5640_v9, %v5670_v28 }
 0x97c   :  { %v5811_v47 = vpop.eup %4954  ;;  %v1332_v22 = vmul.f32 1.442695, %v1327_v2  ;;  %v896_v42 = vadd.f32 %v5676_v33, %v687_v63 }
 0x97d   :  { %v1337_v21 = vsel %vm342_vm4, %v5811_v47, 0.0 }
 0x97e   :  { %4956 = vpow2.f32 %v1332_v22  ;;  %1338 = vadd.xlane.f32.xlu1 %v1337_v21  ;;  %v1100_v43 = vadd.f32 %v1091_v36, %v896_v42 }
 0x980   :  { %v1913_v46 = vadd.f32 %v5823_v44, %v1100_v43 }
 0x981   :  { %v1711_v59 = vpop.permute.xlu2 %1710 }
 0x982   :  { %v5833_v9 = vadd.f32 %v1913_v46, %v5383_v17 }
 0x984   :  { %v5815_v8 = vpop.eup %4956  ;;  %v1925_v28 = vsel %vm240_vm1, %v5833_v9, 0.0 }
 0x985   :  { %v1340_v41 = vsel %vm342_vm4, %v5815_v8, 0.0 }
 0x986   :  { %1341 = vadd.xlane.f32.xlu2 %v1340_v41 }
 0x989   :  { %v1557_v25 = vpop.xlane.xlu1 %1556 }
 0x98a   :  { %v1562_v27 = vsub.f32 %v1547_v6, %v1557_v25  ;;  %v1554_v6 = vpop.xlane.xlu0 %1553 }
 0x98b   :  { %v1561_v54 = vsub.f32 %v5785_v39, %v1554_v6  ;;  %v690_v39 = vadd.f32 %v5642_v10, %v5672_v26 }
 0x98c   :  { %v1566_v34 = vmul.f32 1.442695, %v1562_v27 }
 0x98d   :  { %v1564_v17 = vmul.f32 1.442695, %v1561_v54 }
 0x98e   :  { %4958 = vpow2.f32 %v1566_v34 }
 0x98f   :  { %4960 = vpow2.f32 %v1564_v17 }
 0x992   :  { %v1560_v55 = vpop.xlane.xlu0 %1559 }
 0x993   :  { %v1563_v57 = vsub.f32 %v5792_v51, %v1560_v55  ;;  %v897_v51 = vadd.f32 %v5680_v35, %v690_v39 }
 0x994   :  { %v5825_v45 = vpop.eup %4958 }
 0x995   :  { %v1573_v53 = vsel %vm342_vm4, %v5825_v45, 0.0  ;;  %v1568_v58 = vmul.f32 1.442695, %v1563_v57  ;;  %v5846_v60 = vpop.eup %4960  ;;  %v1101_v14 = vadd.f32 %v1094_v56, %v897_v51 }
 0x996   :  { %1574 = vadd.xlane.f32.xlu0 %v1573_v53  ;;  %v1570_v12 = vsel %vm342_vm4, %v5846_v60, 0.0 }
 0x997   :  { %4819 = vrot.lane.b32.xlu1 %v5719_v3, %s5190_s5  ;;  %4962 = vpow2.f32 %v1568_v58  ;;  %v1914_v29 = vadd.f32 %v5823_v44, %v1101_v14 }
 0x999   :  { %v5867_v26 = vadd.f32 %v1914_v29, %v5388_v20 }
 0x99b   :  { %v1928_v38 = vsel %vm240_vm1, %v5867_v26, 0.0 }
 0x99d   :  { %v5857_v49 = vpop.eup %4962 }
 0x99e   :  { %4824 = vrot.lane.b32.xlu2 %v5719_v3, %s5193_s23  ;;  %1926 = vadd.xlane.f32.xlu0 %v1925_v28  ;;  %v1576_v31 = vsel %vm342_vm4, %v5857_v49, 0.0 }
 0x9a4   :  { %v1263_v33 = vpop.f32.mrf.mxu1  ;;  %v1389_v19 = vpop.permute.xlu0 %1388 }
 0x9a5   :  { %4590 = vmatmul.msk.f32.gmra.mxu1 %vm303_vm2, %v1263_v33 }
 0x9a6   :  { %1624 = vrot.lane.b32.xlu2 %v5563_v48, %s5193_s23 }
 0x9ad   :  { %4606 = vmatmul.msk.f32.vlgmr.msra.gmra.mxu1 %vm303_vm2, %v1707_v24  ;;  %v1915_v24 = vadd.f32 %v5823_v44, %v1102_v11 }
 0x9af   :  { %v5864_v10 = vadd.f32 %v1915_v24, %v5393_v23 }
 0x9b1   :  { %v1931_v35 = vsel %vm240_vm1, %v5864_v10, 0.0 }
 0x9b5   :  { %4607 = vmatmul.msk.f32.gmra.mxu1 %vm303_vm2, %v1709_v50 }
 0x9bd   :  { %4608 = vmatmul.msk.f32.gmra.mxu1 %vm303_vm2, %v1711_v59 }
 0x9c1   :  { %1571 = vadd.xlane.f32.xlu1 %v1570_v12 }
 0x9c9   :  { %1577 = vadd.xlane.f32.xlu1 %v1576_v31 }
 0x9cf   :  { %1932 = vadd.xlane.f32.xlu2 %v1931_v35 }
 0x9d1   :  { %1929 = vadd.xlane.f32.xlu1 %v1928_v38 }
 0x9d3   :  { %v5886_v0 = vpop.f32.mrf.mxu1 }
 0x9e7   :  { %1828 = vrot.lane.b32.xlu2 %v5563_v48, %s5196_s1 }
 0x9e9   :  { %v1336_v13 = vpop.xlane.xlu1 %1335 }
 0x9ea   :  { %4964 = vrcp.f32 %v1336_v13  ;;  %v1354_v27 = vand.u32 2147483648, %v1336_v13  ;;  %vm1348_vm6 = vweird.f32 %v1336_v13  ;;  %v1352_v63 = vand.u32 2147483647, %v1336_v13 }
 0x9eb   :  { %4966 = vrcp.f32 %v5197_v15 }
 0x9ec   :  { %v1355_v28 = vor.u32 1.1754944e-38, %v1354_v27  ;;  %vm1353_vm8 = vcmp.eq.f32.partialorder %v1352_v63, 8.507059e+37 }
 0x9f0   :  { %v4965_v23 = vpop.eup %4964 }
 0x9f1   :  { %v1339_v30 = vpop.xlane.xlu1 %1338  ;;  %v1344_v20 = vmul.f32 %v4965_v23, %v1336_v13  ;;  %v4967_v50 = vpop.eup %4966  ;;  %vm1349_vm5 = vweird.f32 %v4965_v23 }
 0x9f2   :  { %4968 = vrcp.f32 %v1339_v30  ;;  %v1944_v18 = vmul.f32 32.0, %v4967_v50  ;;  %vm1350_vm7 = vmor %vm1348_vm6, %vm1349_vm5  ;;  %vm1948_vm9 = vweird.f32 %v4967_v50  ;;  %v1369_v59 = vand.u32 2147483648, %v1339_v30 }
 0x9f3   :  { %v1345_v32 = vsub.f32 1.0, %v1344_v20  ;;  %vm1363_vm11 = vweird.f32 %v1339_v30  ;;  %v1367_v39 = vand.u32 2147483647, %v1339_v30  ;;  %v5905_v20 = vpop.f32.mrf.mxu1 }
 0x9f4   :  { %v1945_v48 = vsub.f32 1.0, %v1944_v18  ;;  %v1370_v29 = vor.u32 1.1754944e-38, %v1369_v59 }
 0x9f5   :  { %v1346_v2 = vmul.f32 %v4965_v23, %v1345_v32  ;;  %vm1368_vm13 = vcmp.eq.f32.partialorder %v1367_v39, 8.507059e+37 }
 0x9f6   :  { %v1946_v34 = vmul.f32 %v4967_v50, %v1945_v48 }
 0x9f7   :  { %v1347_v21 = vadd.f32 %v4965_v23, %v1346_v2 }
 0x9f8   :  { %v4969_v16 = vpop.eup %4968  ;;  %v1947_v6 = vadd.f32 %v4967_v50, %v1946_v34 }
 0x9f9   :  { %v5875_v7 = vpop.xlane.xlu2 %1341  ;;  %v1359_v22 = vmul.f32 %v4969_v16, %v1339_v30  ;;  %v1351_v42 = vsel %vm1350_vm7, %v4965_v23, %v1347_v21  ;;  %vm1364_vm10 = vweird.f32 %v4969_v16 }
 0x9fa   :  { %4970 = vrcp.f32 %v5875_v7  ;;  %v1356_v55 = vsel %vm1353_vm8, %v1355_v28, %v1351_v42  ;;  %v5884_v58 = vsel %vm1948_vm9, %v4967_v50, %v1947_v6  ;;  %vm1365_vm12 = vmor %vm1363_vm11, %vm1364_vm10  ;;  %v1384_v30 = vand.u32 2147483648, %v5875_v7 }
 0x9fb   :  { %v1360_v41 = vsub.f32 1.0, %v1359_v22  ;;  %v1357_v61 = vmul.f32 %v5807_v40, %v1356_v55  ;;  %vm1378_vm15 = vweird.f32 %v5875_v7 }
 0x9fc   :  { %v1385_v32 = vor.u32 1.1754944e-38, %v1384_v30 }
 0x9fd   :  { %v1361_v53 = vmul.f32 %v4969_v16, %v1360_v41 }
 0x9ff   :  { %v1362_v57 = vadd.f32 %v4969_v16, %v1361_v53 }
 0xa00   :  { %v5878_v25 = vpop.eup %4970 }
 0xa01   :  { %v1374_v43 = vmul.f32 %v5878_v25, %v5875_v7  ;;  %v4825_v54 = vpop.permute.xlu2 %4824  ;;  %v1366_v11 = vsel %vm1365_vm12, %v4969_v16, %v1362_v57  ;;  %vm1379_vm14 = vweird.f32 %v5878_v25 }
 0xa02   :  { %v4826_v5 = vunpack.i.l.bf16 %v4825_v54  ;;  %v4827_v24 = vunpack.i.h.bf16 %v4825_v54  ;;  %v1371_v40 = vsel %vm1368_vm13, %v1370_v29, %v1366_v11  ;;  %vm1380_vm3 = vmor %vm1378_vm15, %vm1379_vm14 }
 0xa03   :  { %v1375_v56 = vsub.f32 1.0, %v1374_v43  ;;  %v1372_v23 = vmul.f32 %v5811_v47, %v1371_v40 }
 0xa05   :  { %v1376_v14 = vmul.f32 %v5878_v25, %v1375_v56 }
 0xa07   :  { %v1377_v13 = vadd.f32 %v5878_v25, %v1376_v14 }
 0xa09   :  { %v5880_v36 = vpop.xlane.xlu0 %1574  ;;  %v4820_v46 = vpop.permute.xlu1 %4819  ;;  %v1381_v50 = vsel %vm1380_vm3, %v5878_v25, %v1377_v13 }
 0xa0a   :  { %v4821_v33 = vunpack.i.l.bf16 %v4820_v46  ;;  %v4822_v17 = vunpack.i.h.bf16 %v4820_v46  ;;  %v1625_v35 = vpop.permute.xlu2 %1624  ;;  %4972 = vrcp.f32 %v5880_v36  ;;  %v1605_v11 = vand.u32 2147483648, %v5880_v36 }
 0xa0b   :  { %vm1599_vm11 = vweird.f32 %v5880_v36  ;;  %v1603_v29 = vand.u32 2147483647, %v5880_v36 }
 0xa0c   :  { %1419 = vmatpush.msrb.mxu0 %v4821_v33 }
 0xa0d   :  { %vm1604_vm13 = vcmp.eq.f32.partialorder %v1603_v29, 8.507059e+37 }
 0xa0e   :  { %1420 = vmatpush.msrb.mxu0 %v4822_v17 }
 0xa10   :  { %1421 = vmatpush.msrb.mxu0 %v1389_v19 }
 0xa11   :  { %v1927_v12 = vpop.xlane.xlu0 %1926  ;;  %4582 = vmatmul.msk.f32.vlgmr.msrb.gmra.mxu0 %vm342_vm4, %v1357_v61 }
 0xa12   :  { %v1950_v51 = vmul.f32 %v5884_v58, %v1927_v12  ;;  %1655 = vmatpush.msra.mxu0 %v4826_v5 }
 0xa14   :  { %v5893_v31 = vsub.f32 %v5833_v9, %v1950_v51  ;;  %1656 = vmatpush.msra.mxu0 %v4827_v24  ;;  %v1382_v9 = vand.u32 2147483647, %v5875_v7 }
 0xa16   :  { %v1962_v38 = vmul.f32 %v5893_v31, %v5893_v31  ;;  %1657 = vmatpush.msra.mxu0 %v1625_v35  ;;  %vm1383_vm5 = vcmp.eq.f32.partialorder %v1382_v9, 8.507059e+37 }
 0xa17   :  { %v1386_v16 = vsel %vm1383_vm5, %v1385_v32, %v1381_v50 }
 0xa18   :  { %v1968_v15 = vsel %vm240_vm1, %v1962_v38, 0.0  ;;  %1896 = vmatpush.msrb.mxu0 %v5761_v4  ;;  %v1387_v18 = vmul.f32 %v5815_v8, %v1386_v16  ;;  %v4973_v8 = vpop.eup %4972 }
 0xa19   :  { %1969 = vadd.xlane.f32.xlu1 %v1968_v15  ;;  %4583 = vmatmul.msk.f32.gmra.mxu0 %vm342_vm4, %v1372_v23  ;;  %v1595_v41 = vmul.f32 %v4973_v8, %v5880_v36  ;;  %vm1600_vm9 = vweird.f32 %v4973_v8  ;;  %v1606_v15 = vor.u32 1.1754944e-38, %v1605_v11 }
 0xa1a   :  { %vm1601_vm12 = vmor %vm1599_vm11, %vm1600_vm9 }
 0xa1b   :  { %v1596_v63 = vsub.f32 1.0, %v1595_v41 }
 0xa1d   :  { %v1597_v54 = vmul.f32 %v4973_v8, %v1596_v63 }
 0xa1f   :  { %v1598_v5 = vadd.f32 %v4973_v8, %v1597_v54 }
 0xa21   :  { %4584 = vmatmul.msk.f32.gmra.mxu0 %vm342_vm4, %v1387_v18  ;;  %v1602_v38 = vsel %vm1601_vm12, %v4973_v8, %v1598_v5 }
 0xa22   :  { %v5911_v47 = vpop.f32.mrf.mxu1  ;;  %v1607_v23 = vsel %vm1604_vm13, %v1606_v15, %v1602_v38 }
 0xa23   :  { %v1608_v50 = vmul.f32 %v5825_v45, %v1607_v23 }
 0xa2a   :  { %v1747_v7 = vpop.f32.mrf.mxu1 }
 0xa2b   :  { %v5914_v4 = vadd.f32 %v1747_v7, %v5427_v37 }
 0xa2d   :  { %v1756_v19 = vsel %vm342_vm4, %v5914_v4, -inf }
 0xa2e   :  { %1757 = vmax.xlane.f32.xlu0 %v1756_v19 }
 0xa32   :  { %v1750_v2 = vpop.f32.mrf.mxu1 }
 0xa33   :  { %v5920_v22 = vadd.f32 %v1750_v2, %v5427_v37 }
 0xa34   :  { %v1572_v48 = vpop.xlane.xlu1 %1571 }
 0xa35   :  { %4974 = vrcp.f32 %v1572_v48  ;;  %v1759_v21 = vsel %vm342_vm4, %v5920_v22, -inf  ;;  %v1590_v28 = vand.u32 2147483648, %v1572_v48  ;;  %v1588_v6 = vand.u32 2147483647, %v1572_v48 }
 0xa36   :  { %1760 = vmax.xlane.f32.xlu0 %v1759_v21  ;;  %vm1584_vm7 = vweird.f32 %v1572_v48 }
 0xa37   :  { %v1591_v56 = vor.u32 1.1754944e-38, %v1590_v28  ;;  %vm1589_vm10 = vcmp.eq.f32.partialorder %v1588_v6, 8.507059e+37 }
 0xa3a   :  { %v1753_v25 = vpop.f32.mrf.mxu1 }
 0xa3b   :  { %v4975_v27 = vpop.eup %4974  ;;  %v5926_v34 = vadd.f32 %v1753_v25, %v5427_v37 }
 0xa3c   :  { %v1580_v42 = vmul.f32 %v4975_v27, %v1572_v48  ;;  %v1578_v43 = vpop.xlane.xlu1 %1577  ;;  %vm1585_vm6 = vweird.f32 %v4975_v27 }
 0xa3d   :  { %4976 = vrcp.f32 %v1578_v43  ;;  %v1762_v46 = vsel %vm342_vm4, %v5926_v34, -inf  ;;  %vm1586_vm8 = vmor %vm1584_vm7, %vm1585_vm6  ;;  %v1620_v9 = vand.u32 2147483648, %v1578_v43  ;;  %vm1614_vm15 = vweird.f32 %v1578_v43 }
 0xa3e   :  { %v1581_v53 = vsub.f32 1.0, %v1580_v42  ;;  %1763 = vmax.xlane.f32.xlu0 %v1762_v46  ;;  %v1618_v32 = vand.u32 2147483647, %v1578_v43 }
 0xa40   :  { %v1582_v33 = vmul.f32 %v4975_v27, %v1581_v53  ;;  %vm1619_vm5 = vcmp.eq.f32.partialorder %v1618_v32, 8.507059e+37 }
 0xa42   :  { %v1583_v17 = vadd.f32 %v4975_v27, %v1582_v33  ;;  %v1933_v61 = vpop.xlane.xlu2 %1932 }
 0xa43   :  { %v4977_v55 = vpop.eup %4976  ;;  %v1952_v40 = vmul.f32 %v5884_v58, %v1933_v61 }
 0xa44   :  { %v1587_v57 = vsel %vm1586_vm8, %v4975_v27, %v1583_v17  ;;  %v1610_v59 = vmul.f32 %v4977_v55, %v1578_v43  ;;  %v1930_v39 = vpop.xlane.xlu1 %1929  ;;  %vm1615_vm14 = vweird.f32 %v4977_v55  ;;  %v224_v17 = vld [vmem:[%s5252_s14 + $0x18] sm:$0xff] }
 0xa45   :  { %v1951_v12 = vmul.f32 %v5884_v58, %v1930_v39  ;;  %v1592_v51 = vsel %vm1589_vm10, %v1591_v56, %v1587_v57  ;;  %vm1616_vm3 = vmor %vm1614_vm15, %vm1615_vm14  ;;  %v223_v56 = vld [vmem:[%s5252_s14 + $0x10] sm:$0xff]  ;;  %v222_v57 = vld [vmem:[%s5252_s14 + $0x8] sm:$0xff] }
 0xa46   :  { %v1611_v14 = vsub.f32 1.0, %v1610_v59  ;;  %v1593_v24 = vmul.f32 %v5846_v60, %v1592_v51  ;;  %v5944_v60 = vsub.f32 %v5864_v10, %v1952_v40  ;;  %v1621_v10 = vor.u32 1.1754944e-38, %v1620_v9  ;;  %v221_v39 = vld [vmem:[%s5252_s14] sm:$0xff]  ;;  %s6982_s14 = sld [smem:[#allocation9_spill]] }
 0xa47   :  { %v5937_v35 = vsub.f32 %v5867_v26, %v1951_v12 }
 0xa48   :  { %4597 = vmatmul.msk.f32.vlgmr.msra.gmra.mxu0 %vm342_vm4, %v1593_v24  ;;  %v1612_v13 = vmul.f32 %v4977_v55, %v1611_v14  ;;  %v1964_v16 = vmul.f32 %v5944_v60, %v5944_v60 }
 0xa49   :  { %v1963_v30 = vmul.f32 %v5937_v35, %v5937_v35 }
 0xa4a   :  { %v1613_v26 = vadd.f32 %v4977_v55, %v1612_v13  ;;  %v1974_v7 = vsel %vm240_vm1, %v1964_v16, 0.0 }
 0xa4b   :  { %v1971_v36 = vsel %vm240_vm1, %v1963_v30, 0.0 }
 0xa4c   :  { %1972 = vadd.xlane.f32.xlu1 %v1971_v36  ;;  %v1617_v18 = vsel %vm1616_vm3, %v4977_v55, %v1613_v26 }
 0xa4d   :  { %v1622_v19 = vsel %vm1619_vm5, %v1621_v10, %v1617_v18  ;;  %v5984_v18 = vld [vmem:[%s5242_s3] ss:$0 sm:$0xff]  ;;  %s6980_s3 = sld [smem:[#allocation7_spill]] }
 0xa4e   :  { %v1623_v2 = vmul.f32 %v5857_v49, %v1622_v19 }
 0xa50   :  { %4598 = vmatmul.msk.f32.gmra.mxu0 %vm342_vm4, %v1608_v50 }
 0xa54   :  { %1975 = vadd.xlane.f32.xlu1 %v1974_v7 }
 0xa58   :  { %4599 = vmatmul.msk.f32.gmra.mxu0 %vm342_vm4, %v1623_v2 }
 0xa8c   :  { %v1970_v27 = vpop.xlane.xlu1 %1969 }
 0xa8d   :  { %v1986_v43 = vmul.f32 %v1970_v27, %v5884_v58 }
 0xa8e   :  { %v1423_v45 = vpop.f32.mrf.mxu0 }
 0xa8f   :  { %4585 = vmatmul.msk.f32.vlgmr.msra.gmra.mxu3 %vm303_vm2, %v1423_v45 }
 0xa90   :  { %2115 = vmatpush.msra.mxu3 %v224_v17 }
 0xa92   :  { %2116 = vmatpush.msra.mxu3 %v223_v56 }
 0xa94   :  { %2117 = vmatpush.msra.mxu3 %v222_v57 }
 0xa96   :  { %v1426_v48 = vpop.f32.mrf.mxu0  ;;  %2118 = vmatpush.msra.mxu3 %v221_v39 }
 0xa97   :  { %4586 = vmatmul.msk.f32.gmra.mxu3 %vm303_vm2, %v1426_v48 }
 0xa9e   :  { %v1429_v8 = vpop.f32.mrf.mxu0 }
 0xa9f   :  { %4587 = vmatmul.msk.f32.gmra.mxu3 %vm303_vm2, %v1429_v8  ;;  %v5990_v8 = vld [vmem:[%s5247_s8] ss:$0 sm:$0xff]  ;;  %s6981_s8 = sld [smem:[#allocation8_spill]] }
 0xaa1   :  { %v1758_v21 = vpop.xlane.xlu0 %1757 }
 0xaa2   :  { %v1765_v41 = vsub.f32 %v5914_v4, %v1758_v21  ;;  %v1992_v4 = vadd.f32 1e-05, %v1986_v43 }
 0xaa4   :  { %v1768_v25 = vmul.f32 1.442695, %v1765_v41  ;;  %vm2004_vm7 = vweird.f32 %v1992_v4 }
 0xaa6   :  { %4978 = vpow2.f32 %v1768_v25 }
 0xaa9   :  { %v1761_v63 = vpop.xlane.xlu0 %1760 }
 0xaaa   :  { %v1766_v49 = vsub.f32 %v5920_v22, %v1761_v63 }
 0xaac   :  { %v5959_v42 = vpop.eup %4978  ;;  %v1770_v46 = vmul.f32 1.442695, %v1766_v49 }
 0xaad   :  { %v1774_v53 = vsel %vm342_vm4, %v5959_v42, 0.0 }
 0xaae   :  { %1775 = vadd.xlane.f32.xlu0 %v1774_v53  ;;  %4980 = vpow2.f32 %v1770_v46 }
 0xaaf   :  { %4982 = vrsqrt.f32 %v1992_v4 }
 0xab1   :  { %v1764_v28 = vpop.xlane.xlu0 %1763 }
 0xab2   :  { %v1767_v33 = vsub.f32 %v5926_v34, %v1764_v28 }
 0xab4   :  { %v5965_v22 = vpop.eup %4980  ;;  %v1772_v6 = vmul.f32 1.442695, %v1767_v33 }
 0xab5   :  { %v1777_v54 = vsel %vm342_vm4, %v5965_v22, 0.0  ;;  %v4983_v55 = vpop.eup %4982 }
 0xab6   :  { %4984 = vpow2.f32 %v1772_v6  ;;  %1778 = vadd.xlane.f32.xlu1 %v1777_v54  ;;  %v1999_v61 = vmul.f32 %v4983_v55, %v1992_v4  ;;  %vm2005_vm6 = vweird.f32 %v4983_v55 }
 0xab7   :  { %vm2006_vm8 = vmor %vm2004_vm7, %vm2005_vm6 }
 0xab8   :  { %v2000_v51 = vmul.f32 %v4983_v55, %v1999_v61 }
 0xaba   :  { %v2001_v14 = vmul.f32 0.5, %v2000_v51 }
 0xabc   :  { %v5972_v59 = vpop.eup %4984  ;;  %v2002_v38 = vsub.f32 1.5, %v2001_v14 }
 0xabd   :  { %v1780_v34 = vsel %vm342_vm4, %v5972_v59, 0.0 }
 0xabe   :  { %1781 = vadd.xlane.f32.xlu1 %v1780_v34  ;;  %v2003_v36 = vmul.f32 %v4983_v55, %v2002_v38 }
 0xabf   :  { %v1973_v5 = vpop.xlane.xlu1 %1972 }
 0xac0   :  { %v1987_v12 = vmul.f32 %v1973_v5, %v5884_v58  ;;  %v2007_v9 = vsel %vm2006_vm8, %v4983_v55, %v2003_v36  ;;  %v233_v5 = vld [vmem:[%s5262_s24 + $0x38] sm:$0xff] }
 0xac1   :  { %v2058_v10 = vmul.f32 %v2007_v9, %v5893_v31  ;;  %2173 = vmatpush.msrb.mxu1 %v233_v5 }
 0xac2   :  { %v1993_v11 = vadd.f32 1e-05, %v1987_v12  ;;  %4829 = vrot.lane.b32.xlu0 %v5719_v3, %s5196_s1 }
 0xac3   :  { %v2067_v48 = vmul.f32 %v5984_v18, %v2058_v10 }
 0xac4   :  { %4986 = vrsqrt.f32 %v1993_v11  ;;  %vm2014_vm10 = vweird.f32 %v1993_v11 }
 0xac5   :  { %v1659_v24 = vpop.f32.mrf.mxu0  ;;  %v5993_v25 = vadd.f32 %v5990_v8, %v2067_v48 }
 0xac6   :  { %4600 = vmatmul.msk.f32.vlgmr.msrb.gmra.mxu3 %vm303_vm2, %v1659_v24 }
 0xac7   :  { %v1976_v29 = vpop.xlane.xlu1 %1975 }
 0xac8   :  { %v1988_v40 = vmul.f32 %v1976_v29, %v5884_v58 }
 0xaca   :  { %v4987_v13 = vpop.eup %4986  ;;  %v1994_v30 = vadd.f32 1e-05, %v1988_v40 }
 0xacb   :  { %v2009_v15 = vmul.f32 %v4987_v13, %v1993_v11  ;;  %vm2015_vm9 = vweird.f32 %v4987_v13 }
 0xacc   :  { %4988 = vrsqrt.f32 %v1994_v30  ;;  %vm2016_vm11 = vmor %vm2014_vm10, %vm2015_vm9  ;;  %vm2024_vm13 = vweird.f32 %v1994_v30 }
 0xacd   :  { %v2010_v23 = vmul.f32 %v4987_v13, %v2009_v15  ;;  %v1662_v26 = vpop.f32.mrf.mxu0 }
 0xace   :  { %4601 = vmatmul.msk.f32.gmra.mxu3 %vm303_vm2, %v1662_v26 }
 0xacf   :  { %v2011_v3 = vmul.f32 0.5, %v2010_v23  ;;  %v1829_v23 = vpop.permute.xlu2 %1828 }
 0xad1   :  { %v2012_v50 = vsub.f32 1.5, %v2011_v3 }
 0xad2   :  { %v4989_v32 = vpop.eup %4988 }
 0xad3   :  { %v2019_v16 = vmul.f32 %v4989_v32, %v1994_v30  ;;  %v2013_v7 = vmul.f32 %v4987_v13, %v2012_v50  ;;  %vm2025_vm12 = vweird.f32 %v4989_v32  ;;  %v232_v50 = vld [vmem:[%s5262_s24 + $0x30] sm:$0xff] }
 0xad4   :  { %vm2026_vm14 = vmor %vm2024_vm13, %vm2025_vm12  ;;  %2174 = vmatpush.msrb.mxu1 %v232_v50 }
 0xad5   :  { %v2020_v19 = vmul.f32 %v4989_v32, %v2019_v16  ;;  %v1665_v2 = vpop.f32.mrf.mxu0  ;;  %v2017_v41 = vsel %vm2016_vm11, %v4987_v13, %v2013_v7  ;;  %v230_v7 = vld [vmem:[%s5262_s24 + $0x20] sm:$0xff] }
 0xad6   :  { %4602 = vmatmul.msk.f32.gmra.mxu3 %vm303_vm2, %v1665_v2  ;;  %v2059_v31 = vmul.f32 %v2017_v41, %v5937_v35 }
 0xad7   :  { %v2021_v45 = vmul.f32 0.5, %v2020_v19 }
 0xad8   :  { %v2068_v63 = vmul.f32 %v5984_v18, %v2059_v31 }
 0xad9   :  { %v2022_v21 = vsub.f32 1.5, %v2021_v45  ;;  %v229_v45 = vld [vmem:[%s5262_s24 + $0x18] sm:$0xff] }
 0xada   :  { %v6001_v46 = vadd.f32 %v5990_v8, %v2068_v63  ;;  %v228_v63 = vld [vmem:[%s5262_s24 + $0x10] sm:$0xff] }
 0xadb   :  { %v2023_v27 = vmul.f32 %v4989_v32, %v2022_v21 }
 0xadd   :  { %v2027_v49 = vsel %vm2026_vm14, %v4989_v32, %v2023_v27  ;;  %v231_v32 = vld [vmem:[%s5262_s24 + $0x28] sm:$0xff] }
 0xade   :  { %4615 = vmatmul.msk.f32.vlgmr.msra.gmra.mxu3 %vm240_vm1, %v5993_v25  ;;  %v2060_v43 = vmul.f32 %v2027_v49, %v5944_v60  ;;  %2175 = vmatpush.msrb.mxu1 %v231_v32 }
 0xae0   :  { %v2069_v35 = vmul.f32 %v5984_v18, %v2060_v43  ;;  %2176 = vmatpush.msrb.mxu1 %v230_v7  ;;  %v227_v43 = vld [vmem:[%s5262_s24 + $0x8] sm:$0xff] }
 0xae2   :  { %v6007_v53 = vadd.f32 %v5990_v8, %v2069_v35  ;;  %2177 = vmatpush.msrb.mxu1 %v229_v45  ;;  %v226_v35 = vld [vmem:[%s5262_s24] sm:$0xff]  ;;  %s6984_s24 = sld [smem:[#allocation10_spill]] }
 0xae4   :  { %2178 = vmatpush.msrb.mxu1 %v228_v63 }
 0xae6   :  { %4616 = vmatmul.msk.f32.gmra.mxu3 %vm240_vm1, %v6001_v46  ;;  %2179 = vmatpush.msrb.mxu1 %v227_v43 }
 0xae8   :  { %2180 = vmatpush.msrb.mxu1 %v226_v35 }
 0xaee   :  { %4617 = vmatmul.msk.f32.gmra.mxu3 %vm240_vm1, %v6007_v53 }
 0xb12   :  { %v6011_v54 = vpop.f32.mrf.mxu3 }
 0xb1a   :  { %v6014_v40 = vpop.f32.mrf.mxu3 }
 0xb21   :  { %v1776_v4 = vpop.xlane.xlu0 %1775 }
 0xb22   :  { %4990 = vrcp.f32 %v1776_v4  ;;  %v1794_v57 = vand.u32 2147483648, %v1776_v4  ;;  %vm1788_vm3 = vweird.f32 %v1776_v4  ;;  %v1792_v61 = vand.u32 2147483647, %v1776_v4  ;;  %v6022_v21 = vpop.f32.mrf.mxu3 }
 0xb24   :  { %v1795_v14 = vor.u32 1.1754944e-38, %v1794_v57  ;;  %vm1793_vm6 = vcmp.eq.f32.partialorder %v1792_v61, 8.507059e+37 }
 0xb28   :  { %v4991_v28 = vpop.eup %4990 }
 0xb29   :  { %v1784_v33 = vmul.f32 %v4991_v28, %v1776_v4  ;;  %v1779_v60 = vpop.xlane.xlu1 %1778  ;;  %vm1789_vm15 = vweird.f32 %v4991_v28 }
 0xb2a   :  { %4992 = vrcp.f32 %v1779_v60  ;;  %vm1790_vm5 = vmor %vm1788_vm3, %vm1789_vm15  ;;  %v1809_v36 = vand.u32 2147483648, %v1779_v60  ;;  %vm1803_vm8 = vweird.f32 %v1779_v60  ;;  %v1807_v9 = vand.u32 2147483647, %v1779_v60 }
 0xb2b   :  { %v1785_v6 = vsub.f32 1.0, %v1784_v33 }
 0xb2c   :  { %v1810_v19 = vor.u32 1.1754944e-38, %v1809_v36  ;;  %vm1808_vm10 = vcmp.eq.f32.partialorder %v1807_v9, 8.507059e+37 }
 0xb2d   :  { %v1786_v17 = vmul.f32 %v4991_v28, %v1785_v6 }
 0xb2f   :  { %v1787_v55 = vadd.f32 %v4991_v28, %v1786_v17  ;;  %v6032_v17 = vld [vmem:[%s5257_s19] ss:$0 sm:$0xff]  ;;  %s6983_s19 = sld [smem:[#allocation12_spill]] }
 0xb30   :  { %v4993_v56 = vpop.eup %4992 }
 0xb31   :  { %v1799_v34 = vmul.f32 %v4993_v56, %v1779_v60  ;;  %v1782_v39 = vpop.xlane.xlu1 %1781  ;;  %v1791_v12 = vsel %vm1790_vm5, %v4991_v28, %v1787_v55  ;;  %vm1804_vm7 = vweird.f32 %v4993_v56 }
 0xb32   :  { %4994 = vrcp.f32 %v1782_v39  ;;  %v1796_v38 = vsel %vm1793_vm6, %v1795_v14, %v1791_v12  ;;  %vm1805_vm9 = vmor %vm1803_vm8, %vm1804_vm7  ;;  %v1824_v41 = vand.u32 2147483648, %v1782_v39  ;;  %vm1818_vm12 = vweird.f32 %v1782_v39 }
 0xb33   :  { %v1800_v51 = vsub.f32 1.0, %v1799_v34  ;;  %v1797_v3 = vmul.f32 %v5959_v42, %v1796_v38  ;;  %v1822_v27 = vand.u32 2147483647, %v1782_v39 }
 0xb34   :  { %v4830_v11 = vpop.permute.xlu0 %4829  ;;  %v1825_v4 = vor.u32 1.1754944e-38, %v1824_v41 }
 0xb35   :  { %v4831_v24 = vunpack.i.l.bf16 %v4830_v11  ;;  %v1801_v29 = vmul.f32 %v4993_v56, %v1800_v51  ;;  %v4832_v13 = vunpack.i.h.bf16 %v4830_v11  ;;  %vm1823_vm14 = vcmp.eq.f32.partialorder %v1822_v27, 8.507059e+37 }
 0xb37   :  { %1859 = vmatpush.msra.mxu2 %v4831_v24  ;;  %v1802_v30 = vadd.f32 %v4993_v56, %v1801_v29  ;;  %v6044_v24 = vld [vmem:[%s5267_s30] ss:$0 sm:$0xff]  ;;  %s6985_s30 = sld [smem:[#allocation11_spill]] }
 0xb38   :  { %v4995_v15 = vpop.eup %4994 }
 0xb39   :  { %1860 = vmatpush.msra.mxu2 %v4832_v13  ;;  %v1814_v26 = vmul.f32 %v4995_v15, %v1782_v39  ;;  %v1806_v10 = vsel %vm1805_vm9, %v4993_v56, %v1802_v30  ;;  %vm1819_vm11 = vweird.f32 %v4995_v15 }
 0xb3a   :  { %v1811_v48 = vsel %vm1808_vm10, %v1810_v19, %v1806_v10  ;;  %vm1820_vm13 = vmor %vm1818_vm12, %vm1819_vm11 }
 0xb3b   :  { %1861 = vmatpush.msra.mxu2 %v1829_v23  ;;  %v1815_v16 = vsub.f32 1.0, %v1814_v26  ;;  %v1812_v31 = vmul.f32 %v5965_v22, %v1811_v48 }
 0xb3c   :  { %4609 = vmatmul.msk.f32.vlgmr.msra.gmra.mxu2 %vm342_vm4, %v1797_v3 }
 0xb3d   :  { %v1816_v2 = vmul.f32 %v4995_v15, %v1815_v16 }
 0xb3f   :  { %v1817_v42 = vadd.f32 %v4995_v15, %v1816_v2 }
 0xb41   :  { %v1821_v49 = vsel %vm1820_vm13, %v4995_v15, %v1817_v42 }
 0xb42   :  { %v1826_v28 = vsel %vm1823_vm14, %v1825_v4, %v1821_v49 }
 0xb43   :  { %v1827_v60 = vmul.f32 %v5972_v59, %v1826_v28 }
 0xb44   :  { %4610 = vmatmul.msk.f32.gmra.mxu2 %vm342_vm4, %v1812_v31 }
 0xb49   :  { %v1694_v33 = vpop.f32.mrf.mxu3 }
 0xb4c   :  { %4611 = vmatmul.msk.f32.gmra.mxu2 %vm342_vm4, %v1827_v60 }
 0xb51   :  { %v1697_v22 = vpop.f32.mrf.mxu3 }
 0xb59   :  { %v1700_v6 = vpop.f32.mrf.mxu3 }
 0xb61   :  { %v2120_v55 = vpop.f32.mrf.mxu3 }
 0xb62   :  { %v2121_v56 = vadd.f32 %v6032_v17, %v2120_v55 }
 0xb64   :  { %v2138_v57 = vmax.f32 %v2121_v56, 0.0 }
 0xb66   :  { %4621 = vmatmul.msk.f32.vlgmr.msrb.gmra.mxu1 %vm151_vm0, %v2138_v57 }
 0xb69   :  { %v2123_v61 = vpop.f32.mrf.mxu3 }
 0xb6a   :  { %v2124_v34 = vadd.f32 %v6032_v17, %v2123_v61 }
 0xb6c   :  { %v2139_v39 = vmax.f32 %v2124_v34, 0.0 }
 0xb6e   :  { %4622 = vmatmul.msk.f32.gmra.mxu1 %vm151_vm0, %v2139_v39 }
 0xb71   :  { %v2126_v59 = vpop.f32.mrf.mxu3 }
 0xb72   :  { %v2127_v5 = vadd.f32 %v6032_v17, %v2126_v59 }
 0xb74   :  { %v2140_v12 = vmax.f32 %v2127_v5, 0.0 }
 0xb76   :  { %4623 = vmatmul.msk.f32.gmra.mxu1 %vm151_vm0, %v2140_v12 }
 0xbbf   :  { %v1863_v51 = vpop.f32.mrf.mxu2 }
 0xbc0   :  { %4612 = vmatmul.msk.f32.vlgmr.msrb.gmra.mxu0 %vm303_vm2, %v1863_v51 }
 0xbc7   :  { %v1866_v11 = vpop.f32.mrf.mxu2 }
 0xbc8   :  { %4613 = vmatmul.msk.f32.gmra.mxu0 %vm303_vm2, %v1866_v11 }
 0xbcf   :  { %v1869_v14 = vpop.f32.mrf.mxu2 }
 0xbd0   :  { %4614 = vmatmul.msk.f32.gmra.mxu0 %vm303_vm2, %v1869_v14 }
 0xbe3   :  { %v2182_v29 = vpop.f32.mrf.mxu1 }
 0xbe4   :  { %v2183_v38 = vadd.f32 %v6044_v24, %v2182_v29 }
 0xbe6   :  { %v2200_v13 = vadd.f32 %v2183_v38, %v5993_v25  ;;  %v1494_v25 = vadd.f32 %v5886_v0, %v6011_v54  ;;  %v1500_v0 = vadd.f32 %v5911_v47, %v6022_v21 }
 0xbe8   :  { %v2206_v30 = vsel %vm240_vm1, %v2200_v13, 0.0  ;;  %v1703_v16 = vadd.f32 %v1694_v33, %v1494_v25  ;;  %v1705_v31 = vadd.f32 %v1700_v6, %v1500_v0 }
 0xbe9   :  { %2207 = vadd.xlane.f32.xlu1 %v2206_v30 }
 0xbeb   :  { %v2185_v15 = vpop.f32.mrf.mxu1 }
 0xbec   :  { %v2186_v36 = vadd.f32 %v6044_v24, %v2185_v15  ;;  %v2359_v15 = vld [vmem:[%s5282_s20 + $0x18] sm:$0xff] }
 0xbed   :  { %2417 = vmatpush.msrb.mxu2 %v2359_v15 }
 0xbee   :  { %v2201_v23 = vadd.f32 %v2186_v36, %v6001_v46  ;;  %v1497_v46 = vadd.f32 %v5905_v20, %v6014_v40 }
 0xbf0   :  { %v2209_v26 = vsel %vm240_vm1, %v2201_v23, 0.0  ;;  %v1704_v45 = vadd.f32 %v1697_v22, %v1497_v46 }
 0xbf1   :  { %2210 = vadd.xlane.f32.xlu1 %v2209_v26  ;;  %v2357_v26 = vld [vmem:[%s5282_s20 + $0x8] sm:$0xff] }
 0xbf3   :  { %v2188_v3 = vpop.f32.mrf.mxu1 }
 0xbf4   :  { %v2189_v9 = vadd.f32 %v6044_v24, %v2188_v3  ;;  %v2356_v3 = vld [vmem:[%s5282_s20] sm:$0xff] }
 0xbf6   :  { %v2202_v50 = vadd.f32 %v2189_v9, %v6007_v53 }
 0xbf8   :  { %v2212_v32 = vsel %vm240_vm1, %v2202_v50, 0.0 }
 0xbf9   :  { %2213 = vadd.xlane.f32.xlu0 %v2212_v32 }
 0xc3d   :  { %v1898_v10 = vpop.f32.mrf.mxu0 }
 0xc3e   :  { %v1907_v7 = vadd.f32 %v1898_v10, %v1703_v16 }
 0xc40   :  { %v1916_v19 = vadd.f32 %v5823_v44, %v1907_v7 }
 0xc42   :  { %v1922_v2 = vadd.f32 %v1916_v19, %v5477_v52 }
 0xc44   :  { %v1934_v48 = vsel %vm240_vm1, %v1922_v2, 0.0 }
 0xc45   :  { %1935 = vadd.xlane.f32.xlu1 %v1934_v48  ;;  %v1901_v53 = vpop.f32.mrf.mxu0 }
 0xc46   :  { %v1908_v42 = vadd.f32 %v1901_v53, %v1704_v45 }
 0xc48   :  { %v1917_v41 = vadd.f32 %v5823_v44, %v1908_v42 }
 0xc4a   :  { %v1923_v54 = vadd.f32 %v1917_v41, %v5487_v62 }
 0xc4c   :  { %v1937_v27 = vsel %vm240_vm1, %v1923_v54, 0.0 }
 0xc4d   :  { %1938 = vadd.xlane.f32.xlu2 %v1937_v27  ;;  %v1904_v20 = vpop.f32.mrf.mxu0 }
 0xc4e   :  { %v1909_v40 = vadd.f32 %v1904_v20, %v1705_v31  ;;  %v6114_v31 = vld [vmem:[%s6978_s25] ss:$0 sm:$0xff] }
 0xc50   :  { %v1918_v52 = vadd.f32 %v5823_v44, %v1909_v40 }
 0xc52   :  { %v1924_v63 = vadd.f32 %v1918_v52, %v5492_v1  ;;  %v6118_v52 = vld [vmem:[%s6979_s29] ss:$0 sm:$0xff] }
 0xc54   :  { %v1940_v49 = vsel %vm240_vm1, %v1924_v63, 0.0 }
 0xc55   :  { %1941 = vadd.xlane.f32.xlu1 %v1940_v49 }
 0xc5c   :  { %v2208_v43 = vpop.xlane.xlu1 %2207 }
 0xc5d   :  { %v2224_v35 = vmul.f32 %v2208_v43, %v5884_v58 }
 0xc5f   :  { %v6071_v4 = vsub.f32 %v2200_v13, %v2224_v35 }
 0xc61   :  { %v2236_v62 = vmul.f32 %v6071_v4, %v6071_v4 }
 0xc63   :  { %v2242_v47 = vsel %vm240_vm1, %v2236_v62, 0.0 }
 0xc64   :  { %v2211_v21 = vpop.xlane.xlu1 %2210  ;;  %2243 = vadd.xlane.f32.xlu1 %v2242_v47 }
 0xc65   :  { %v2225_v28 = vmul.f32 %v2211_v21, %v5884_v58 }
 0xc67   :  { %v6077_v44 = vsub.f32 %v2201_v23, %v2225_v28  ;;  %v2358_v23 = vld [vmem:[%s5282_s20 + $0x10] sm:$0xff]  ;;  %s6986_s20 = sld [smem:[#allocation14_spill]] }
 0xc68   :  { %2418 = vmatpush.msrb.mxu2 %v2358_v23 }
 0xc69   :  { %v2237_v1 = vmul.f32 %v6077_v44, %v6077_v44 }
 0xc6a   :  { %2419 = vmatpush.msrb.mxu2 %v2357_v26 }
 0xc6b   :  { %v2245_v33 = vsel %vm240_vm1, %v2237_v1, 0.0 }
 0xc6c   :  { %v2214_v60 = vpop.xlane.xlu0 %2213  ;;  %2246 = vadd.xlane.f32.xlu1 %v2245_v33  ;;  %2420 = vmatpush.msrb.mxu2 %v2356_v3 }
 0xc6d   :  { %v2226_v22 = vmul.f32 %v2214_v60, %v5884_v58 }
 0xc6f   :  { %v6083_v6 = vsub.f32 %v2202_v50, %v2226_v22 }
 0xc71   :  { %v2238_v55 = vmul.f32 %v6083_v6, %v6083_v6 }
 0xc73   :  { %v2248_v56 = vsel %vm240_vm1, %v2238_v55, 0.0 }
 0xc74   :  { %2249 = vadd.xlane.f32.xlu1 %v2248_v56 }
 0xcb8   :  { %v1936_v57 = vpop.xlane.xlu1 %1935 }
 0xcb9   :  { %v1953_v61 = vmul.f32 %v5884_v58, %v1936_v57 }
 0xcbb   :  { %v6089_v34 = vsub.f32 %v1922_v2, %v1953_v61 }
 0xcbd   :  { %v1965_v39 = vmul.f32 %v6089_v34, %v6089_v34 }
 0xcbf   :  { %v1977_v59 = vsel %vm240_vm1, %v1965_v39, 0.0 }
 0xcc0   :  { %1978 = vadd.xlane.f32.xlu0 %v1977_v59  ;;  %v1939_v5 = vpop.xlane.xlu2 %1938 }
 0xcc1   :  { %v1954_v12 = vmul.f32 %v5884_v58, %v1939_v5 }
 0xcc3   :  { %v6095_v51 = vsub.f32 %v1923_v54, %v1954_v12 }
 0xcc5   :  { %v1966_v11 = vmul.f32 %v6095_v51, %v6095_v51 }
 0xcc7   :  { %v1980_v14 = vsel %vm240_vm1, %v1966_v11, 0.0 }
 0xcc8   :  { %1981 = vadd.xlane.f32.xlu1 %v1980_v14  ;;  %v1942_v29 = vpop.xlane.xlu1 %1941 }
 0xcc9   :  { %v1955_v38 = vmul.f32 %v5884_v58, %v1942_v29 }
 0xccb   :  { %v6101_v13 = vsub.f32 %v1924_v63, %v1955_v38 }
 0xccd   :  { %v1967_v30 = vmul.f32 %v6101_v13, %v6101_v13 }
 0xccf   :  { %v1983_v36 = vsel %vm240_vm1, %v1967_v30, 0.0 }
 0xcd0   :  { %1984 = vadd.xlane.f32.xlu2 %v1983_v36 }
 0xcd7   :  { %v2244_v9 = vpop.xlane.xlu1 %2243 }
 0xcd8   :  { %v2260_v50 = vmul.f32 %v2244_v9, %v5884_v58 }
 0xcda   :  { %v2266_v32 = vadd.f32 1e-05, %v2260_v50 }
 0xcdc   :  { %4996 = vrsqrt.f32 %v2266_v32  ;;  %vm2278_vm3 = vweird.f32 %v2266_v32 }
 0xcdf   :  { %v2247_v25 = vpop.xlane.xlu1 %2246 }
 0xce0   :  { %v2261_v16 = vmul.f32 %v2247_v25, %v5884_v58 }
 0xce2   :  { %v4997_v10 = vpop.eup %4996  ;;  %v2267_v7 = vadd.f32 1e-05, %v2261_v16 }
 0xce3   :  { %v2273_v19 = vmul.f32 %v4997_v10, %v2266_v32  ;;  %vm2279_vm15 = vweird.f32 %v4997_v10 }
 0xce4   :  { %4998 = vrsqrt.f32 %v2267_v7  ;;  %vm2280_vm5 = vmor %vm2278_vm3, %vm2279_vm15  ;;  %vm2288_vm7 = vweird.f32 %v2267_v7 }
 0xce5   :  { %v2274_v46 = vmul.f32 %v4997_v10, %v2273_v19 }
 0xce7   :  { %v2275_v2 = vmul.f32 0.5, %v2274_v46  ;;  %v2250_v45 = vpop.xlane.xlu1 %2249 }
 0xce8   :  { %v2262_v48 = vmul.f32 %v2250_v45, %v5884_v58 }
 0xce9   :  { %v2276_v53 = vsub.f32 1.5, %v2275_v2 }
 0xcea   :  { %v4999_v42 = vpop.eup %4998  ;;  %v2268_v41 = vadd.f32 1e-05, %v2262_v48 }
 0xceb   :  { %v2277_v0 = vmul.f32 %v4997_v10, %v2276_v53  ;;  %v2283_v54 = vmul.f32 %v4999_v42, %v2267_v7  ;;  %vm2289_vm6 = vweird.f32 %v4999_v42 }
 0xcec   :  { %5000 = vrsqrt.f32 %v2268_v41  ;;  %vm2290_vm8 = vmor %vm2288_vm7, %vm2289_vm6  ;;  %vm2298_vm10 = vweird.f32 %v2268_v41 }
 0xced   :  { %v2281_v27 = vsel %vm2280_vm5, %v4997_v10, %v2277_v0  ;;  %v2284_v20 = vmul.f32 %v4999_v42, %v2283_v54 }
 0xcee   :  { %v2332_v40 = vmul.f32 %v2281_v27, %v6071_v4 }
 0xcef   :  { %v2285_v63 = vmul.f32 0.5, %v2284_v20 }
 0xcf0   :  { %v2341_v49 = vmul.f32 %v6114_v31, %v2332_v40 }
 0xcf1   :  { %v2286_v43 = vsub.f32 1.5, %v2285_v63 }
 0xcf2   :  { %v5001_v35 = vpop.eup %5000  ;;  %v6122_v62 = vadd.f32 %v6118_v52, %v2341_v49 }
 0xcf3   :  { %v2287_v47 = vmul.f32 %v4999_v42, %v2286_v43  ;;  %v2293_v21 = vmul.f32 %v5001_v35, %v2268_v41  ;;  %vm2299_vm9 = vweird.f32 %v5001_v35 }
 0xcf4   :  { %4627 = vmatmul.msk.f32.vlgmr.msrb.gmra.mxu2 %vm240_vm1, %v6122_v62  ;;  %vm2300_vm11 = vmor %vm2298_vm10, %vm2299_vm9 }
 0xcf5   :  { %v2291_v28 = vsel %vm2290_vm8, %v4999_v42, %v2287_v47  ;;  %v2294_v4 = vmul.f32 %v5001_v35, %v2293_v21 }
 0xcf6   :  { %v2333_v1 = vmul.f32 %v2291_v28, %v6077_v44 }
 0xcf7   :  { %v2295_v33 = vmul.f32 0.5, %v2294_v4 }
 0xcf8   :  { %v2342_v60 = vmul.f32 %v6114_v31, %v2333_v1 }
 0xcf9   :  { %v2296_v22 = vsub.f32 1.5, %v2295_v33 }
 0xcfa   :  { %v6129_v55 = vadd.f32 %v6118_v52, %v2342_v60 }
 0xcfb   :  { %v2297_v56 = vmul.f32 %v5001_v35, %v2296_v22 }
 0xcfc   :  { %4628 = vmatmul.msk.f32.gmra.mxu2 %vm240_vm1, %v6129_v55 }
 0xcfd   :  { %v2301_v57 = vsel %vm2300_vm11, %v5001_v35, %v2297_v56  ;;  %v6165_v35 = vld [vmem:[%s6980_s3] ss:$0 sm:$0xff] }
 0xcfe   :  { %v2334_v61 = vmul.f32 %v2301_v57, %v6083_v6 }
 0xd00   :  { %v2343_v39 = vmul.f32 %v6114_v31, %v2334_v61 }
 0xd02   :  { %v6136_v44 = vadd.f32 %v6118_v52, %v2343_v39 }
 0xd04   :  { %4629 = vmatmul.msk.f32.gmra.mxu2 %vm240_vm1, %v6136_v44 }
 0xd33   :  { %v1979_v59 = vpop.xlane.xlu0 %1978 }
 0xd34   :  { %v1989_v5 = vmul.f32 %v1979_v59, %v5884_v58 }
 0xd36   :  { %v1995_v12 = vadd.f32 1e-05, %v1989_v5 }
 0xd38   :  { %5002 = vrsqrt.f32 %v1995_v12  ;;  %vm2034_vm13 = vweird.f32 %v1995_v12 }
 0xd3b   :  { %v1982_v11 = vpop.xlane.xlu1 %1981 }
 0xd3c   :  { %v1990_v14 = vmul.f32 %v1982_v11, %v5884_v58 }
 0xd3e   :  { %v5003_v29 = vpop.eup %5002  ;;  %v1996_v38 = vadd.f32 1e-05, %v1990_v14 }
 0xd3f   :  { %v2029_v30 = vmul.f32 %v5003_v29, %v1995_v12  ;;  %vm2035_vm12 = vweird.f32 %v5003_v29 }
 0xd40   :  { %5004 = vrsqrt.f32 %v1996_v38  ;;  %vm2036_vm14 = vmor %vm2034_vm13, %vm2035_vm12  ;;  %vm2044_vm3 = vweird.f32 %v1996_v38 }
 0xd41   :  { %v2030_v6 = vmul.f32 %v5003_v29, %v2029_v30 }
 0xd43   :  { %v2031_v15 = vmul.f32 0.5, %v2030_v6  ;;  %v1985_v36 = vpop.xlane.xlu2 %1984 }
 0xd44   :  { %v1991_v23 = vmul.f32 %v1985_v36, %v5884_v58 }
 0xd45   :  { %v2032_v26 = vsub.f32 1.5, %v2031_v15 }
 0xd46   :  { %v5005_v3 = vpop.eup %5004  ;;  %v1997_v9 = vadd.f32 1e-05, %v1991_v23 }
 0xd47   :  { %v2033_v50 = vmul.f32 %v5003_v29, %v2032_v26  ;;  %v2039_v32 = vmul.f32 %v5005_v3, %v1996_v38  ;;  %vm2045_vm15 = vweird.f32 %v5005_v3 }
 0xd48   :  { %5006 = vrsqrt.f32 %v1997_v9  ;;  %vm2046_vm5 = vmor %vm2044_vm3, %vm2045_vm15  ;;  %vm2054_vm7 = vweird.f32 %v1997_v9 }
 0xd49   :  { %v2037_v25 = vsel %vm2036_vm14, %v5003_v29, %v2033_v50  ;;  %v2040_v16 = vmul.f32 %v5005_v3, %v2039_v32 }
 0xd4a   :  { %v2061_v10 = vmul.f32 %v2037_v25, %v6089_v34 }
 0xd4b   :  { %v2041_v7 = vmul.f32 0.5, %v2040_v16 }
 0xd4c   :  { %v2070_v19 = vmul.f32 %v5984_v18, %v2061_v10 }
 0xd4d   :  { %v2042_v46 = vsub.f32 1.5, %v2041_v7 }
 0xd4e   :  { %v5007_v2 = vpop.eup %5006  ;;  %v6146_v45 = vadd.f32 %v5990_v8, %v2070_v19 }
 0xd4f   :  { %v2043_v48 = vmul.f32 %v5005_v3, %v2042_v46  ;;  %v2049_v53 = vmul.f32 %v5007_v2, %v1997_v9  ;;  %vm2055_vm6 = vweird.f32 %v5007_v2 }
 0xd50   :  { %4618 = vmatmul.msk.f32.gmra.mxu3 %vm240_vm1, %v6146_v45  ;;  %vm2056_vm8 = vmor %vm2054_vm7, %vm2055_vm6 }
 0xd51   :  { %v2047_v42 = vsel %vm2046_vm5, %v5005_v3, %v2043_v48  ;;  %v2050_v41 = vmul.f32 %v5007_v2, %v2049_v53 }
 0xd52   :  { %v2062_v34 = vmul.f32 %v2047_v42, %v6095_v51 }
 0xd53   :  { %v2051_v0 = vmul.f32 0.5, %v2050_v41 }
 0xd54   :  { %v2071_v54 = vmul.f32 %v5984_v18, %v2062_v34 }
 0xd55   :  { %v2052_v27 = vsub.f32 1.5, %v2051_v0 }
 0xd56   :  { %v6153_v20 = vadd.f32 %v5990_v8, %v2071_v54 }
 0xd57   :  { %v2053_v40 = vmul.f32 %v5007_v2, %v2052_v27 }
 0xd58   :  { %4619 = vmatmul.msk.f32.gmra.mxu3 %vm240_vm1, %v6153_v20 }
 0xd59   :  { %v2057_v63 = vsel %vm2056_vm8, %v5007_v2, %v2053_v40 }
 0xd5a   :  { %v2063_v49 = vmul.f32 %v2057_v63, %v6101_v13 }
 0xd5c   :  { %v2072_v43 = vmul.f32 %v5984_v18, %v2063_v49 }
 0xd5e   :  { %v6160_v51 = vadd.f32 %v5990_v8, %v2072_v43 }
 0xd60   :  { %4620 = vmatmul.msk.f32.gmra.mxu3 %vm240_vm1, %v6160_v51 }
 0xd77   :  { %v2422_v47 = vpop.f32.mrf.mxu2 }
 0xd78   :  { %v6168_v21 = vadd.f32 %v6165_v35, %v2422_v47 }
 0xd7a   :  { %2609 = vrot.lane.b32.xlu2 %v6168_v21, %s5188_s17 }
 0xd7f   :  { %v2425_v28 = vpop.f32.mrf.mxu2 }
 0xd80   :  { %v6173_v13 = vadd.f32 %v6165_v35, %v2425_v28 }
 0xd82   :  { %2611 = vrot.lane.b32.xlu1 %v6173_v13, %s5188_s17 }
 0xd87   :  { %v2428_v18 = vpop.f32.mrf.mxu2 }
 0xd88   :  { %v6178_v8 = vadd.f32 %v6165_v35, %v2428_v18 }
 0xd8a   :  { %2607 = vrot.lane.b32.xlu2 %v6178_v8, %s5189_s21  ;;  %2849 = vrot.lane.b32.xlu1 %v6178_v8, %s5191_s9 }
 0xd8b   :  { %2613 = vrot.lane.b32.xlu0 %v6178_v8, %s5188_s17 }
 0xd92   :  { %2839 = vrot.lane.b32.xlu2 %v6168_v21, %s5192_s22  ;;  %2845 = vrot.lane.b32.xlu1 %v6168_v21, %s5191_s9 }
 0xd93   :  { %2603 = vrot.lane.b32.xlu0 %v6168_v21, %s5189_s21 }
 0xd9a   :  { %2447 = vrot.lane.b32.xlu2 %v6178_v8, %s5185_s0  ;;  %2843 = vrot.lane.b32.xlu1 %v6178_v8, %s5192_s22 }
 0xd9b   :  { %2605 = vrot.lane.b32.xlu0 %v6173_v13, %s5189_s21 }
 0xda2   :  { %2443 = vrot.lane.b32.xlu1 %v6168_v21, %s5185_s0 }
 0xda3   :  { %2847 = vrot.lane.b32.xlu0 %v6173_v13, %s5191_s9 }
 0xdab   :  { %2841 = vrot.lane.b32.xlu0 %v6173_v13, %s5192_s22 }
 0xdb3   :  { %2445 = vrot.lane.b32.xlu0 %v6173_v13, %s5185_s0 }
 0xdd3   :  { %v2129_v4 = vpop.f32.mrf.mxu3 }
 0xdd4   :  { %v2130_v1 = vadd.f32 %v6032_v17, %v2129_v4  ;;  %v2610_v22 = vpop.permute.xlu2 %2609 }
 0xdd6   :  { %v2141_v33 = vmax.f32 %v2130_v1, 0.0 }
 0xdd8   :  { %4624 = vmatmul.msk.f32.gmra.mxu1 %vm151_vm0, %v2141_v33 }
 0xddb   :  { %v2132_v60 = vpop.f32.mrf.mxu3 }
 0xddc   :  { %v2133_v56 = vadd.f32 %v6032_v17, %v2132_v60 }
 0xdde   :  { %v2142_v57 = vmax.f32 %v2133_v56, 0.0 }
 0xde0   :  { %4625 = vmatmul.msk.f32.gmra.mxu1 %vm151_vm0, %v2142_v57 }
 0xde3   :  { %v2135_v61 = vpop.f32.mrf.mxu3 }
 0xde4   :  { %v2608_v39 = vpop.permute.xlu2 %2607  ;;  %v2136_v59 = vadd.f32 %v6032_v17, %v2135_v61 }
 0xde6   :  { %v2143_v5 = vmax.f32 %v2136_v59, 0.0 }
 0xde8   :  { %4626 = vmatmul.msk.f32.gmra.mxu1 %vm151_vm0, %v2143_v5 }
 0xdec   :  { %v2840_v12 = vpop.permute.xlu2 %2839 }
 0xdf4   :  { %v2448_v11 = vpop.permute.xlu2 %2447  ;;  %v2612_v14 = vpop.permute.xlu1 %2611 }
 0xdf5   :  { %4633 = vmatpush.xpose.msk.msra.mxu0 %vm303_vm2, %v2448_v11 }
 0xdfc   :  { %v2850_v30 = vpop.permute.xlu1 %2849 }
 0xdfd   :  { %v2614_v29 = vpop.permute.xlu0 %2613 }
 0xdfe   :  { %4642 = vmatpush.xpose.msk.msrb.mxu3 %vm303_vm2, %v2614_v29 }
 0xe02   :  { %4643 = vmatpush.xpose.msk.msrb.mxu3 %vm303_vm2, %v2612_v14 }
 0xe04   :  { %v2846_v6 = vpop.permute.xlu1 %2845 }
 0xe05   :  { %v2604_v38 = vpop.permute.xlu0 %2603 }
 0xe06   :  { %4644 = vmatpush.xpose.msk.msrb.mxu3 %vm303_vm2, %v2610_v22 }
 0xe09   :  { %4645 = vmatmul.msk.f32.vlgmr.msrb.gmra.mxu3 %vm303_vm2, %v2604_v38 }
 0xe0a   :  { %4657 = vmatpush.xpose.msk.msra.mxu3 %vm303_vm2, %v2850_v30  ;;  %v6277_v30 = vpack.i.bf16 %v6173_v13, %v6178_v8 }
 0xe0c   :  { %v2844_v23 = vpop.permute.xlu1 %2843 }
 0xe0d   :  { %v2606_v17 = vpop.permute.xlu0 %2605 }
 0xe11   :  { %4646 = vmatmul.msk.f32.gmra.mxu3 %vm303_vm2, %v2606_v17 }
 0xe14   :  { %v2444_v3 = vpop.permute.xlu1 %2443 }
 0xe15   :  { %v2848_v15 = vpop.permute.xlu0 %2847 }
 0xe16   :  { %4658 = vmatpush.xpose.msk.msra.mxu3 %vm303_vm2, %v2848_v15 }
 0xe19   :  { %4647 = vmatmul.msk.f32.gmra.mxu3 %vm303_vm2, %v2608_v39 }
 0xe1a   :  { %4659 = vmatpush.xpose.msk.msra.mxu3 %vm303_vm2, %v2846_v6 }
 0xe1d   :  { %v2842_v36 = vpop.permute.xlu0 %2841 }
 0xe21   :  { %4660 = vmatmul.msk.f32.vlgmr.msra.gmra.mxu3 %vm303_vm2, %v2840_v12 }
 0xe25   :  { %v2446_v26 = vpop.permute.xlu0 %2445 }
 0xe26   :  { %4634 = vmatpush.xpose.msk.msra.mxu0 %vm303_vm2, %v2446_v26 }
 0xe29   :  { %4661 = vmatmul.msk.f32.gmra.mxu3 %vm303_vm2, %v2842_v36 }
 0xe2a   :  { %4635 = vmatpush.xpose.msk.msra.mxu0 %vm303_vm2, %v2444_v3 }
 0xe2d   :  { %4636 = vmatmul.msk.f32.vlgmr.msra.gmra.mxu0 %vm303_vm2, %v6168_v21 }
 0xe31   :  { %4662 = vmatmul.msk.f32.gmra.mxu3 %vm303_vm2, %v2844_v23 }
 0xe35   :  { %4637 = vmatmul.msk.f32.gmra.mxu0 %vm303_vm2, %v6173_v13 }
 0xe3d   :  { %4638 = vmatmul.msk.f32.gmra.mxu0 %vm303_vm2, %v6178_v8 }
 0xe55   :  { %v2191_v9 = vpop.f32.mrf.mxu1 }
 0xe56   :  { %v2192_v50 = vadd.f32 %v6044_v24, %v2191_v9 }
 0xe58   :  { %v2203_v32 = vadd.f32 %v2192_v50, %v6146_v45 }
 0xe5a   :  { %v2215_v25 = vsel %vm240_vm1, %v2203_v32, 0.0 }
 0xe5b   :  { %2216 = vadd.xlane.f32.xlu2 %v2215_v25 }
 0xe5d   :  { %v2194_v16 = vpop.f32.mrf.mxu1 }
 0xe5e   :  { %v2195_v10 = vadd.f32 %v6044_v24, %v2194_v16 }
 0xe60   :  { %v2204_v7 = vadd.f32 %v2195_v10, %v6153_v20 }
 0xe62   :  { %v2218_v19 = vsel %vm240_vm1, %v2204_v7, 0.0 }
 0xe63   :  { %2219 = vadd.xlane.f32.xlu0 %v2218_v19 }
 0xe65   :  { %v2197_v46 = vpop.f32.mrf.mxu1 }
 0xe66   :  { %v2198_v2 = vadd.f32 %v6044_v24, %v2197_v46 }
 0xe68   :  { %v2205_v48 = vadd.f32 %v2198_v2, %v6160_v51 }
 0xe6a   :  { %v2221_v53 = vsel %vm240_vm1, %v2205_v48, 0.0 }
 0xe6b   :  { %2222 = vadd.xlane.f32.xlu1 %v2221_v53 }
 0xe8c   :  { %v2644_v45 = vpop.f32.mrf.mxu3 }
 0xe8d   :  { %v2645_v42 = vadd.f32 %v2644_v45, %v5427_v37 }
 0xe8f   :  { %v2653_v41 = vsel %vm342_vm4, %v2645_v42, -inf }
 0xe90   :  { %2654 = vmax.xlane.f32.xlu2 %v2653_v41 }
 0xe94   :  { %v2647_v34 = vpop.f32.mrf.mxu3 }
 0xe95   :  { %v2648_v0 = vadd.f32 %v2647_v34, %v5427_v37 }
 0xe97   :  { %v2656_v54 = vsel %vm342_vm4, %v2648_v0, -inf }
 0xe98   :  { %2657 = vmax.xlane.f32.xlu0 %v2656_v54 }
 0xe9c   :  { %v2650_v27 = vpop.f32.mrf.mxu3 }
 0xe9d   :  { %v2651_v24 = vadd.f32 %v2650_v27, %v5427_v37 }
 0xe9f   :  { %v2659_v20 = vsel %vm342_vm4, %v2651_v24, -inf }
 0xea0   :  { %2660 = vmax.xlane.f32.xlu1 %v2659_v20 }
 0xea4   :  { %v2880_v40 = vpop.f32.mrf.mxu3 }
 0xea5   :  { %v2881_v63 = vadd.f32 %v2880_v40, %v5427_v37 }
 0xea7   :  { %v2889_v49 = vsel %vm342_vm4, %v2881_v63, -inf }
 0xea8   :  { %2890 = vmax.xlane.f32.xlu0 %v2889_v49 }
 0xeaa   :  { %v2478_v53 = vpop.f32.mrf.mxu0 }
 0xeac   :  { %v2883_v43 = vpop.f32.mrf.mxu3 }
 0xead   :  { %v6260_v57 = vadd.f32 %v2883_v43, %v5427_v37 }
 0xeaf   :  { %v2892_v59 = vsel %vm342_vm4, %v6260_v57, -inf }
 0xeb4   :  { %v2886_v51 = vpop.f32.mrf.mxu3 }
 0xeb5   :  { %v2887_v47 = vadd.f32 %v2886_v51, %v5427_v37 }
 0xeb7   :  { %v2895_v28 = vsel %vm342_vm4, %v2887_v47, -inf }
 0xeb8   :  { %2896 = vmax.xlane.f32.xlu1 %v2895_v28 }
 0xece   :  { %v2217_v18 = vpop.xlane.xlu2 %2216 }
 0xecf   :  { %v2227_v4 = vmul.f32 %v2217_v18, %v5884_v58 }
 0xed1   :  { %v6253_v1 = vsub.f32 %v2203_v32, %v2227_v4 }
 0xed3   :  { %v2239_v33 = vmul.f32 %v6253_v1, %v6253_v1 }
 0xed5   :  { %v2251_v60 = vsel %vm240_vm1, %v2239_v33, 0.0 }
 0xed6   :  { %v2220_v22 = vpop.xlane.xlu0 %2219  ;;  %2252 = vadd.xlane.f32.xlu2 %v2251_v60 }
 0xed7   :  { %v2228_v56 = vmul.f32 %v2220_v22, %v5884_v58 }
 0xed9   :  { %v6262_v61 = vsub.f32 %v2204_v7, %v2228_v56 }
 0xedb   :  { %v2240_v39 = vmul.f32 %v6262_v61, %v6262_v61 }
 0xedd   :  { %v2254_v5 = vsel %vm240_vm1, %v2240_v39, 0.0 }
 0xede   :  { %2893 = vmax.xlane.f32.xlu2 %v2892_v59  ;;  %2255 = vadd.xlane.f32.xlu1 %v2254_v5  ;;  %v2223_v12 = vpop.xlane.xlu1 %2222 }
 0xedf   :  { %v2229_v11 = vmul.f32 %v2223_v12, %v5884_v58 }
 0xee1   :  { %v6270_v14 = vsub.f32 %v2205_v48, %v2229_v11 }
 0xee3   :  { %v2241_v29 = vmul.f32 %v6270_v14, %v6270_v14 }
 0xee5   :  { %v2257_v38 = vsel %vm240_vm1, %v2241_v29, 0.0 }
 0xee6   :  { %2258 = vadd.xlane.f32.xlu0 %v2257_v38 }
 0xef7   :  { %4834 = vrot.lane.b32.xlu1 %v6277_v30, %s5190_s5 }
 0xefa   :  { %2725 = vrot.lane.b32.xlu0 %v6168_v21, %s5190_s5 }
 0xf03   :  { %v2655_v17 = vpop.xlane.xlu2 %2654 }
 0xf04   :  { %v2662_v6 = vsub.f32 %v2645_v42, %v2655_v17 }
 0xf06   :  { %v2665_v15 = vmul.f32 1.442695, %v2662_v6 }
 0xf08   :  { %5008 = vpow2.f32 %v2665_v15 }
 0xf0b   :  { %v2658_v23 = vpop.xlane.xlu0 %2657 }
 0xf0c   :  { %v2663_v3 = vsub.f32 %v2648_v0, %v2658_v23  ;;  %v6299_v0 = vpop.f32.mrf.mxu0 }
 0xf0e   :  { %v6283_v36 = vpop.eup %5008  ;;  %v2667_v32 = vmul.f32 1.442695, %v2663_v3 }
 0xf0f   :  { %v2671_v26 = vsel %vm342_vm4, %v6283_v36, 0.0 }
 0xf10   :  { %2672 = vadd.xlane.f32.xlu2 %v2671_v26 }
 0xf13   :  { %v2661_v9 = vpop.xlane.xlu1 %2660 }
 0xf14   :  { %v2664_v50 = vsub.f32 %v2651_v24, %v2661_v9  ;;  %v2484_v20 = vpop.f32.mrf.mxu0 }
 0xf15   :  { %v6308_v40 = vadd.f32 %v2484_v20, %v5427_v37 }
 0xf16   :  { %v2669_v25 = vmul.f32 1.442695, %v2664_v50 }
 0xf18   :  { %5010 = vpow2.f32 %v2669_v25 }
 0xf19   :  { %5012 = vpow2.f32 %v2667_v32 }
 0xf1b   :  { %v2891_v16 = vpop.xlane.xlu0 %2890 }
 0xf1c   :  { %v2898_v10 = vsub.f32 %v2881_v63, %v2891_v16  ;;  %v2493_v63 = vsel %vm342_vm4, %v6308_v40, -inf }
 0xf1e   :  { %v6287_v7 = vpop.eup %5010  ;;  %v2901_v19 = vmul.f32 1.442695, %v2898_v10 }
 0xf1f   :  { %v2677_v46 = vsel %vm342_vm4, %v6287_v7, 0.0  ;;  %v6291_v2 = vpop.eup %5012 }
 0xf20   :  { %5014 = vpow2.f32 %v2901_v19  ;;  %2678 = vadd.xlane.f32.xlu2 %v2677_v46  ;;  %v2674_v48 = vsel %vm342_vm4, %v6291_v2, 0.0 }
 0xf24   :  { %2675 = vadd.xlane.f32.xlu0 %v2674_v48 }
 0xf26   :  { %v6295_v45 = vpop.eup %5014 }
 0xf27   :  { %v2907_v42 = vsel %vm342_vm4, %v6295_v45, 0.0 }
 0xf28   :  { %2908 = vadd.xlane.f32.xlu2 %v2907_v42 }
 0xf2b   :  { %v2897_v41 = vpop.xlane.xlu1 %2896 }
 0xf2c   :  { %v2900_v34 = vsub.f32 %v2887_v47, %v2897_v41 }
 0xf2e   :  { %v2905_v54 = vmul.f32 1.442695, %v2900_v34 }
 0xf30   :  { %5016 = vpow2.f32 %v2905_v54 }
 0xf36   :  { %v6301_v27 = vpop.eup %5016 }
 0xf37   :  { %v2913_v24 = vsel %vm342_vm4, %v6301_v27, 0.0 }
 0xf38   :  { %2914 = vadd.xlane.f32.xlu1 %v2913_v24  ;;  %2961 = vrot.lane.b32.xlu0 %v6168_v21, %s5193_s23 }
 0xf40   :  { %2494 = vmax.xlane.f32.xlu1 %v2493_v63 }
 0xf49   :  { %v2253_v49 = vpop.xlane.xlu2 %2252 }
 0xf4a   :  { %v2263_v43 = vmul.f32 %v2253_v49, %v5884_v58 }
 0xf4c   :  { %v2269_v51 = vadd.f32 1e-05, %v2263_v43 }
 0xf4e   :  { %5018 = vrsqrt.f32 %v2269_v51  ;;  %vm2308_vm10 = vweird.f32 %v2269_v51 }
 0xf51   :  { %v2894_v47 = vpop.xlane.xlu2 %2893  ;;  %v2256_v28 = vpop.xlane.xlu1 %2255 }
 0xf52   :  { %v2899_v18 = vsub.f32 %v6260_v57, %v2894_v47  ;;  %v2264_v4 = vmul.f32 %v2256_v28, %v5884_v58  ;;  %v6319_v57 = vadd.f32 %v2478_v53, %v5427_v37 }
 0xf54   :  { %v5019_v33 = vpop.eup %5018  ;;  %v2903_v60 = vmul.f32 1.442695, %v2899_v18  ;;  %v2270_v22 = vadd.f32 1e-05, %v2264_v4  ;;  %v2487_v50 = vsel %vm342_vm4, %v6319_v57, -inf }
 0xf55   :  { %v2303_v56 = vmul.f32 %v5019_v33, %v2269_v51  ;;  %vm2309_vm9 = vweird.f32 %v5019_v33 }
 0xf56   :  { %5020 = vpow2.f32 %v2903_v60  ;;  %vm2310_vm11 = vmor %vm2308_vm10, %vm2309_vm9  ;;  %vm2318_vm13 = vweird.f32 %v2270_v22 }
 0xf57   :  { %v2304_v39 = vmul.f32 %v5019_v33, %v2303_v56  ;;  %5022 = vrsqrt.f32 %v2270_v22 }
 0xf59   :  { %v2305_v59 = vmul.f32 0.5, %v2304_v39  ;;  %v2259_v5 = vpop.xlane.xlu0 %2258 }
 0xf5a   :  { %v2265_v12 = vmul.f32 %v2259_v5, %v5884_v58 }
 0xf5b   :  { %v2306_v11 = vsub.f32 1.5, %v2305_v59 }
 0xf5c   :  { %v6316_v29 = vpop.eup %5020  ;;  %v2271_v38 = vadd.f32 1e-05, %v2265_v12 }
 0xf5d   :  { %v5023_v17 = vpop.eup %5022  ;;  %v2307_v6 = vmul.f32 %v5019_v33, %v2306_v11  ;;  %v2910_v15 = vsel %vm342_vm4, %v6316_v29, 0.0 }
 0xf5e   :  { %v2313_v23 = vmul.f32 %v5023_v17, %v2270_v22  ;;  %5024 = vrsqrt.f32 %v2271_v38  ;;  %2911 = vadd.xlane.f32.xlu2 %v2910_v15  ;;  %vm2319_vm12 = vweird.f32 %v5023_v17  ;;  %vm2328_vm3 = vweird.f32 %v2271_v38 }
 0xf5f   :  { %v2311_v26 = vsel %vm2310_vm11, %v5019_v33, %v2307_v6  ;;  %vm2320_vm14 = vmor %vm2318_vm13, %vm2319_vm12  ;;  %v6352_v6 = vadd.f32 %v6299_v0, %v5427_v37 }
 0xf60   :  { %v2314_v3 = vmul.f32 %v5023_v17, %v2313_v23  ;;  %v2335_v9 = vmul.f32 %v2311_v26, %v6253_v1 }
 0xf61   :  { %v2490_v26 = vsel %vm342_vm4, %v6352_v6, -inf }
 0xf62   :  { %v2315_v32 = vmul.f32 0.5, %v2314_v3  ;;  %2488 = vmax.xlane.f32.xlu0 %v2487_v50  ;;  %v2344_v25 = vmul.f32 %v6114_v31, %v2335_v9 }
 0xf64   :  { %v5025_v16 = vpop.eup %5024  ;;  %v2316_v10 = vsub.f32 1.5, %v2315_v32  ;;  %v6328_v19 = vadd.f32 %v6118_v52, %v2344_v25 }
 0xf65   :  { %v2323_v46 = vmul.f32 %v5025_v16, %v2271_v38  ;;  %vm2329_vm15 = vweird.f32 %v5025_v16 }
 0xf66   :  { %v2317_v48 = vmul.f32 %v5023_v17, %v2316_v10  ;;  %4630 = vmatmul.msk.f32.gmra.mxu2 %vm240_vm1, %v6328_v19  ;;  %vm2330_vm5 = vmor %vm2328_vm3, %vm2329_vm15 }
 0xf67   :  { %v2324_v1 = vmul.f32 %v5025_v16, %v2323_v46 }
 0xf68   :  { %v2321_v53 = vsel %vm2320_vm14, %v5023_v17, %v2317_v48 }
 0xf69   :  { %v2336_v42 = vmul.f32 %v2321_v53, %v6262_v61  ;;  %v2325_v41 = vmul.f32 0.5, %v2324_v1  ;;  %v4835_v34 = vpop.permute.xlu1 %4834 }
 0xf6a   :  { %v4836_v54 = vunpack.i.l.bf16 %v4835_v34  ;;  %v4837_v63 = vunpack.i.h.bf16 %v4835_v34 }
 0xf6b   :  { %v2326_v24 = vsub.f32 1.5, %v2325_v41  ;;  %v2345_v20 = vmul.f32 %v6114_v31, %v2336_v42 }
 0xf6c   :  { %2756 = vmatpush.msra.mxu1 %v4836_v54  ;;  %v2726_v47 = vpop.permute.xlu0 %2725 }
 0xf6d   :  { %v2327_v49 = vmul.f32 %v5025_v16, %v2326_v24  ;;  %v6335_v43 = vadd.f32 %v6118_v52, %v2345_v20 }
 0xf6e   :  { %2757 = vmatpush.msra.mxu1 %v4837_v63 }
 0xf6f   :  { %v2331_v51 = vsel %vm2330_vm5, %v5025_v16, %v2327_v49  ;;  %4631 = vmatmul.msk.f32.gmra.mxu2 %vm240_vm1, %v6335_v43 }
 0xf70   :  { %v2337_v61 = vmul.f32 %v2331_v51, %v6270_v14  ;;  %2758 = vmatpush.msra.mxu1 %v2726_v47 }
 0xf72   :  { %v2346_v28 = vmul.f32 %v6114_v31, %v2337_v61 }
 0xf74   :  { %v6342_v18 = vadd.f32 %v6118_v52, %v2346_v28 }
 0xf76   :  { %4839 = vrot.lane.b32.xlu2 %v6277_v30, %s5193_s23 }
 0xf77   :  { %4632 = vmatmul.msk.f32.gmra.mxu2 %vm240_vm1, %v6342_v18 }
 0xf83   :  { %v2673_v4 = vpop.xlane.xlu2 %2672 }
 0xf84   :  { %5026 = vrcp.f32 %v2673_v4  ;;  %v2691_v56 = vand.u32 2147483648, %v2673_v4  ;;  %v2689_v14 = vand.u32 2147483647, %v2673_v4  ;;  %vm2685_vm7 = vweird.f32 %v2673_v4 }
 0xf86   :  { %v2692_v31 = vor.u32 1.1754944e-38, %v2691_v56  ;;  %vm2690_vm9 = vcmp.eq.f32.partialorder %v2689_v14, 8.507059e+37 }
 0xf8a   :  { %v5027_v33 = vpop.eup %5026 }
 0xf8b   :  { %v2681_v60 = vmul.f32 %v5027_v33, %v2673_v4  ;;  %vm2686_vm6 = vweird.f32 %v5027_v33 }
 0xf8c   :  { %vm2687_vm8 = vmor %vm2685_vm7, %vm2686_vm6 }
 0xf8d   :  { %v2682_v22 = vsub.f32 1.0, %v2681_v60 }
 0xf8f   :  { %v2683_v39 = vmul.f32 %v5027_v33, %v2682_v22 }
 0xf91   :  { %v2684_v59 = vadd.f32 %v5027_v33, %v2683_v39 }
 0xf93   :  { %v2688_v52 = vsel %vm2687_vm8, %v5027_v33, %v2684_v59  ;;  %v2679_v5 = vpop.xlane.xlu2 %2678 }
 0xf94   :  { %v2693_v12 = vsel %vm2690_vm9, %v2692_v31, %v2688_v52  ;;  %5028 = vrcp.f32 %v2679_v5  ;;  %v2721_v1 = vand.u32 2147483648, %v2679_v5  ;;  %vm2715_vm15 = vweird.f32 %v2679_v5 }
 0xf95   :  { %v2694_v11 = vmul.f32 %v6283_v36, %v2693_v12  ;;  %v2719_v42 = vand.u32 2147483647, %v2679_v5 }
 0xf96   :  { %v2722_v54 = vor.u32 1.1754944e-38, %v2721_v1 }
 0xf97   :  { %4648 = vmatmul.msk.f32.vlgmr.msra.gmra.mxu1 %vm342_vm4, %v2694_v11  ;;  %v2676_v38 = vpop.xlane.xlu0 %2675  ;;  %vm2720_vm5 = vcmp.eq.f32.partialorder %v2719_v42, 8.507059e+37 }
 0xf98   :  { %5030 = vrcp.f32 %v2676_v38  ;;  %v2706_v32 = vand.u32 2147483648, %v2676_v38  ;;  %v2704_v16 = vand.u32 2147483647, %v2676_v38  ;;  %vm2700_vm11 = vweird.f32 %v2676_v38 }
 0xf9a   :  { %v5029_v17 = vpop.eup %5028  ;;  %v2707_v46 = vor.u32 1.1754944e-38, %v2706_v32  ;;  %vm2705_vm14 = vcmp.eq.f32.partialorder %v2704_v16, 8.507059e+37 }
 0xf9b   :  { %v2711_v15 = vmul.f32 %v5029_v17, %v2679_v5  ;;  %vm2716_vm13 = vweird.f32 %v5029_v17  ;;  %v2909_v63 = vpop.xlane.xlu2 %2908 }
 0xf9c   :  { %vm2717_vm3 = vmor %vm2715_vm15, %vm2716_vm13  ;;  %5032 = vrcp.f32 %v2909_v63  ;;  %v2927_v22 = vand.u32 2147483648, %v2909_v63  ;;  %vm2921_vm7 = vweird.f32 %v2909_v63  ;;  %v2925_v39 = vand.u32 2147483647, %v2909_v63 }
 0xf9d   :  { %v2712_v3 = vsub.f32 1.0, %v2711_v15 }
 0xf9e   :  { %v5031_v23 = vpop.eup %5030  ;;  %v2928_v11 = vor.u32 1.1754944e-38, %v2927_v22  ;;  %vm2926_vm9 = vcmp.eq.f32.partialorder %v2925_v39, 8.507059e+37 }
 0xf9f   :  { %v2696_v9 = vmul.f32 %v5031_v23, %v2676_v38  ;;  %2491 = vmax.xlane.f32.xlu2 %v2490_v26  ;;  %v2713_v36 = vmul.f32 %v5029_v17, %v2712_v3  ;;  %vm2701_vm10 = vweird.f32 %v5031_v23 }
 0xfa0   :  { %vm2702_vm12 = vmor %vm2700_vm11, %vm2701_vm10 }
 0xfa1   :  { %v2697_v50 = vsub.f32 1.0, %v2696_v9  ;;  %v2714_v0 = vadd.f32 %v5029_v17, %v2713_v36 }
 0xfa3   :  { %v2698_v25 = vmul.f32 %v5031_v23, %v2697_v50  ;;  %v2718_v34 = vsel %vm2717_vm3, %v5029_v17, %v2714_v0 }
 0xfa4   :  { %v2723_v24 = vsel %vm2720_vm5, %v2722_v54, %v2718_v34  ;;  %v6376_v34 = vld [vmem:[%s6981_s8 + $0x8] sm:$0xff] }
 0xfa5   :  { %v2699_v10 = vadd.f32 %v5031_v23, %v2698_v25  ;;  %v2724_v20 = vmul.f32 %v6287_v7, %v2723_v24  ;;  %2793 = vmatpush.msra.mxu2 %v6376_v34 }
 0xfa7   :  { %v2703_v48 = vsel %vm2702_vm12, %v5031_v23, %v2699_v10 }
 0xfa8   :  { %v2708_v53 = vsel %vm2705_vm14, %v2707_v46, %v2703_v48 }
 0xfa9   :  { %v2709_v41 = vmul.f32 %v6291_v2, %v2708_v53  ;;  %v5033_v2 = vpop.eup %5032 }
 0xfaa   :  { %v2917_v49 = vmul.f32 %v5033_v2, %v2909_v63  ;;  %v2962_v61 = vpop.permute.xlu0 %2961  ;;  %vm2922_vm6 = vweird.f32 %v5033_v2 }
 0xfab   :  { %4649 = vmatmul.msk.f32.gmra.mxu1 %vm342_vm4, %v2709_v41  ;;  %v2915_v47 = vpop.xlane.xlu1 %2914  ;;  %vm2923_vm8 = vmor %vm2921_vm7, %vm2922_vm6 }
 0xfac   :  { %v2918_v51 = vsub.f32 1.0, %v2917_v49  ;;  %5034 = vrcp.f32 %v2915_v47  ;;  %v2957_v48 = vand.u32 2147483648, %v2915_v47  ;;  %vm2951_vm15 = vweird.f32 %v2915_v47 }
 0xfad   :  { %v2955_v1 = vand.u32 2147483647, %v2915_v47 }
 0xfae   :  { %v2919_v7 = vmul.f32 %v5033_v2, %v2918_v51  ;;  %v2958_v41 = vor.u32 1.1754944e-38, %v2957_v48 }
 0xfaf   :  { %vm2956_vm5 = vcmp.eq.f32.partialorder %v2955_v1, 8.507059e+37 }
 0xfb0   :  { %v2920_v4 = vadd.f32 %v5033_v2, %v2919_v7 }
 0xfb2   :  { %v5035_v60 = vpop.eup %5034  ;;  %v2924_v31 = vsel %vm2923_vm8, %v5033_v2, %v2920_v4 }
 0xfb3   :  { %4650 = vmatmul.msk.f32.gmra.mxu1 %vm342_vm4, %v2724_v20  ;;  %v2947_v52 = vmul.f32 %v5035_v60, %v2915_v47  ;;  %v2929_v15 = vsel %vm2926_vm9, %v2928_v11, %v2924_v31  ;;  %vm2952_vm14 = vweird.f32 %v5035_v60  ;;  %v2495_v2 = vpop.xlane.xlu1 %2494 }
 0xfb4   :  { %v2930_v9 = vmul.f32 %v6295_v45, %v2929_v15  ;;  %vm2953_vm3 = vmor %vm2951_vm15, %vm2952_vm14  ;;  %v2498_v47 = vsub.f32 %v6308_v40, %v2495_v2 }
 0xfb5   :  { %v2948_v26 = vsub.f32 1.0, %v2947_v52 }
 0xfb6   :  { %v2503_v7 = vmul.f32 1.442695, %v2498_v47 }
 0xfb7   :  { %2559 = vrot.lane.b32.xlu2 %v6168_v21, %s5187_s13  ;;  %v2949_v25 = vmul.f32 %v5035_v60, %v2948_v26 }
 0xfb9   :  { %v2950_v45 = vadd.f32 %v5035_v60, %v2949_v25  ;;  %v6428_v25 = vld [vmem:[%s6981_s8] sm:$0xff] }
 0xfbb   :  { %v2954_v42 = vsel %vm2953_vm3, %v5035_v60, %v2950_v45 }
 0xfbc   :  { %v2959_v54 = vsel %vm2956_vm5, %v2958_v41, %v2954_v42 }
 0xfbd   :  { %v2960_v24 = vmul.f32 %v6301_v27, %v2959_v54 }
 0xfbf   :  { %3053 = vrot.lane.b32.xlu2 %v6178_v8, %s5194_s26 }
 0xfc7   :  { %3043 = vrot.lane.b32.xlu2 %v6168_v21, %s5195_s28 }
 0xfd1   :  { %v2912_v28 = vpop.xlane.xlu2 %2911 }
 0xfd2   :  { %5036 = vrcp.f32 %v2912_v28  ;;  %vm2936_vm11 = vweird.f32 %v2912_v28  ;;  %v2940_v32 = vand.u32 2147483647, %v2912_v28 }
 0xfd4   :  { %vm2941_vm13 = vcmp.eq.f32.partialorder %v2940_v32, 8.507059e+37 }
 0xfd5   :  { %v2489_v33 = vpop.xlane.xlu0 %2488 }
 0xfd6   :  { %v2496_v56 = vsub.f32 %v6319_v57, %v2489_v33  ;;  %v2942_v57 = vand.u32 2147483648, %v2912_v28 }
 0xfd8   :  { %v5037_v14 = vpop.eup %5036  ;;  %v2499_v59 = vmul.f32 1.442695, %v2496_v56  ;;  %v2943_v46 = vor.u32 1.1754944e-38, %v2942_v57  ;;  %v6411_v56 = vld [vmem:[%s6981_s8 + $0x10] sm:$0xff] }
 0xfd9   :  { %v2932_v5 = vmul.f32 %v5037_v14, %v2912_v28  ;;  %v4840_v12 = vpop.permute.xlu2 %4839  ;;  %vm2937_vm10 = vweird.f32 %v5037_v14  ;;  %3029 = vmatpush.msrb.mxu2 %v6411_v56 }
 0xfda   :  { %5038 = vpow2.f32 %v2499_v59  ;;  %v4841_v38 = vunpack.i.l.bf16 %v4840_v12  ;;  %v4842_v23 = vunpack.i.h.bf16 %v4840_v12  ;;  %vm2938_vm12 = vmor %vm2936_vm11, %vm2937_vm10 }
 0xfdb   :  { %v2933_v17 = vsub.f32 1.0, %v2932_v5 }
 0xfdc   :  { %2992 = vmatpush.msrb.mxu1 %v4841_v38 }
 0xfdd   :  { %v2934_v3 = vmul.f32 %v5037_v14, %v2933_v17 }
 0xfde   :  { %2993 = vmatpush.msrb.mxu1 %v4842_v23 }
 0xfdf   :  { %v2935_v50 = vadd.f32 %v5037_v14, %v2934_v3 }
 0xfe0   :  { %v6368_v36 = vpop.eup %5038  ;;  %2994 = vmatpush.msrb.mxu1 %v2962_v61 }
 0xfe1   :  { %4663 = vmatmul.msk.f32.vlgmr.msrb.gmra.mxu1 %vm342_vm4, %v2930_v9  ;;  %v2505_v16 = vsel %vm342_vm4, %v6368_v36, 0.0  ;;  %v2939_v10 = vsel %vm2938_vm12, %v5037_v14, %v2935_v50 }
 0xfe2   :  { %2506 = vadd.xlane.f32.xlu1 %v2505_v16  ;;  %v2944_v0 = vsel %vm2941_vm13, %v2943_v46, %v2939_v10 }
 0xfe3   :  { %v2945_v53 = vmul.f32 %v6316_v29, %v2944_v0 }
 0xfe9   :  { %4664 = vmatmul.msk.f32.gmra.mxu1 %vm342_vm4, %v2945_v53  ;;  %v2431_v20 = vpop.f32.mrf.mxu2 }
 0xfea   :  { %v6414_v39 = vadd.f32 %v6165_v35, %v2431_v20 }
 0xff1   :  { %4665 = vmatmul.msk.f32.gmra.mxu1 %vm342_vm4, %v2960_v24 }
 0xff2   :  { %v2434_v29 = vpop.f32.mrf.mxu2 }
 0xff3   :  { %v6384_v63 = vadd.f32 %v6165_v35, %v2434_v29 }
 0xffa   :  { %v2437_v60 = vpop.f32.mrf.mxu2 }
 0xffb   :  { %4844 = vrot.lane.b32.xlu1 %v6277_v30, %s5187_s13  ;;  %v6406_v22 = vadd.f32 %v6165_v35, %v2437_v60 }
0x1003   :  { %3252 = vrot.lane.b32.xlu1 %v6384_v63, %s5185_s0 }
0x100b   :  { %3051 = vrot.lane.b32.xlu1 %v6173_v13, %s5194_s26 }
0x1012   :  { %v2492_v49 = vpop.xlane.xlu2 %2491 }
0x1013   :  { %v2497_v27 = vsub.f32 %v6352_v6, %v2492_v49  ;;  %3045 = vrot.lane.b32.xlu1 %v6173_v13, %s5195_s28 }
0x1014   :  { %v2760_v51 = vpop.f32.mrf.mxu1 }
0x1015   :  { %v2501_v61 = vmul.f32 1.442695, %v2497_v27  ;;  %4651 = vmatmul.msk.f32.vlgmr.msra.gmra.mxu2 %vm303_vm2, %v2760_v51 }
0x1017   :  { %5040 = vpow2.f32 %v2501_v61 }
0x1018   :  { %5042 = vpow2.f32 %v2503_v7 }
0x101a   :  { %v2560_v15 = vpop.permute.xlu2 %2559 }
0x101d   :  { %v6395_v28 = vpop.eup %5040 }
0x101e   :  { %v2508_v4 = vsel %vm342_vm4, %v6395_v28, 0.0  ;;  %v6399_v6 = vpop.eup %5042 }
0x101f   :  { %2509 = vadd.xlane.f32.xlu0 %v2508_v4  ;;  %v2511_v13 = vsel %vm342_vm4, %v6399_v6, 0.0 }
0x1022   :  { %v3054_v10 = vpop.permute.xlu2 %3053 }
0x1027   :  { %2512 = vadd.xlane.f32.xlu0 %v2511_v13 }
0x1028   :  { %v2763_v40 = vpop.f32.mrf.mxu1 }
0x1029   :  { %4652 = vmatmul.msk.f32.gmra.mxu2 %vm303_vm2, %v2763_v40 }
0x1030   :  { %v2766_v33 = vpop.f32.mrf.mxu1 }
0x1031   :  { %4653 = vmatmul.msk.f32.gmra.mxu2 %vm303_vm2, %v2766_v33 }
0x103b   :  { %3254 = vrot.lane.b32.xlu0 %v6406_v22, %s5185_s0 }
0x1043   :  { %3250 = vrot.lane.b32.xlu0 %v6414_v39, %s5185_s0  ;;  %s5140_s0 = sshra.s32 %s4468_s18, 4  ;;  %s5141_s0 = int_to_ptr.hbm [resolvable:$true] %s5140_s0 }
0x1044   :  { %p5145_p1 = scmp.lt.s32.totalorder %s5141_s0, %s5362_s6 }
0x104b   :  { %3049 = vrot.lane.b32.xlu0 %v6168_v21, %s5194_s26 }
0x1053   :  { %3047 = vrot.lane.b32.xlu0 %v6178_v8, %s5195_s28 }
0x1055   :  { %v2507_v14 = vpop.xlane.xlu1 %2506 }
0x1056   :  { %5044 = vrcp.f32 %v2507_v14  ;;  %v2525_v38 = vand.u32 2147483648, %v2507_v14  ;;  %vm2519_vm7 = vweird.f32 %v2507_v14  ;;  %v2523_v17 = vand.u32 2147483647, %v2507_v14 }
0x1058   :  { %v2526_v26 = vor.u32 1.1754944e-38, %v2525_v38  ;;  %vm2524_vm9 = vcmp.eq.f32.partialorder %v2523_v17, 8.507059e+37 }
0x105c   :  { %v5045_v59 = vpop.eup %5044 }
0x105d   :  { %v2515_v31 = vmul.f32 %v5045_v59, %v2507_v14  ;;  %vm2520_vm6 = vweird.f32 %v5045_v59 }
0x105e   :  { %v2996_v52 = vpop.f32.mrf.mxu1  ;;  %vm2521_vm8 = vmor %vm2519_vm7, %vm2520_vm6 }
0x105f   :  { %4666 = vmatmul.msk.f32.vlgmr.msrb.gmra.mxu2 %vm303_vm2, %v2996_v52  ;;  %v2516_v35 = vsub.f32 1.0, %v2515_v31 }
0x1061   :  { %v2517_v5 = vmul.f32 %v5045_v59, %v2516_v35 }
0x1063   :  { %v2518_v11 = vadd.f32 %v5045_v59, %v2517_v5 }
0x1065   :  { %v2522_v8 = vsel %vm2521_vm8, %v5045_v59, %v2518_v11  ;;  %v3044_v11 = vpop.permute.xlu2 %3043 }
0x1066   :  { %v2999_v12 = vpop.f32.mrf.mxu1  ;;  %v2527_v9 = vsel %vm2524_vm9, %v2526_v26, %v2522_v8 }
0x1067   :  { %4667 = vmatmul.msk.f32.gmra.mxu2 %vm303_vm2, %v2999_v12  ;;  %v2528_v32 = vmul.f32 %v6368_v36, %v2527_v9 }
0x106d   :  { %v4845_v23 = vpop.permute.xlu1 %4844 }
0x106e   :  { %v4846_v3 = vunpack.i.l.bf16 %v4845_v23  ;;  %v3002_v57 = vpop.f32.mrf.mxu1  ;;  %v4847_v50 = vunpack.i.h.bf16 %v4845_v23 }
0x106f   :  { %4668 = vmatmul.msk.f32.gmra.mxu2 %vm303_vm2, %v3002_v57 }
0x1070   :  { %2590 = vmatpush.msrb.mxu0 %v4846_v3 }
0x1072   :  { %2591 = vmatpush.msrb.mxu0 %v4847_v50 }
0x1074   :  { %2592 = vmatpush.msrb.mxu0 %v2560_v15 }
0x1075   :  { %v3253_v16 = vpop.permute.xlu1 %3252  ;;  %4639 = vmatmul.msk.f32.vlgmr.msrb.gmra.mxu0 %vm342_vm4, %v2528_v32 }
0x1076   :  { %2828 = vmatpush.msra.mxu0 %v6428_v25 }
0x1078   :  { %4669 = vmatpush.xpose.msk.msrb.mxu0 %vm303_vm2, %v3054_v10  ;;  %v6476_v10 = vpack.i.bf16 %v6384_v63, %v6406_v22 }
0x107d   :  { %v3052_v46 = vpop.permute.xlu1 %3051 }
0x107e   :  { %4670 = vmatpush.xpose.msk.msrb.mxu0 %vm303_vm2, %v3052_v46 }
0x1085   :  { %v3046_v17 = vpop.permute.xlu1 %3045 }
0x1092   :  { %v2510_v0 = vpop.xlane.xlu0 %2509 }
0x1093   :  { %5046 = vrcp.f32 %v2510_v0  ;;  %v2540_v53 = vand.u32 2147483648, %v2510_v0  ;;  %v2538_v41 = vand.u32 2147483647, %v2510_v0  ;;  %vm2534_vm11 = vweird.f32 %v2510_v0 }
0x1095   :  { %v2541_v20 = vor.u32 1.1754944e-38, %v2540_v53  ;;  %vm2539_vm13 = vcmp.eq.f32.partialorder %v2538_v41, 8.507059e+37 }
0x1098   :  { %v6451_v31 = vpop.f32.mrf.mxu2 }
0x1099   :  { %v5047_v45 = vpop.eup %5046 }
0x109a   :  { %v2530_v48 = vmul.f32 %v5047_v45, %v2510_v0  ;;  %v2513_v1 = vpop.xlane.xlu0 %2512  ;;  %vm2535_vm10 = vweird.f32 %v5047_v45 }
0x109b   :  { %5048 = vrcp.f32 %v2513_v1  ;;  %vm2536_vm12 = vmor %vm2534_vm11, %vm2535_vm10  ;;  %v2555_v47 = vand.u32 2147483648, %v2513_v1  ;;  %v2553_v7 = vand.u32 2147483647, %v2513_v1  ;;  %vm2549_vm15 = vweird.f32 %v2513_v1 }
0x109c   :  { %v2531_v36 = vsub.f32 1.0, %v2530_v48 }
0x109d   :  { %v2556_v13 = vor.u32 1.1754944e-38, %v2555_v47  ;;  %vm2554_vm5 = vcmp.eq.f32.partialorder %v2553_v7, 8.507059e+37 }
0x109e   :  { %v2532_v42 = vmul.f32 %v5047_v45, %v2531_v36 }
0x10a0   :  { %v2533_v54 = vadd.f32 %v5047_v45, %v2532_v42 }
0x10a1   :  { %v5049_v24 = vpop.eup %5048 }
0x10a2   :  { %v2545_v29 = vmul.f32 %v5049_v24, %v2513_v1  ;;  %v2537_v2 = vsel %vm2536_vm12, %v5047_v45, %v2533_v54  ;;  %vm2550_vm14 = vweird.f32 %v5049_v24 }
0x10a3   :  { %v2542_v49 = vsel %vm2539_vm13, %v2541_v20, %v2537_v2  ;;  %vm2551_vm3 = vmor %vm2549_vm15, %vm2550_vm14 }
0x10a4   :  { %v2546_v27 = vsub.f32 1.0, %v2545_v29  ;;  %v2543_v51 = vmul.f32 %v6395_v28, %v2542_v49 }
0x10a6   :  { %v2547_v61 = vmul.f32 %v5049_v24, %v2546_v27  ;;  %4640 = vmatmul.msk.f32.gmra.mxu0 %vm342_vm4, %v2543_v51 }
0x10a8   :  { %v2548_v4 = vadd.f32 %v5049_v24, %v2547_v61 }
0x10aa   :  { %v2552_v40 = vsel %vm2551_vm3, %v5049_v24, %v2548_v4 }
0x10ab   :  { %v2557_v33 = vsel %vm2554_vm5, %v2556_v13, %v2552_v40 }
0x10ac   :  { %v2558_v60 = vmul.f32 %v6399_v6, %v2557_v33 }
0x10ad   :  { %v3255_v14 = vpop.permute.xlu0 %3254 }
0x10ae   :  { %4641 = vmatmul.msk.f32.gmra.mxu0 %vm342_vm4, %v2558_v60  ;;  %4681 = vmatpush.xpose.msk.msra.mxu2 %vm303_vm2, %v3255_v14 }
0x10b2   :  { %4682 = vmatpush.xpose.msk.msra.mxu2 %vm303_vm2, %v3253_v16 }
0x10b5   :  { %v3251_v28 = vpop.permute.xlu0 %3250 }
0x10b6   :  { %4683 = vmatpush.xpose.msk.msra.mxu2 %vm303_vm2, %v3251_v28 }
0x10b9   :  { %4684 = vmatmul.msk.f32.vlgmr.msra.gmra.mxu2 %vm303_vm2, %v6414_v39 }
0x10ba   :  { %3600 = vmatpush.msrb.mxu2 %v6376_v34  ;;  %v6453_v34 = vpop.f32.mrf.mxu2 }
0x10bc   :  { %3836 = vmatpush.msra.mxu2 %v6411_v56 }
0x10bd   :  { %v3050_v59 = vpop.permute.xlu0 %3049 }
0x10be   :  { %4671 = vmatpush.xpose.msk.msrb.mxu0 %vm303_vm2, %v3050_v59 }
0x10c1   :  { %4685 = vmatmul.msk.f32.gmra.mxu2 %vm303_vm2, %v6384_v63 }
0x10c2   :  { %v6455_v52 = vpop.f32.mrf.mxu2 }
0x10c5   :  { %v3048_v26 = vpop.permute.xlu0 %3047 }
0x10c9   :  { %4686 = vmatmul.msk.f32.gmra.mxu2 %vm303_vm2, %v6406_v22 }
0x10e2   :  { %v6457_v35 = vpop.f32.mrf.mxu2 }
0x10ea   :  { %v6460_v5 = vpop.f32.mrf.mxu2 }
0x10f2   :  { %v2594_v6 = vpop.f32.mrf.mxu0  ;;  %v6463_v38 = vpop.f32.mrf.mxu2 }
0x10f3   :  { %4654 = vmatmul.msk.f32.vlgmr.msra.gmra.mxu0 %vm303_vm2, %v2594_v6 }
0x1123   :  { %v2597_v56 = vpop.f32.mrf.mxu0 }
0x1124   :  { %4655 = vmatmul.msk.f32.gmra.mxu0 %vm303_vm2, %v2597_v56 }
0x112b   :  { %v2600_v12 = vpop.f32.mrf.mxu0 }
0x112c   :  { %4656 = vmatmul.msk.f32.gmra.mxu0 %vm303_vm2, %v2600_v12 }
0x1134   :  { %4672 = vmatmul.msk.f32.vlgmr.msrb.gmra.mxu0 %vm303_vm2, %v3044_v11 }
0x113c   :  { %4673 = vmatmul.msk.f32.gmra.mxu0 %vm303_vm2, %v3046_v17  ;;  %v3285_v15 = vpop.f32.mrf.mxu2 }
0x113d   :  { %v3286_v8 = vadd.f32 %v3285_v15, %v5427_v37 }
0x113f   :  { %v3294_v23 = vsel %vm342_vm4, %v3286_v8, -inf }
0x1140   :  { %3295 = vmax.xlane.f32.xlu2 %v3294_v23 }
0x1144   :  { %4674 = vmatmul.msk.f32.gmra.mxu0 %vm303_vm2, %v3048_v26  ;;  %v3288_v3 = vpop.f32.mrf.mxu2 }
0x1145   :  { %v3289_v57 = vadd.f32 %v3288_v3, %v5427_v37 }
0x1147   :  { %v3297_v9 = vsel %vm342_vm4, %v3289_v57, -inf }
0x1148   :  { %3298 = vmax.xlane.f32.xlu1 %v3297_v9 }
0x114c   :  { %v3291_v50 = vpop.f32.mrf.mxu2 }
0x114d   :  { %v3292_v32 = vadd.f32 %v3291_v50, %v5427_v37 }
0x114f   :  { %v3300_v16 = vsel %vm342_vm4, %v3292_v32, -inf }
0x1150   :  { %3301 = vmax.xlane.f32.xlu0 %v3300_v16 }
0x1164   :  { %4849 = vrot.lane.b32.xlu0 %v6476_v10, %s5187_s13 }
0x1170   :  { %v6480_v46 = vpop.f32.mrf.mxu0 }
0x11a1   :  { %v6482_v0 = vpop.f32.mrf.mxu0 }
0x11a9   :  { %v6484_v45 = vpop.f32.mrf.mxu0 }
0x11b1   :  { %v3084_v48 = vpop.f32.mrf.mxu0 }
0x11b2   :  { %v3085_v33 = vadd.f32 %v3084_v48, %v5427_v37 }
0x11b3   :  { %v3296_v1 = vpop.xlane.xlu2 %3295 }
0x11b4   :  { %v3303_v36 = vsub.f32 %v3286_v8, %v3296_v1  ;;  %v3093_v28 = vsel %vm342_vm4, %v3085_v33, -inf }
0x11b6   :  { %v3306_v53 = vmul.f32 1.442695, %v3303_v36 }
0x11b8   :  { %5050 = vpow2.f32 %v3306_v53 }
0x11b9   :  { %v3087_v42 = vpop.f32.mrf.mxu0 }
0x11ba   :  { %v6508_v6 = vadd.f32 %v3087_v42, %v5427_v37 }
0x11bb   :  { %v3299_v41 = vpop.xlane.xlu1 %3298 }
0x11bc   :  { %v3304_v54 = vsub.f32 %v3289_v57, %v3299_v41  ;;  %v3096_v56 = vsel %vm342_vm4, %v6508_v6, -inf }
0x11be   :  { %v6486_v24 = vpop.eup %5050  ;;  %v3308_v20 = vmul.f32 1.442695, %v3304_v54 }
0x11bf   :  { %v3312_v29 = vsel %vm342_vm4, %v6486_v24, 0.0 }
0x11c0   :  { %5052 = vpow2.f32 %v3308_v20  ;;  %3313 = vadd.xlane.f32.xlu2 %v3312_v29 }
0x11c1   :  { %v3090_v2 = vpop.f32.mrf.mxu0 }
0x11c2   :  { %v6491_v49 = vadd.f32 %v3090_v2, %v5427_v37 }
0x11c3   :  { %v3302_v27 = vpop.xlane.xlu0 %3301 }
0x11c4   :  { %v3305_v51 = vsub.f32 %v3292_v32, %v3302_v27  ;;  %v3099_v47 = vsel %vm342_vm4, %v6491_v49, -inf }
0x11c5   :  { %3100 = vmax.xlane.f32.xlu0 %v3099_v47 }
0x11c6   :  { %v6495_v61 = vpop.eup %5052  ;;  %v3310_v7 = vmul.f32 1.442695, %v3305_v51 }
0x11c7   :  { %v3315_v4 = vsel %vm342_vm4, %v6495_v61, 0.0 }
0x11c8   :  { %5054 = vpow2.f32 %v3310_v7  ;;  %3316 = vadd.xlane.f32.xlu1 %v3315_v4 }
0x11ce   :  { %v6499_v13 = vpop.eup %5054 }
0x11cf   :  { %v3318_v40 = vsel %vm342_vm4, %v6499_v13, 0.0 }
0x11d0   :  { %3319 = vadd.xlane.f32.xlu2 %v3318_v40 }
0x11d6   :  { %v4850_v60 = vpop.permute.xlu0 %4849 }
0x11d7   :  { %v4851_v14 = vunpack.i.l.bf16 %v4850_v60  ;;  %v4852_v59 = vunpack.i.h.bf16 %v4850_v60 }
0x11d8   :  { %3094 = vmax.xlane.f32.xlu2 %v3093_v28 }
0x11d9   :  { %3165 = vrot.lane.b32.xlu0 %v6168_v21, %s5196_s1  ;;  %3397 = vmatpush.msra.mxu0 %v4851_v14 }
0x11db   :  { %3398 = vmatpush.msra.mxu0 %v4852_v59 }
0x11e0   :  { %3097 = vmax.xlane.f32.xlu2 %v3096_v56 }
0x11e1   :  { %3418 = vrot.lane.b32.xlu0 %v6384_v63, %s5188_s17  ;;  %3366 = vrot.lane.b32.xlu1 %v6414_v39, %s5187_s13  ;;  %s5144_s13 = scalar_lea.hbm %s5362_s6, 2 }
0x11e9   :  { %3416 = vrot.lane.b32.xlu0 %v6414_v39, %s5188_s17 }
0x11f1   :  { %3656 = vrot.lane.b32.xlu0 %v6406_v22, %s5191_s9 }
0x11f9   :  { %3654 = vrot.lane.b32.xlu0 %v6384_v63, %s5191_s9 }
0x1201   :  { %3860 = vrot.lane.b32.xlu0 %v6406_v22, %s5194_s26 }
0x1209   :  { %3856 = vrot.lane.b32.xlu0 %v6414_v39, %s5194_s26 }
0x1211   :  { %3650 = vrot.lane.b32.xlu0 %v6406_v22, %s5192_s22 }
0x1233   :  { %v3314_v21 = vpop.xlane.xlu2 %3313 }
0x1234   :  { %5056 = vrcp.f32 %v3314_v21  ;;  %v3332_v16 = vand.u32 2147483648, %v3314_v21  ;;  %vm3326_vm7 = vweird.f32 %v3314_v21  ;;  %v3330_v48 = vand.u32 2147483647, %v3314_v21 }
0x1236   :  { %v3333_v20 = vor.u32 1.1754944e-38, %v3332_v16  ;;  %vm3331_vm9 = vcmp.eq.f32.partialorder %v3330_v48, 8.507059e+37 }
0x1238   :  { %v6528_v23 = vpop.xlane.xlu0 %3100 }
0x123a   :  { %v5057_v12 = vpop.eup %5056 }
0x123b   :  { %v3317_v11 = vpop.xlane.xlu1 %3316  ;;  %v3322_v17 = vmul.f32 %v5057_v12, %v3314_v21  ;;  %vm3327_vm6 = vweird.f32 %v5057_v12 }
0x123c   :  { %5058 = vrcp.f32 %v3317_v11  ;;  %vm3328_vm8 = vmor %vm3326_vm7, %vm3327_vm6  ;;  %v3347_v47 = vand.u32 2147483648, %v3317_v11  ;;  %vm3341_vm11 = vweird.f32 %v3317_v11  ;;  %v3345_v4 = vand.u32 2147483647, %v3317_v11 }
0x123d   :  { %v3323_v15 = vsub.f32 1.0, %v3322_v17 }
0x123e   :  { %v3348_v21 = vor.u32 1.1754944e-38, %v3347_v47  ;;  %vm3346_vm13 = vcmp.eq.f32.partialorder %v3345_v4, 8.507059e+37 }
0x123f   :  { %v3324_v3 = vmul.f32 %v5057_v12, %v3323_v15 }
0x1241   :  { %v3325_v9 = vadd.f32 %v5057_v12, %v3324_v3 }
0x1242   :  { %v5059_v8 = vpop.eup %5058 }
0x1243   :  { %v3320_v26 = vpop.xlane.xlu2 %3319  ;;  %v3337_v57 = vmul.f32 %v5059_v8, %v3317_v11  ;;  %v3329_v42 = vsel %vm3328_vm8, %v5057_v12, %v3325_v9  ;;  %vm3342_vm10 = vweird.f32 %v5059_v8 }
0x1244   :  { %5060 = vrcp.f32 %v3320_v26  ;;  %v3334_v2 = vsel %vm3331_vm9, %v3333_v20, %v3329_v42  ;;  %vm3343_vm12 = vmor %vm3341_vm11, %vm3342_vm10  ;;  %v3362_v15 = vand.u32 2147483648, %v3320_v26  ;;  %vm3356_vm15 = vweird.f32 %v3320_v26 }
0x1245   :  { %v3338_v50 = vsub.f32 1.0, %v3337_v57  ;;  %v3335_v7 = vmul.f32 %v6486_v24, %v3334_v2 }
0x1246   :  { %v3363_v57 = vor.u32 1.1754944e-38, %v3362_v15 }
0x1247   :  { %v3339_v41 = vmul.f32 %v5059_v8, %v3338_v50 }
0x1249   :  { %v3340_v27 = vadd.f32 %v5059_v8, %v3339_v41 }
0x124a   :  { %v5061_v32 = vpop.eup %5060 }
0x124b   :  { %v6530_v1 = vpop.permute.xlu0 %3165  ;;  %v3095_v36 = vpop.xlane.xlu2 %3094  ;;  %v3352_v54 = vmul.f32 %v5061_v32, %v3320_v26  ;;  %v3344_v59 = vsel %vm3343_vm12, %v5059_v8, %v3340_v27  ;;  %vm3357_vm14 = vweird.f32 %v5061_v32 }
0x124c   :  { %v3102_v53 = vsub.f32 %v3085_v33, %v3095_v36  ;;  %v3349_v11 = vsel %vm3346_vm13, %v3348_v21, %v3344_v59  ;;  %vm3358_vm3 = vmor %vm3356_vm15, %vm3357_vm14  ;;  %v3104_v36 = vsub.f32 %v6491_v49, %v6528_v23 }
0x124d   :  { %v3353_v51 = vsub.f32 1.0, %v3352_v54  ;;  %v3350_v8 = vmul.f32 %v6495_v61, %v3349_v11 }
0x124e   :  { %v3105_v29 = vmul.f32 1.442695, %v3102_v53 }
0x124f   :  { %v3354_v14 = vmul.f32 %v5061_v32, %v3353_v51 }
0x1250   :  { %5062 = vpow2.f32 %v3105_v29 }
0x1251   :  { %v3355_v17 = vadd.f32 %v5061_v32, %v3354_v14 }
0x1253   :  { %v6533_v40 = vpop.permute.xlu0 %3418  ;;  %v3367_v60 = vpop.permute.xlu1 %3366 }
0x1254   :  { %v3098_v33 = vpop.xlane.xlu2 %3097  ;;  %3399 = vmatpush.msra.mxu0 %v3367_v60 }
0x1255   :  { %v3103_v28 = vsub.f32 %v6508_v6, %v3098_v33  ;;  %4687 = vmatmul.msk.f32.vlgmr.msra.gmra.mxu0 %vm342_vm4, %v3335_v7  ;;  %v3360_v6 = vand.u32 2147483647, %v3320_v26 }
0x1256   :  { %v6537_v56 = vpop.eup %5062  ;;  %3635 = vmatpush.msrb.mxu0 %v6428_v25  ;;  %v3359_v25 = vsel %vm3358_vm3, %v5061_v32, %v3355_v17 }
0x1257   :  { %v3107_v24 = vmul.f32 1.442695, %v3103_v28  ;;  %v3111_v12 = vsel %vm342_vm4, %v6537_v56, 0.0  ;;  %vm3361_vm5 = vcmp.eq.f32.partialorder %v3360_v6, 8.507059e+37 }
0x1258   :  { %3112 = vadd.xlane.f32.xlu2 %v3111_v12  ;;  %v3364_v16 = vsel %vm3361_vm5, %v3363_v57, %v3359_v25 }
0x1259   :  { %5064 = vpow2.f32 %v3107_v24  ;;  %v3365_v26 = vmul.f32 %v6499_v13, %v3364_v16  ;;  %v3109_v13 = vmul.f32 1.442695, %v3104_v36 }
0x125b   :  { %v6542_v3 = vpop.permute.xlu0 %3416  ;;  %5066 = vpow2.f32 %v3109_v13 }
0x125d   :  { %4688 = vmatmul.msk.f32.gmra.mxu0 %vm342_vm4, %v3350_v8 }
0x125f   :  { %v6546_v9 = vpop.eup %5064 }
0x1260   :  { %v3114_v50 = vsel %vm342_vm4, %v6546_v9, 0.0 }
0x1261   :  { %3115 = vadd.xlane.f32.xlu1 %v3114_v50 }
0x1263   :  { %v6550_v48 = vpop.permute.xlu0 %3656 }
0x1265   :  { %4689 = vmatmul.msk.f32.gmra.mxu0 %vm342_vm4, %v3365_v26 }
0x126b   :  { %v6554_v61 = vpop.permute.xlu0 %3654 }
0x1270   :  { %4854 = vrot.lane.b32.xlu2 %v6277_v30, %s5196_s1  ;;  %v6569_v30 = vpop.eup %5066 }
0x1271   :  { %v3117_v53 = vsel %vm342_vm4, %v6569_v30, 0.0 }
0x1273   :  { %v3861_v32 = vpop.permute.xlu0 %3860 }
0x1274   :  { %4717 = vmatpush.xpose.msk.msra.mxu0 %vm303_vm2, %v3861_v32 }
0x127a   :  { %3420 = vrot.lane.b32.xlu1 %v6406_v22, %s5188_s17 }
0x1282   :  { %3410 = vrot.lane.b32.xlu1 %v6414_v39, %s5189_s21 }
0x128a   :  { %3414 = vrot.lane.b32.xlu1 %v6406_v22, %s5189_s21 }
0x1292   :  { %3652 = vrot.lane.b32.xlu1 %v6414_v39, %s5191_s9 }
0x1299   :  { %3118 = vadd.xlane.f32.xlu2 %v3117_v53 }
0x129a   :  { %3646 = vrot.lane.b32.xlu1 %v6414_v39, %s5192_s22 }
0x12a2   :  { %3850 = vrot.lane.b32.xlu1 %v6414_v39, %s5195_s28 }
0x12b1   :  { %3412 = vrot.lane.b32.xlu2 %v6384_v63, %s5189_s21 }
0x12b9   :  { %3858 = vrot.lane.b32.xlu2 %v6384_v63, %s5194_s26 }
0x12c1   :  { %3648 = vrot.lane.b32.xlu2 %v6384_v63, %s5192_s22 }
0x12cb   :  { %v3113_v49 = vpop.xlane.xlu2 %3112 }
0x12cc   :  { %5068 = vrcp.f32 %v3113_v49  ;;  %v3131_v27 = vand.u32 2147483648, %v3113_v49  ;;  %v3129_v7 = vand.u32 2147483647, %v3113_v49  ;;  %vm3125_vm7 = vweird.f32 %v3113_v49 }
0x12ce   :  { %v3132_v60 = vor.u32 1.1754944e-38, %v3131_v27  ;;  %vm3130_vm9 = vcmp.eq.f32.partialorder %v3129_v7, 8.507059e+37 }
0x12d2   :  { %v5069_v23 = vpop.eup %5068  ;;  %v3401_v42 = vpop.f32.mrf.mxu0 }
0x12d3   :  { %v3121_v41 = vmul.f32 %v5069_v23, %v3113_v49  ;;  %4702 = vmatmul.msk.f32.vlgmr.msrb.gmra.mxu0 %vm303_vm2, %v3401_v42  ;;  %v4855_v54 = vpop.permute.xlu2 %4854  ;;  %vm3126_vm6 = vweird.f32 %v5069_v23 }
0x12d4   :  { %v3116_v20 = vpop.xlane.xlu1 %3115  ;;  %v4856_v29 = vunpack.i.l.bf16 %v4855_v54  ;;  %v4857_v51 = vunpack.i.h.bf16 %v4855_v54  ;;  %vm3127_vm8 = vmor %vm3125_vm7, %vm3126_vm6 }
0x12d5   :  { %v3122_v2 = vsub.f32 1.0, %v3121_v41  ;;  %5070 = vrcp.f32 %v3116_v20  ;;  %v3146_v11 = vand.u32 2147483648, %v3116_v20  ;;  %v3144_v15 = vand.u32 2147483647, %v3116_v20 }
0x12d6   :  { %3196 = vmatpush.msrb.mxu3 %v4856_v29  ;;  %vm3140_vm11 = vweird.f32 %v3116_v20 }
0x12d7   :  { %v3123_v47 = vmul.f32 %v5069_v23, %v3122_v2  ;;  %v3147_v8 = vor.u32 1.1754944e-38, %v3146_v11  ;;  %vm3145_vm13 = vcmp.eq.f32.partialorder %v3144_v15, 8.507059e+37  ;;  %v3857_v2 = vpop.permute.xlu0 %3856 }
0x12d8   :  { %3197 = vmatpush.msrb.mxu3 %v4857_v51  ;;  %v6611_v51 = vld [vmem:[%s6981_s8 + $0x18] sm:$0xff] }
0x12d9   :  { %v3124_v4 = vadd.f32 %v5069_v23, %v3123_v47  ;;  %3233 = vmatpush.msra.mxu1 %v6611_v51 }
0x12da   :  { %3198 = vmatpush.msrb.mxu3 %v6530_v1  ;;  %v3404_v33 = vpop.f32.mrf.mxu0 }
0x12db   :  { %v5071_v14 = vpop.eup %5070  ;;  %v3128_v28 = vsel %vm3127_vm8, %v5069_v23, %v3124_v4  ;;  %4703 = vmatmul.msk.f32.gmra.mxu0 %vm303_vm2, %v3404_v33 }
0x12dc   :  { %v3133_v59 = vsel %vm3130_vm9, %v3132_v60, %v3128_v28  ;;  %v3136_v21 = vmul.f32 %v5071_v14, %v3116_v20  ;;  %vm3141_vm10 = vweird.f32 %v5071_v14 }
0x12dd   :  { %v3134_v24 = vmul.f32 %v6537_v56, %v3133_v59  ;;  %vm3142_vm12 = vmor %vm3140_vm11, %vm3141_vm10 }
0x12de   :  { %v3137_v12 = vsub.f32 1.0, %v3136_v21 }
0x12df   :  { %4675 = vmatmul.msk.f32.vlgmr.msrb.gmra.mxu3 %vm342_vm4, %v3134_v24  ;;  %v3651_v47 = vpop.permute.xlu0 %3650 }
0x12e0   :  { %v3138_v17 = vmul.f32 %v5071_v14, %v3137_v12 }
0x12e2   :  { %v3139_v6 = vadd.f32 %v5071_v14, %v3138_v17  ;;  %v3407_v1 = vpop.f32.mrf.mxu0 }
0x12e3   :  { %4704 = vmatmul.msk.f32.gmra.mxu0 %vm303_vm2, %v3407_v1 }
0x12e4   :  { %v3143_v25 = vsel %vm3142_vm12, %v5071_v14, %v3139_v6 }
0x12e5   :  { %v3148_v57 = vsel %vm3145_vm13, %v3147_v8, %v3143_v25 }
0x12e6   :  { %v3149_v50 = vmul.f32 %v6546_v9, %v3148_v57 }
0x12e8   :  { %4676 = vmatmul.msk.f32.gmra.mxu3 %vm342_vm4, %v3149_v50 }
0x12ec   :  { %v3421_v56 = vpop.permute.xlu1 %3420 }
0x12ed   :  { %4690 = vmatpush.xpose.msk.msra.mxu3 %vm303_vm2, %v3421_v56 }
0x12f1   :  { %4691 = vmatpush.xpose.msk.msra.mxu3 %vm303_vm2, %v6533_v40 }
0x12f4   :  { %v3411_v16 = vpop.permute.xlu1 %3410 }
0x12f5   :  { %4692 = vmatpush.xpose.msk.msra.mxu3 %vm303_vm2, %v6542_v3 }
0x12f9   :  { %4705 = vmatpush.xpose.msk.msrb.mxu3 %vm303_vm2, %v6550_v48 }
0x12fc   :  { %v3415_v26 = vpop.permute.xlu1 %3414 }
0x12fd   :  { %4706 = vmatpush.xpose.msk.msrb.mxu3 %vm303_vm2, %v6554_v61 }
0x1304   :  { %v3653_v9 = vpop.permute.xlu1 %3652 }
0x1305   :  { %4707 = vmatpush.xpose.msk.msrb.mxu3 %vm303_vm2, %v3653_v9 }
0x130c   :  { %v3119_v32 = vpop.xlane.xlu2 %3118  ;;  %v3647_v42 = vpop.permute.xlu1 %3646 }
0x130d   :  { %5072 = vrcp.f32 %v3119_v32  ;;  %v3161_v49 = vand.u32 2147483648, %v3119_v32  ;;  %v3159_v3 = vand.u32 2147483647, %v3119_v32  ;;  %vm3155_vm15 = vweird.f32 %v3119_v32 }
0x130f   :  { %v3162_v48 = vor.u32 1.1754944e-38, %v3161_v49  ;;  %vm3160_vm5 = vcmp.eq.f32.partialorder %v3159_v3, 8.507059e+37 }
0x1313   :  { %v5073_v36 = vpop.eup %5072 }
0x1314   :  { %v3151_v13 = vmul.f32 %v5073_v36, %v3119_v32  ;;  %v3413_v53 = vpop.permute.xlu2 %3412  ;;  %vm3156_vm14 = vweird.f32 %v5073_v36  ;;  %v3851_v27 = vpop.permute.xlu1 %3850 }
0x1315   :  { %vm3157_vm3 = vmor %vm3155_vm15, %vm3156_vm14 }
0x1316   :  { %v3152_v40 = vsub.f32 1.0, %v3151_v13  ;;  %v2834_v13 = vadd.f32 %v6482_v0, %v6453_v34 }
0x1318   :  { %v3153_v23 = vmul.f32 %v5073_v36, %v3152_v40 }
0x131a   :  { %v3154_v41 = vadd.f32 %v5073_v36, %v3153_v23 }
0x131c   :  { %v3859_v61 = vpop.permute.xlu2 %3858  ;;  %v3158_v54 = vsel %vm3157_vm3, %v5073_v36, %v3154_v41 }
0x131d   :  { %4718 = vmatpush.xpose.msk.msra.mxu0 %vm303_vm2, %v3859_v61  ;;  %v3163_v20 = vsel %vm3160_vm5, %v3162_v48, %v3158_v54 }
0x131e   :  { %v3164_v29 = vmul.f32 %v6569_v30, %v3163_v20 }
0x1320   :  { %4677 = vmatmul.msk.f32.gmra.mxu3 %vm342_vm4, %v3164_v29 }
0x1321   :  { %4719 = vmatpush.xpose.msk.msra.mxu0 %vm303_vm2, %v3857_v2 }
0x1324   :  { %4720 = vmatmul.msk.f32.vlgmr.msra.gmra.mxu0 %vm303_vm2, %v3851_v27  ;;  %v3649_v30 = vpop.permute.xlu2 %3648 }
0x1328   :  { %4693 = vmatmul.msk.f32.vlgmr.msra.gmra.mxu3 %vm303_vm2, %v3411_v16 }
0x1330   :  { %4694 = vmatmul.msk.f32.gmra.mxu3 %vm303_vm2, %v3413_v53  ;;  %v3041_v53 = vadd.f32 %v6460_v5, %v2834_v13 }
0x1338   :  { %4695 = vmatmul.msk.f32.gmra.mxu3 %vm303_vm2, %v3415_v26  ;;  %v2831_v26 = vadd.f32 %v6480_v46, %v6451_v31 }
0x133a   :  { %v3040_v9 = vadd.f32 %v6457_v35, %v2831_v26 }
0x1340   :  { %4708 = vmatmul.msk.f32.vlgmr.msrb.gmra.mxu3 %vm303_vm2, %v3647_v42 }
0x1348   :  { %4709 = vmatmul.msk.f32.gmra.mxu3 %vm303_vm2, %v3649_v30 }
0x1350   :  { %4710 = vmatmul.msk.f32.gmra.mxu3 %vm303_vm2, %v3651_v47  ;;  %v6618_v60 = vpop.f32.mrf.mxu0 }
0x1358   :  { %v6621_v14 = vpop.f32.mrf.mxu0 }
0x1360   :  { %v6625_v24 = vpop.f32.mrf.mxu0 }
0x1362   :  { %v3200_v7 = vpop.f32.mrf.mxu3 }
0x1363   :  { %4678 = vmatmul.msk.f32.vlgmr.msra.gmra.mxu1 %vm303_vm2, %v3200_v7 }
0x136b   :  { %v3203_v4 = vpop.f32.mrf.mxu3 }
0x136c   :  { %4679 = vmatmul.msk.f32.gmra.mxu1 %vm303_vm2, %v3203_v4 }
0x13a1   :  { %v3891_v15 = vpop.f32.mrf.mxu0 }
0x13a2   :  { %v3892_v6 = vadd.f32 %v3891_v15, %v5427_v37 }
0x13a3   :  { %v3206_v33 = vpop.f32.mrf.mxu3 }
0x13a4   :  { %4680 = vmatmul.msk.f32.gmra.mxu1 %vm303_vm2, %v3206_v33  ;;  %v3900_v57 = vsel %vm342_vm4, %v3892_v6, -inf }
0x13ab   :  { %v3451_v28 = vpop.f32.mrf.mxu3 }
0x13ac   :  { %v3452_v59 = vadd.f32 %v3451_v28, %v5427_v37 }
0x13ae   :  { %v3460_v21 = vsel %vm342_vm4, %v3452_v59, -inf }
0x13af   :  { %3461 = vmax.xlane.f32.xlu1 %v3460_v21 }
0x13b3   :  { %v3454_v12 = vpop.f32.mrf.mxu3 }
0x13b4   :  { %v3455_v11 = vadd.f32 %v3454_v12, %v5427_v37 }
0x13b6   :  { %v3463_v17 = vsel %vm342_vm4, %v3455_v11, -inf }
0x13b7   :  { %3464 = vmax.xlane.f32.xlu2 %v3463_v17 }
0x13bb   :  { %v3457_v1 = vpop.f32.mrf.mxu3 }
0x13bc   :  { %v3458_v8 = vadd.f32 %v3457_v1, %v5427_v37 }
0x13be   :  { %v3466_v25 = vsel %vm342_vm4, %v3458_v8, -inf }
0x13bf   :  { %3467 = vmax.xlane.f32.xlu0 %v3466_v25  ;;  %3901 = vmax.xlane.f32.xlu2 %v3900_v57 }
0x13c3   :  { %v3687_v50 = vpop.f32.mrf.mxu3 }
0x13c4   :  { %v3688_v56 = vadd.f32 %v3687_v50, %v5427_v37 }
0x13c6   :  { %v3696_v16 = vsel %vm342_vm4, %v3688_v56, -inf }
0x13c7   :  { %3697 = vmax.xlane.f32.xlu1 %v3696_v16 }
0x13cb   :  { %v3690_v31 = vpop.f32.mrf.mxu3 }
0x13cc   :  { %v3691_v46 = vadd.f32 %v3690_v31, %v5427_v37 }
0x13ce   :  { %v3699_v23 = vsel %vm342_vm4, %v3691_v46, -inf }
0x13d3   :  { %v3693_v25 = vpop.f32.mrf.mxu3 }
0x13d4   :  { %v6684_v50 = vadd.f32 %v3693_v25, %v5427_v37 }
0x13d7   :  { %4859 = vrot.lane.b32.xlu2 %v6476_v10, %s5190_s5 }
0x13df   :  { %4864 = vrot.lane.b32.xlu2 %v6476_v10, %s5193_s23 }
0x13e0   :  { %v3235_v32 = vpop.f32.mrf.mxu1 }
0x13e1   :  { %v6642_v36 = vadd.f32 %v3235_v32, %v3040_v9 }
0x13e7   :  { %3768 = vrot.lane.b32.xlu2 %v6414_v39, %s5193_s23 }
0x13e9   :  { %v3238_v40 = vpop.f32.mrf.mxu1 }
0x13ea   :  { %v6649_v49 = vadd.f32 %v3238_v40, %v3041_v53 }
0x1410   :  { %3700 = vmax.xlane.f32.xlu2 %v3699_v23 }
0x1422   :  { %v3462_v35 = vpop.xlane.xlu1 %3461 }
0x1423   :  { %v3469_v3 = vsub.f32 %v3452_v59, %v3462_v35 }
0x1425   :  { %v3472_v42 = vmul.f32 1.442695, %v3469_v3 }
0x1427   :  { %5074 = vpow2.f32 %v3472_v42 }
0x142a   :  { %v3465_v41 = vpop.xlane.xlu2 %3464 }
0x142b   :  { %v3470_v34 = vsub.f32 %v3455_v11, %v3465_v41 }
0x142d   :  { %v6653_v0 = vpop.eup %5074  ;;  %v3474_v48 = vmul.f32 1.442695, %v3470_v34 }
0x142e   :  { %v3478_v5 = vsel %vm342_vm4, %v6653_v0, 0.0 }
0x142f   :  { %5076 = vpow2.f32 %v3474_v48  ;;  %3479 = vadd.xlane.f32.xlu0 %v3478_v5  ;;  %v2837_v5 = vadd.f32 %v6484_v45, %v6455_v52 }
0x1432   :  { %v3468_v61 = vpop.xlane.xlu0 %3467  ;;  %v3902_v54 = vpop.xlane.xlu2 %3901 }
0x1433   :  { %v3471_v20 = vsub.f32 %v3458_v8, %v3468_v61  ;;  %v3909_v28 = vsub.f32 %v3892_v6, %v3902_v54 }
0x1435   :  { %v6657_v29 = vpop.eup %5076  ;;  %v3476_v2 = vmul.f32 1.442695, %v3471_v20  ;;  %v3912_v11 = vmul.f32 1.442695, %v3909_v28 }
0x1436   :  { %v3481_v27 = vsel %vm342_vm4, %v6657_v29, 0.0 }
0x1437   :  { %5078 = vpow2.f32 %v3476_v2  ;;  %3482 = vadd.xlane.f32.xlu1 %v3481_v27  ;;  %v3241_v27 = vpop.f32.mrf.mxu1 }
0x143a   :  { %v4860_v30 = vpop.permute.xlu2 %4859  ;;  %v3698_v47 = vpop.xlane.xlu1 %3697 }
0x143b   :  { %v4861_v7 = vunpack.i.l.bf16 %v4860_v30  ;;  %v3705_v4 = vsub.f32 %v3688_v56, %v3698_v47  ;;  %v4862_v59 = vunpack.i.h.bf16 %v4860_v30  ;;  %v3702_v56 = vsel %vm342_vm4, %v6684_v50, -inf }
0x143c   :  { %v3042_v30 = vadd.f32 %v6463_v38, %v2837_v5 }
0x143d   :  { %v6661_v33 = vpop.eup %5078  ;;  %v3708_v21 = vmul.f32 1.442695, %v3705_v4  ;;  %3563 = vmatpush.msrb.mxu1 %v4861_v7 }
0x143e   :  { %v3484_v12 = vsel %vm342_vm4, %v6661_v33, 0.0  ;;  %v3246_v52 = vadd.f32 %v3241_v27, %v3042_v30 }
0x143f   :  { %5080 = vpow2.f32 %v3708_v21  ;;  %3564 = vmatpush.msrb.mxu1 %v4862_v59  ;;  %3485 = vadd.xlane.f32.xlu0 %v3484_v12 }
0x1440   :  { %5082 = vpow2.f32 %v3912_v11 }
0x1442   :  { %v6679_v8 = vpop.permute.xlu2 %4864 }
0x1445   :  { %v6665_v17 = vpop.eup %5080 }
0x1446   :  { %v3714_v15 = vsel %vm342_vm4, %v6665_v17, 0.0  ;;  %v6669_v1 = vpop.eup %5082 }
0x1447   :  { %3715 = vadd.xlane.f32.xlu0 %v3714_v15  ;;  %v3918_v6 = vsel %vm342_vm4, %v6669_v1, 0.0  ;;  %v6715_v15 = vld [vmem:[%s6982_s14] ss:$0 sm:$0xff] }
0x144a   :  { %v6681_v57 = vpop.permute.xlu2 %3768 }
0x144f   :  { %3919 = vadd.xlane.f32.xlu0 %v3918_v6  ;;  %v4866_v6 = vunpack.i.l.bf16 %v6679_v8 }
0x1450   :  { %3532 = vrot.lane.b32.xlu1 %v6414_v39, %s5190_s5 }
0x1458   :  { %3972 = vrot.lane.b32.xlu1 %v6414_v39, %s5196_s1 }
0x1463   :  { %4869 = vrot.lane.b32.xlu0 %v6476_v10, %s5196_s1 }
0x1482   :  { %3703 = vmax.xlane.f32.xlu1 %v3702_v56  ;;  %v4059_v56 = vadd.f32 %v6715_v15, %v3246_v52 }
0x1483   :  { %v3701_v16 = vpop.xlane.xlu2 %3700 }
0x1484   :  { %v3706_v26 = vsub.f32 %v3691_v46, %v3701_v16  ;;  %v4867_v16 = vunpack.i.h.bf16 %v6679_v8 }
0x1486   :  { %v3710_v9 = vmul.f32 1.442695, %v3706_v26 }
0x1488   :  { %5084 = vpow2.f32 %v3710_v9 }
0x148e   :  { %v6688_v39 = vpop.eup %5084 }
0x148f   :  { %v3717_v10 = vsel %vm342_vm4, %v6688_v39, 0.0 }
0x1490   :  { %3718 = vadd.xlane.f32.xlu0 %v3717_v10 }
0x149b   :  { %3852 = vrot.lane.b32.xlu1 %v6384_v63, %s5195_s28 }
0x14a2   :  { %v3480_v32 = vpop.xlane.xlu0 %3479 }
0x14a3   :  { %5086 = vrcp.f32 %v3480_v32  ;;  %v3498_v34 = vand.u32 2147483648, %v3480_v32  ;;  %vm3492_vm7 = vweird.f32 %v3480_v32 }
0x14a4   :  { %3854 = vrot.lane.b32.xlu0 %v6406_v22, %s5195_s28  ;;  %v3496_v22 = vand.u32 2147483647, %v3480_v32 }
0x14a5   :  { %v3499_v2 = vor.u32 1.1754944e-38, %v3498_v34 }
0x14a6   :  { %vm3497_vm9 = vcmp.eq.f32.partialorder %v3496_v22, 8.507059e+37 }
0x14a9   :  { %v5087_v13 = vpop.eup %5086 }
0x14aa   :  { %v3483_v53 = vpop.xlane.xlu1 %3482  ;;  %v3488_v40 = vmul.f32 %v5087_v13, %v3480_v32  ;;  %vm3493_vm6 = vweird.f32 %v5087_v13 }
0x14ab   :  { %5088 = vrcp.f32 %v3483_v53  ;;  %vm3494_vm8 = vmor %vm3492_vm7, %vm3493_vm6  ;;  %v3513_v45 = vand.u32 2147483648, %v3483_v53  ;;  %vm3507_vm11 = vweird.f32 %v3483_v53  ;;  %v3511_v21 = vand.u32 2147483647, %v3483_v53 }
0x14ac   :  { %v3489_v31 = vsub.f32 1.0, %v3488_v40  ;;  %v6730_v40 = vadd.f32 %v4059_v56, %v6136_v44 }
0x14ad   :  { %v3514_v26 = vor.u32 1.1754944e-38, %v3513_v45  ;;  %vm3512_vm13 = vcmp.eq.f32.partialorder %v3511_v21, 8.507059e+37 }
0x14ae   :  { %v3490_v35 = vmul.f32 %v5087_v13, %v3489_v31 }
0x14b0   :  { %v3491_v42 = vadd.f32 %v5087_v13, %v3490_v35 }
0x14b1   :  { %v5089_v46 = vpop.eup %5088 }
0x14b2   :  { %v6696_v23 = vpop.xlane.xlu0 %3485  ;;  %v3503_v3 = vmul.f32 %v5089_v46, %v3483_v53  ;;  %v3495_v61 = vsel %vm3494_vm8, %v5087_v13, %v3491_v42  ;;  %vm3508_vm10 = vweird.f32 %v5089_v46  ;;  %v4075_v42 = vsel %vm240_vm1, %v6730_v40, 0.0 }
0x14b3   :  { %5090 = vrcp.f32 %v6696_v23  ;;  %v3500_v47 = vsel %vm3497_vm9, %v3499_v2, %v3495_v61  ;;  %vm3509_vm12 = vmor %vm3507_vm11, %vm3508_vm10  ;;  %v3528_v53 = vand.u32 2147483648, %v6696_v23  ;;  %vm3522_vm15 = vweird.f32 %v6696_v23 }
0x14b4   :  { %v3504_v63 = vsub.f32 1.0, %v3503_v3  ;;  %v3501_v59 = vmul.f32 %v6653_v0, %v3500_v47  ;;  %v3526_v8 = vand.u32 2147483647, %v6696_v23 }
0x14b5   :  { %v3529_v44 = vor.u32 1.1754944e-38, %v3528_v53 }
0x14b6   :  { %v3505_v54 = vmul.f32 %v5089_v46, %v3504_v63  ;;  %vm3527_vm5 = vcmp.eq.f32.partialorder %v3526_v8, 8.507059e+37 }
0x14b8   :  { %v3506_v7 = vadd.f32 %v5089_v46, %v3505_v54 }
0x14b9   :  { %v6699_v41 = vpop.eup %5090 }
0x14ba   :  { %v6701_v48 = vpop.xlane.xlu0 %3715  ;;  %v3518_v20 = vmul.f32 %v6699_v41, %v6696_v23  ;;  %v3510_v0 = vsel %vm3509_vm12, %v5089_v46, %v3506_v7  ;;  %vm3523_vm14 = vweird.f32 %v6699_v41 }
0x14bb   :  { %5092 = vrcp.f32 %v6701_v48  ;;  %v3515_v9 = vsel %vm3512_vm13, %v3514_v26, %v3510_v0  ;;  %vm3524_vm3 = vmor %vm3522_vm15, %vm3523_vm14  ;;  %vm3728_vm8 = vweird.f32 %v6701_v48 }
0x14bc   :  { %v3519_v4 = vsub.f32 1.0, %v3518_v20  ;;  %v3516_v46 = vmul.f32 %v6657_v29, %v3515_v9 }
0x14be   :  { %v3520_v38 = vmul.f32 %v6699_v41, %v3519_v4 }
0x14c0   :  { %v3521_v10 = vadd.f32 %v6699_v41, %v3520_v38  ;;  %v4058_v38 = vadd.f32 %v6715_v15, %v6649_v49 }
0x14c1   :  { %v6709_v28 = vpop.eup %5092 }
0x14c2   :  { %v6712_v12 = vpop.xlane.xlu0 %3919  ;;  %v3533_v11 = vpop.permute.xlu1 %3532  ;;  %v3724_v25 = vmul.f32 %v6709_v28, %v6701_v48  ;;  %vm3729_vm6 = vweird.f32 %v6709_v28 }
0x14c3   :  { %5094 = vrcp.f32 %v6712_v12  ;;  %3565 = vmatpush.msrb.mxu1 %v3533_v11  ;;  %v3938_v22 = vand.u32 2147483648, %v6712_v12  ;;  %vm3730_vm9 = vmor %vm3728_vm8, %vm3729_vm6  ;;  %vm3932_vm10 = vweird.f32 %v6712_v12  ;;  %v3936_v61 = vand.u32 2147483647, %v6712_v12 }
0x14c4   :  { %4696 = vmatmul.msk.f32.vlgmr.msrb.gmra.mxu1 %vm342_vm4, %v3501_v59  ;;  %v3725_v32 = vsub.f32 1.0, %v3724_v25  ;;  %v4057_v11 = vadd.f32 %v6715_v15, %v6642_v36  ;;  %v6769_v36 = vadd.f32 %v4058_v38, %v6129_v55 }
0x14c5   :  { %3799 = vmatpush.msra.mxu1 %v4866_v6  ;;  %v3939_v30 = vor.u32 1.1754944e-38, %v3938_v22  ;;  %vm3937_vm13 = vcmp.eq.f32.partialorder %v3936_v61, 8.507059e+37 }
0x14c6   :  { %v3726_v35 = vmul.f32 %v6709_v28, %v3725_v32  ;;  %v4072_v49 = vsel %vm240_vm1, %v6769_v36, 0.0 }
0x14c7   :  { %3800 = vmatpush.msra.mxu1 %v4867_v16 }
0x14c8   :  { %v3727_v29 = vadd.f32 %v6709_v28, %v3726_v35 }
0x14c9   :  { %v5095_v13 = vpop.eup %5094  ;;  %3801 = vmatpush.msra.mxu1 %v6681_v57  ;;  %v3525_v57 = vsel %vm3524_vm3, %v6699_v41, %v3521_v10  ;;  %v3732_v41 = vand.u32 2147483647, %v6701_v48 }
0x14ca   :  { %v3928_v31 = vmul.f32 %v5095_v13, %v6712_v12  ;;  %v3530_v63 = vsel %vm3527_vm5, %v3529_v44, %v3525_v57  ;;  %vm3933_vm7 = vweird.f32 %v5095_v13  ;;  %v3731_v54 = vsel %vm3730_vm9, %v6709_v28, %v3727_v29  ;;  %v3973_v28 = vpop.permute.xlu1 %3972 }
0x14cb   :  { %4040 = vmatpush.msrb.mxu1 %v6611_v51  ;;  %v3734_v51 = vand.u32 2147483648, %v6701_v48  ;;  %v3531_v5 = vmul.f32 %v6661_v33, %v3530_v63  ;;  %vm3934_vm11 = vmor %vm3932_vm10, %vm3933_vm7  ;;  %vm3733_vm12 = vcmp.eq.f32.partialorder %v3732_v41, 8.507059e+37 }
0x14cc   :  { %v3929_v3 = vsub.f32 1.0, %v3928_v31  ;;  %4697 = vmatmul.msk.f32.gmra.mxu1 %vm342_vm4, %v3516_v46 }
0x14cd   :  { %v3735_v20 = vor.u32 1.1754944e-38, %v3734_v51 }
0x14ce   :  { %v3930_v23 = vmul.f32 %v5095_v13, %v3929_v3  ;;  %4076 = vadd.xlane.f32.xlu0 %v4075_v42 }
0x14cf   :  { %v3736_v47 = vsel %vm3733_vm12, %v3735_v20, %v3731_v54 }
0x14d0   :  { %v3931_v34 = vadd.f32 %v5095_v13, %v3930_v23  ;;  %v3737_v4 = vmul.f32 %v6665_v17, %v3736_v47 }
0x14d2   :  { %v3935_v2 = vsel %vm3934_vm11, %v5095_v13, %v3931_v34 }
0x14d3   :  { %v3940_v7 = vsel %vm3937_vm13, %v3939_v30, %v3935_v2 }
0x14d4   :  { %4698 = vmatmul.msk.f32.gmra.mxu1 %vm342_vm4, %v3531_v5  ;;  %v3941_v52 = vmul.f32 %v6669_v1, %v3940_v7  ;;  %v6762_v1 = vadd.f32 %v4057_v11, %v6122_v62 }
0x14d5   :  { %v4870_v27 = vpop.permute.xlu0 %4869 }
0x14d6   :  { %v4871_v48 = vunpack.i.l.bf16 %v4870_v27  ;;  %v4872_v33 = vunpack.i.h.bf16 %v4870_v27 }
0x14d8   :  { %4003 = vmatpush.msra.mxu3 %v4871_v48 }
0x14da   :  { %4004 = vmatpush.msra.mxu3 %v4872_v33 }
0x14dc   :  { %4711 = vmatmul.msk.f32.vlgmr.msra.gmra.mxu1 %vm342_vm4, %v3737_v4  ;;  %4005 = vmatpush.msra.mxu3 %v3973_v28 }
0x14dd   :  { %4723 = vmatmul.msk.f32.vlgmr.msra.gmra.mxu3 %vm342_vm4, %v3941_v52 }
0x14f5   :  { %v3704_v45 = vpop.xlane.xlu1 %3703 }
0x14f6   :  { %v3707_v59 = vsub.f32 %v6684_v50, %v3704_v45  ;;  %v4069_v50 = vsel %vm240_vm1, %v6762_v1, 0.0 }
0x14f8   :  { %v3712_v21 = vmul.f32 1.442695, %v3707_v59 }
0x14fa   :  { %5096 = vpow2.f32 %v3712_v21 }
0x1500   :  { %v5097_v12 = vpop.eup %5096 }
0x1501   :  { %v3720_v17 = vsel %vm342_vm4, %v5097_v12, 0.0 }
0x1502   :  { %3721 = vadd.xlane.f32.xlu2 %v3720_v17 }
0x1503   :  { %v3719_v6 = vpop.xlane.xlu0 %3718 }
0x1504   :  { %5098 = vrcp.f32 %v3719_v6  ;;  %v3749_v26 = vand.u32 2147483648, %v3719_v6  ;;  %v3747_v62 = vand.u32 2147483647, %v3719_v6  ;;  %vm3743_vm15 = vweird.f32 %v3719_v6 }
0x1506   :  { %v3750_v32 = vor.u32 1.1754944e-38, %v3749_v26  ;;  %vm3748_vm5 = vcmp.eq.f32.partialorder %v3747_v62, 8.507059e+37 }
0x150a   :  { %v5099_v25 = vpop.eup %5098  ;;  %4070 = vadd.xlane.f32.xlu2 %v4069_v50 }
0x150b   :  { %v3739_v0 = vmul.f32 %v5099_v25, %v3719_v6  ;;  %vm3744_vm14 = vweird.f32 %v5099_v25 }
0x150c   :  { %vm3745_vm3 = vmor %vm3743_vm15, %vm3744_vm14 }
0x150d   :  { %v3740_v56 = vsub.f32 1.0, %v3739_v0  ;;  %v3853_v16 = vpop.permute.xlu1 %3852 }
0x150e   :  { %4721 = vmatmul.msk.f32.gmra.mxu0 %vm303_vm2, %v3853_v16 }
0x150f   :  { %v3741_v9 = vmul.f32 %v5099_v25, %v3740_v56 }
0x1511   :  { %v3742_v10 = vadd.f32 %v5099_v25, %v3741_v9 }
0x1512   :  { %4073 = vadd.xlane.f32.xlu2 %v4072_v49 }
0x1513   :  { %v3746_v13 = vsel %vm3745_vm3, %v5099_v25, %v3742_v10 }
0x1514   :  { %v3751_v53 = vsel %vm3748_vm5, %v3750_v32, %v3746_v13 }
0x1515   :  { %v3752_v55 = vmul.f32 %v6688_v39, %v3751_v53 }
0x1516   :  { %v3855_v8 = vpop.permute.xlu0 %3854 }
0x1517   :  { %4712 = vmatmul.msk.f32.gmra.mxu1 %vm342_vm4, %v3752_v55  ;;  %4722 = vmatmul.msk.f32.gmra.mxu0 %vm303_vm2, %v3855_v8 }
0x1541   :  { %v3567_v31 = vpop.f32.mrf.mxu1  ;;  %v4077_v10 = vpop.xlane.xlu0 %4076 }
0x1542   :  { %4699 = vmatmul.msk.f32.vlgmr.msrb.gmra.mxu2 %vm303_vm2, %v3567_v31  ;;  %v4089_v49 = vmul.f32 %v4077_v10, %v5884_v58 }
0x1544   :  { %v6816_v55 = vsub.f32 %v6730_v40, %v4089_v49 }
0x1546   :  { %v4101_v31 = vmul.f32 %v6816_v55, %v6816_v55 }
0x1549   :  { %v3570_v46 = vpop.f32.mrf.mxu1 }
0x154a   :  { %4700 = vmatmul.msk.f32.gmra.mxu2 %vm303_vm2, %v3570_v46  ;;  %v4111_v46 = vsel %vm240_vm1, %v4101_v31, 0.0 }
0x1551   :  { %v3573_v35 = vpop.f32.mrf.mxu1 }
0x1552   :  { %4701 = vmatmul.msk.f32.gmra.mxu2 %vm303_vm2, %v3573_v35 }
0x1559   :  { %v3803_v3 = vpop.f32.mrf.mxu1 }
0x155a   :  { %4714 = vmatmul.msk.f32.vlgmr.msra.gmra.mxu2 %vm303_vm2, %v3803_v3 }
0x1560   :  { %v4007_v2 = vpop.f32.mrf.mxu3 }
0x1575   :  { %v3722_v57 = vpop.xlane.xlu2 %3721 }
0x1576   :  { %5100 = vrcp.f32 %v3722_v57  ;;  %v3764_v23 = vand.u32 2147483648, %v3722_v57  ;;  %v3762_v29 = vand.u32 2147483647, %v3722_v57  ;;  %vm3758_vm7 = vweird.f32 %v3722_v57 }
0x1578   :  { %v3765_v34 = vor.u32 1.1754944e-38, %v3764_v23  ;;  %vm3763_vm9 = vcmp.eq.f32.partialorder %v3762_v29, 8.507059e+37  ;;  %v2369_v23 = vld [vmem:[%s6983_s19 + $0x8] sm:$0xff]  ;;  %v2368_v29 = vld [vmem:[%s6983_s19] sm:$0xff] }
0x157c   :  { %v5101_v39 = vpop.eup %5100 }
0x157d   :  { %v3754_v44 = vmul.f32 %v5101_v39, %v3722_v57  ;;  %vm3759_vm6 = vweird.f32 %v5101_v39  ;;  %v4071_v21 = vpop.xlane.xlu2 %4070  ;;  %v2371_v57 = vld [vmem:[%s6983_s19 + $0x18] sm:$0xff] }
0x157e   :  { %vm3760_vm8 = vmor %vm3758_vm7, %vm3759_vm6  ;;  %v4087_v38 = vmul.f32 %v4071_v21, %v5884_v58  ;;  %4252 = vmatpush.msrb.mxu2 %v2371_v57 }
0x157f   :  { %v3755_v42 = vsub.f32 1.0, %v3754_v44  ;;  %v2370_v44 = vld [vmem:[%s6983_s19 + $0x10] sm:$0xff] }
0x1580   :  { %v6798_v0 = vsub.f32 %v6762_v1, %v4087_v38  ;;  %4253 = vmatpush.msrb.mxu2 %v2370_v44 }
0x1581   :  { %v3756_v63 = vmul.f32 %v5101_v39, %v3755_v42 }
0x1582   :  { %v4099_v62 = vmul.f32 %v6798_v0, %v6798_v0  ;;  %4254 = vmatpush.msrb.mxu2 %v2369_v23 }
0x1583   :  { %v3757_v51 = vadd.f32 %v5101_v39, %v3756_v63 }
0x1584   :  { %v4105_v1 = vsel %vm240_vm1, %v4099_v62, 0.0  ;;  %4255 = vmatpush.msrb.mxu2 %v2368_v29 }
0x1585   :  { %v3761_v41 = vsel %vm3760_vm8, %v5101_v39, %v3757_v51  ;;  %v4074_v16 = vpop.xlane.xlu2 %4073 }
0x1586   :  { %v3766_v22 = vsel %vm3763_vm9, %v3765_v34, %v3761_v41  ;;  %v4088_v9 = vmul.f32 %v4074_v16, %v5884_v58 }
0x1587   :  { %v3767_v5 = vmul.f32 %v5097_v12, %v3766_v22 }
0x1589   :  { %4713 = vmatmul.msk.f32.gmra.mxu1 %vm342_vm4, %v3767_v5 }
0x158b   :  { %v3894_v61 = vpop.f32.mrf.mxu0 }
0x158c   :  { %v3895_v54 = vadd.f32 %v3894_v61, %v5427_v37 }
0x158e   :  { %v3903_v20 = vsel %vm342_vm4, %v3895_v54, -inf }
0x158f   :  { %3904 = vmax.xlane.f32.xlu2 %v3903_v20 }
0x1591   :  { %4726 = vmatmul.msk.f32.vlgmr.msrb.gmra.mxu1 %vm303_vm2, %v4007_v2 }
0x1594   :  { %v3806_v27 = vpop.f32.mrf.mxu1  ;;  %v3897_v30 = vpop.f32.mrf.mxu0 }
0x1595   :  { %v3898_v48 = vadd.f32 %v3897_v30, %v5427_v37  ;;  %4715 = vmatmul.msk.f32.gmra.mxu2 %vm303_vm2, %v3806_v27 }
0x1597   :  { %v3906_v47 = vsel %vm342_vm4, %v3898_v48, -inf }
0x1598   :  { %3907 = vmax.xlane.f32.xlu1 %v3906_v47 }
0x15c5   :  { %v3602_v7 = vpop.f32.mrf.mxu2 }
0x15c6   :  { %v3638_v45 = vadd.f32 %v6618_v60, %v3602_v7 }
0x15cd   :  { %v6788_v33 = vpop.f32.mrf.mxu2 }
0x15d5   :  { %v6790_v4 = vpop.f32.mrf.mxu2 }
0x15dd   :  { %v3838_v28 = vpop.f32.mrf.mxu2 }
0x15de   :  { %v3847_v37 = vadd.f32 %v3838_v28, %v3638_v45 }
0x1602   :  { %v3905_v32 = vpop.xlane.xlu2 %3904 }
0x1603   :  { %v3910_v53 = vsub.f32 %v3895_v54, %v3905_v32 }
0x1606   :  { %v3809_v52 = vpop.f32.mrf.mxu1 }
0x1607   :  { %4716 = vmatmul.msk.f32.gmra.mxu2 %vm303_vm2, %v3809_v52 }
0x160b   :  { %v3908_v59 = vpop.xlane.xlu1 %3907 }
0x160c   :  { %v3911_v12 = vsub.f32 %v3898_v48, %v3908_v59 }
0x160e   :  { %v3916_v11 = vmul.f32 1.442695, %v3911_v12  ;;  %v4042_v17 = vpop.f32.mrf.mxu1  ;;  %v6843_v12 = vld [vmem:[%s6984_s24] ss:$0 sm:$0xff] }
0x160f   :  { %v4051_v6 = vadd.f32 %v4042_v17, %v3847_v37  ;;  %v6846_v17 = vld [vmem:[%s6985_s30] ss:$0 sm:$0xff] }
0x1610   :  { %5102 = vpow2.f32 %v3916_v11 }
0x1611   :  { %v4060_v50 = vadd.f32 %v6715_v15, %v4051_v6 }
0x1613   :  { %v4066_v25 = vadd.f32 %v4060_v50, %v6328_v19  ;;  %v6809_v19 = vsub.f32 %v6769_v36, %v4088_v9  ;;  %v3914_v36 = vmul.f32 1.442695, %v3910_v53 }
0x1615   :  { %v4078_v56 = vsel %vm240_vm1, %v4066_v25, 0.0  ;;  %v4100_v13 = vmul.f32 %v6809_v19, %v6809_v19  ;;  %5104 = vpow2.f32 %v3914_v36 }
0x1616   :  { %v6801_v60 = vpop.eup %5102  ;;  %4079 = vadd.xlane.f32.xlu2 %v4078_v56 }
0x1617   :  { %v3924_v26 = vsel %vm342_vm4, %v6801_v60, 0.0  ;;  %v4108_v8 = vsel %vm240_vm1, %v4100_v13, 0.0 }
0x1618   :  { %3925 = vadd.xlane.f32.xlu1 %v3924_v26 }
0x161b   :  { %v6822_v35 = vpop.eup %5104 }
0x161c   :  { %v3921_v3 = vsel %vm342_vm4, %v6822_v35, 0.0 }
0x161e   :  { %4106 = vadd.xlane.f32.xlu2 %v4105_v1 }
0x1626   :  { %4109 = vadd.xlane.f32.xlu2 %v4108_v8 }
0x162e   :  { %4112 = vadd.xlane.f32.xlu2 %v4111_v46 }
0x1636   :  { %3922 = vadd.xlane.f32.xlu2 %v3921_v3 }
0x1689   :  { %v4080_v40 = vpop.xlane.xlu2 %4079 }
0x168a   :  { %v4090_v39 = vmul.f32 %v4080_v40, %v5884_v58 }
0x168b   :  { %v6838_v30 = vpop.xlane.xlu1 %3925 }
0x168c   :  { %v6829_v42 = vsub.f32 %v4066_v25, %v4090_v39 }
0x168e   :  { %v4102_v63 = vmul.f32 %v6829_v42, %v6829_v42 }
0x1690   :  { %v4114_v51 = vsel %vm240_vm1, %v4102_v63, 0.0 }
0x1691   :  { %v4107_v34 = vpop.xlane.xlu2 %4106  ;;  %4115 = vadd.xlane.f32.xlu0 %v4114_v51 }
0x1692   :  { %v4123_v41 = vmul.f32 %v4107_v34, %v5884_v58 }
0x1694   :  { %v4129_v22 = vadd.f32 1e-05, %v4123_v41 }
0x1696   :  { %5106 = vrsqrt.f32 %v4129_v22  ;;  %vm4141_vm11 = vweird.f32 %v4129_v22 }
0x1699   :  { %v4110_v5 = vpop.xlane.xlu2 %4109 }
0x169a   :  { %v4124_v61 = vmul.f32 %v4110_v5, %v5884_v58  ;;  %v3968_v5 = vand.u32 2147483648, %v6838_v30 }
0x169c   :  { %v5107_v54 = vpop.eup %5106  ;;  %v4130_v20 = vadd.f32 1e-05, %v4124_v61 }
0x169d   :  { %v4136_v2 = vmul.f32 %v5107_v54, %v4129_v22  ;;  %vm4142_vm10 = vweird.f32 %v5107_v54 }
0x169e   :  { %5108 = vrsqrt.f32 %v4130_v20  ;;  %vm4143_vm12 = vmor %vm4141_vm11, %vm4142_vm10  ;;  %vm4151_vm14 = vweird.f32 %v4130_v20 }
0x169f   :  { %v4137_v27 = vmul.f32 %v5107_v54, %v4136_v2  ;;  %5110 = vrcp.f32 %v6838_v30 }
0x16a1   :  { %v4138_v48 = vmul.f32 0.5, %v4137_v27  ;;  %v4113_v47 = vpop.xlane.xlu2 %4112 }
0x16a2   :  { %v4125_v7 = vmul.f32 %v4113_v47, %v5884_v58 }
0x16a3   :  { %v4139_v52 = vsub.f32 1.5, %v4138_v48  ;;  %v3969_v48 = vor.u32 1.1754944e-38, %v3968_v5 }
0x16a4   :  { %v5109_v28 = vpop.eup %5108  ;;  %v4131_v45 = vadd.f32 1e-05, %v4125_v7 }
0x16a5   :  { %v4140_v59 = vmul.f32 %v5107_v54, %v4139_v52  ;;  %v4146_v21 = vmul.f32 %v5109_v28, %v4130_v20  ;;  %v5111_v38 = vpop.eup %5110  ;;  %vm4152_vm13 = vweird.f32 %v5109_v28  ;;  %v3966_v20 = vand.u32 2147483647, %v6838_v30  ;;  %v2379_v52 = vld [vmem:[%s6986_s20 + $0x30] sm:$0xff] }
0x16a6   :  { %5112 = vrsqrt.f32 %v4131_v45  ;;  %v3958_v9 = vmul.f32 %v5111_v38, %v6838_v30  ;;  %vm4153_vm15 = vmor %vm4151_vm14, %vm4152_vm13  ;;  %vm4161_vm5 = vweird.f32 %v4131_v45  ;;  %vm3963_vm10 = vweird.f32 %v5111_v38 }
0x16a7   :  { %v4144_v37 = vsel %vm4143_vm12, %v5107_v54, %v4140_v59  ;;  %v4147_v11 = vmul.f32 %v5109_v28, %v4146_v21  ;;  %vm3962_vm12 = vweird.f32 %v6838_v30  ;;  %vm3967_vm14 = vcmp.eq.f32.partialorder %v3966_v20, 8.507059e+37  ;;  %v2380_v30 = vld [vmem:[%s6986_s20 + $0x38] sm:$0xff]  ;;  %v2377_v59 = vld [vmem:[%s6986_s20 + $0x20] sm:$0xff] }
0x16a8   :  { %v4195_v6 = vmul.f32 %v4144_v37, %v6798_v0  ;;  %v3959_v13 = vsub.f32 1.0, %v3958_v9  ;;  %vm3964_vm13 = vmor %vm3962_vm12, %vm3963_vm10  ;;  %4310 = vmatpush.msrb.mxu0 %v2380_v30  ;;  %v2376_v37 = vld [vmem:[%s6986_s20 + $0x18] sm:$0xff]  ;;  %v3644_v20 = vadd.f32 %v6625_v24, %v6790_v4 }
0x16a9   :  { %v4148_v50 = vmul.f32 0.5, %v4147_v11  ;;  %v3923_v25 = vpop.xlane.xlu2 %3922 }
0x16aa   :  { %v4204_v56 = vmul.f32 %v6843_v12, %v4195_v6  ;;  %5114 = vrcp.f32 %v3923_v25  ;;  %v3960_v40 = vmul.f32 %v5111_v38, %v3959_v13  ;;  %v3953_v57 = vand.u32 2147483648, %v3923_v25  ;;  %4311 = vmatpush.msrb.mxu0 %v2379_v52  ;;  %v6885_v13 = vld [vmem:[%s6987_s2] ss:$0 sm:$0xff] }
0x16ab   :  { %v4149_v16 = vsub.f32 1.5, %v4148_v50  ;;  %v3951_v63 = vand.u32 2147483647, %v3923_v25  ;;  %vm3947_vm8 = vweird.f32 %v3923_v25 }
0x16ac   :  { %v5113_v26 = vpop.eup %5112  ;;  %v6852_v62 = vadd.f32 %v6846_v17, %v4204_v56  ;;  %v3954_v34 = vor.u32 1.1754944e-38, %v3953_v57  ;;  %v3961_v41 = vadd.f32 %v5111_v38, %v3960_v40  ;;  %v2373_v56 = vld [vmem:[%s6986_s20] sm:$0xff] }
0x16ad   :  { %v4150_v1 = vmul.f32 %v5109_v28, %v4149_v16  ;;  %v4156_v10 = vmul.f32 %v5113_v26, %v4131_v45  ;;  %vm4162_vm3 = vweird.f32 %v5113_v26  ;;  %vm3952_vm11 = vcmp.eq.f32.partialorder %v3951_v63, 8.507059e+37 }
0x16ae   :  { %4729 = vmatmul.msk.f32.vlgmr.msrb.gmra.mxu2 %vm240_vm1, %v6852_v62  ;;  %vm4163_vm7 = vmor %vm4161_vm5, %vm4162_vm3  ;;  %v3965_v27 = vsel %vm3964_vm13, %v5111_v38, %v3961_v41  ;;  %v2375_v38 = vld [vmem:[%s6986_s20 + $0x10] sm:$0xff] }
0x16af   :  { %v4154_v0 = vsel %vm4153_vm15, %v5109_v28, %v4150_v1  ;;  %v4157_v49 = vmul.f32 %v5113_v26, %v4156_v10  ;;  %v3970_v47 = vsel %vm3967_vm14, %v3969_v48, %v3965_v27 }
0x16b0   :  { %v5115_v32 = vpop.eup %5114  ;;  %v4196_v53 = vmul.f32 %v4154_v0, %v6809_v19  ;;  %v3971_v7 = vmul.f32 %v6801_v60, %v3970_v47 }
0x16b1   :  { %v4158_v8 = vmul.f32 0.5, %v4157_v49  ;;  %v3943_v36 = vmul.f32 %v5115_v32, %v3923_v25  ;;  %vm3948_vm6 = vweird.f32 %v5115_v32  ;;  %v2374_v25 = vld [vmem:[%s6986_s20 + $0x8] sm:$0xff]  ;;  %v3841_v49 = vpop.f32.mrf.mxu2 }
0x16b2   :  { %v4205_v31 = vmul.f32 %v6843_v12, %v4196_v53  ;;  %vm3949_vm9 = vmor %vm3947_vm8, %vm3948_vm6 }
0x16b3   :  { %v4159_v46 = vsub.f32 1.5, %v4158_v8  ;;  %v3944_v3 = vsub.f32 1.0, %v3943_v36 }
0x16b4   :  { %v4214_v39 = vadd.f32 %v6846_v17, %v4205_v31 }
0x16b5   :  { %v4160_v44 = vmul.f32 %v5113_v26, %v4159_v46  ;;  %v3945_v23 = vmul.f32 %v5115_v32, %v3944_v3 }
0x16b6   :  { %4730 = vmatmul.msk.f32.gmra.mxu2 %vm240_vm1, %v4214_v39 }
0x16b7   :  { %v4164_v19 = vsel %vm4163_vm7, %v5113_v26, %v4160_v44  ;;  %v3946_v29 = vadd.f32 %v5115_v32, %v3945_v23 }
0x16b8   :  { %v4197_v51 = vmul.f32 %v4164_v19, %v6816_v55 }
0x16b9   :  { %v3950_v22 = vsel %vm3949_vm9, %v5115_v32, %v3946_v29  ;;  %v3844_v32 = vpop.f32.mrf.mxu2 }
0x16ba   :  { %v3955_v61 = vsel %vm3952_vm11, %v3954_v34, %v3950_v22  ;;  %v4206_v54 = vmul.f32 %v6843_v12, %v4197_v51  ;;  %v3641_v51 = vadd.f32 %v6621_v14, %v6788_v33  ;;  %v3849_v27 = vadd.f32 %v3844_v32, %v3644_v20 }
0x16bb   :  { %v3956_v55 = vmul.f32 %v6822_v35, %v3955_v61  ;;  %v2378_v35 = vld [vmem:[%s6986_s20 + $0x28] sm:$0xff]  ;;  %v4886_v61 = vld [vmem:[%s6988_s7] ss:$0 sm:$0xff] }
0x16bc   :  { %v4215_v2 = vadd.f32 %v6846_v17, %v4206_v54  ;;  %4312 = vmatpush.msrb.mxu0 %v2378_v35  ;;  %v3848_v41 = vadd.f32 %v3841_v49, %v3641_v51 }
0x16bd   :  { %4724 = vmatmul.msk.f32.gmra.mxu3 %vm342_vm4, %v3956_v55 }
0x16be   :  { %4731 = vmatmul.msk.f32.gmra.mxu2 %vm240_vm1, %v4215_v2  ;;  %4313 = vmatpush.msrb.mxu0 %v2377_v59 }
0x16c0   :  { %4314 = vmatpush.msrb.mxu0 %v2376_v37 }
0x16c2   :  { %4315 = vmatpush.msrb.mxu0 %v2375_v38 }
0x16c4   :  { %4316 = vmatpush.msrb.mxu0 %v2374_v25 }
0x16c5   :  { %4725 = vmatmul.msk.f32.gmra.mxu3 %vm342_vm4, %v3971_v7 }
0x16c6   :  { %4317 = vmatpush.msrb.mxu0 %v2373_v56 }
0x1704   :  { %v4116_v28 = vpop.xlane.xlu0 %4115 }
0x1705   :  { %v4126_v45 = vmul.f32 %v4116_v28, %v5884_v58 }
0x1707   :  { %v4132_v21 = vadd.f32 1e-05, %v4126_v45 }
0x1709   :  { %5116 = vrsqrt.f32 %v4132_v21  ;;  %vm4171_vm15 = vweird.f32 %v4132_v21 }
0x170f   :  { %v5117_v60 = vpop.eup %5116 }
0x1710   :  { %v4166_v11 = vmul.f32 %v5117_v60, %v4132_v21  ;;  %vm4172_vm4 = vweird.f32 %v5117_v60 }
0x1711   :  { %vm4173_vm3 = vmor %vm4171_vm15, %vm4172_vm4  ;;  %vm4399_vm15 = vcmask 1040384  }
0x1712   :  { %v4167_v6 = vmul.f32 %v5117_v60, %v4166_v11 }
0x1714   :  { %v4168_v50 = vmul.f32 0.5, %v4167_v6 }
0x1716   :  { %v4169_v16 = vsub.f32 1.5, %v4168_v50 }
0x1718   :  { %v4170_v26 = vmul.f32 %v5117_v60, %v4169_v16 }
0x171a   :  { %v4174_v9 = vsel %vm4173_vm3, %v5117_v60, %v4170_v26  ;;  %vm4401_vm3 = vcmask 254976  }
0x171b   :  { %v4198_v1 = vmul.f32 %v4174_v9, %v6829_v42 }
0x171d   :  { %v4207_v10 = vmul.f32 %v6843_v12, %v4198_v1 }
0x171f   :  { %v4216_v0 = vadd.f32 %v6846_v17, %v4207_v10 }
0x1721   :  { %4732 = vmatmul.msk.f32.gmra.mxu2 %vm240_vm1, %v4216_v0 }
0x1731   :  { %v4257_v53 = vpop.f32.mrf.mxu2 }
0x1732   :  { %v4258_v8 = vadd.f32 %v6885_v13, %v4257_v53 }
0x1734   :  { %v4275_v36 = vmax.f32 %v4258_v8, 0.0 }
0x1736   :  { %4735 = vmatmul.msk.f32.vlgmr.msrb.gmra.mxu0 %vm151_vm0, %v4275_v36 }
0x1739   :  { %v4260_v31 = vpop.f32.mrf.mxu2 }
0x173a   :  { %v4261_v46 = vadd.f32 %v6885_v13, %v4260_v31 }
0x173c   :  { %v4276_v42 = vmax.f32 %v4261_v46, 0.0 }
0x173e   :  { %4736 = vmatmul.msk.f32.gmra.mxu0 %vm151_vm0, %v4276_v42 }
0x1740   :  { %v4010_v3 = vpop.f32.mrf.mxu3 }
0x1741   :  { %4727 = vmatmul.msk.f32.gmra.mxu1 %vm303_vm2, %v4010_v3  ;;  %v4263_v40 = vpop.f32.mrf.mxu2 }
0x1742   :  { %v4264_v57 = vadd.f32 %v6885_v13, %v4263_v40 }
0x1744   :  { %v4277_v39 = vmax.f32 %v4264_v57, 0.0 }
0x1746   :  { %4737 = vmatmul.msk.f32.gmra.mxu0 %vm151_vm0, %v4277_v39 }
0x1748   :  { %v4013_v44 = vpop.f32.mrf.mxu3 }
0x1749   :  { %4728 = vmatmul.msk.f32.gmra.mxu1 %vm303_vm2, %v4013_v44 }
0x17a4   :  { %v4266_v23 = vpop.f32.mrf.mxu2 }
0x17a5   :  { %v4267_v63 = vadd.f32 %v6885_v13, %v4266_v23 }
0x17a7   :  { %v4278_v19 = vmax.f32 %v4267_v63, 0.0 }
0x17a9   :  { %4738 = vmatmul.msk.f32.gmra.mxu0 %vm151_vm0, %v4278_v19 }
0x17b3   :  { %v4319_v29 = vpop.f32.mrf.mxu0 }
0x17b4   :  { %v4320_v48 = vadd.f32 %v4886_v61, %v4319_v29 }
0x17b6   :  { %v4333_v33 = vadd.f32 %v4320_v48, %v6852_v62 }
0x17b8   :  { %v4335_v35 = vsel %vm240_vm1, %v4333_v33, 0.0 }
0x17bb   :  { %v4322_v34 = vpop.f32.mrf.mxu0 }
0x17be   :  { %v4045_v22 = vpop.f32.mrf.mxu1 }
0x17bf   :  { %v4052_v5 = vadd.f32 %v4045_v22, %v3848_v41 }
0x17c1   :  { %v4061_v54 = vadd.f32 %v6715_v15, %v4052_v5 }
0x17c3   :  { %v4324_v55 = vpop.f32.mrf.mxu0  ;;  %v4067_v2 = vadd.f32 %v4061_v54, %v6335_v43 }
0x17c5   :  { %v4081_v47 = vsel %vm240_vm1, %v4067_v2, 0.0 }
0x17c6   :  { %4082 = vadd.xlane.f32.xlu2 %v4081_v47  ;;  %v4048_v7 = vpop.f32.mrf.mxu1 }
0x17c7   :  { %v4053_v14 = vadd.f32 %v4048_v7, %v3849_v27 }
0x17c9   :  { %v4062_v30 = vadd.f32 %v6715_v15, %v4053_v14 }
0x17cb   :  { %v4068_v52 = vadd.f32 %v4062_v30, %v6342_v18 }
0x17cd   :  { %v4084_v24 = vsel %vm240_vm1, %v4068_v52, 0.0 }
0x17ce   :  { %4336 = vadd.xlane.f32.xlu2 %v4335_v35  ;;  %4085 = vadd.xlane.f32.xlu0 %v4084_v24 }
0x1826   :  { %v4326_v43 = vpop.f32.mrf.mxu0 }
0x1827   :  { %v4327_v4 = vadd.f32 %v4886_v61, %v4326_v43 }
0x1829   :  { %v4334_v28 = vadd.f32 %v4327_v4, %v4216_v0 }
0x182b   :  { %v4338_v45 = vsel %vm240_vm1, %v4334_v28, 0.0 }
0x182c   :  { %4339 = vadd.xlane.f32.xlu1 %v4338_v45 }
0x1839   :  { %v4083_v59 = vpop.xlane.xlu2 %4082 }
0x183a   :  { %v4091_v21 = vmul.f32 %v4083_v59, %v5884_v58 }
0x183c   :  { %v4097_v62 = vsub.f32 %v4067_v2, %v4091_v21 }
0x183e   :  { %v4103_v37 = vmul.f32 %v4097_v62, %v4097_v62 }
0x1840   :  { %v4117_v15 = vsel %vm240_vm1, %v4103_v37, 0.0 }
0x1841   :  { %v4337_v18 = vpop.xlane.xlu2 %4336  ;;  %4118 = vadd.xlane.f32.xlu0 %v4117_v15  ;;  %v4086_v60 = vpop.xlane.xlu0 %4085  ;;  %v4887_v15 = vld [vmem:[%s6989_s10] ss:$0 sm:$0xff] }
0x1842   :  { %v4341_v11 = vmul.f32 %v4337_v18, %v5884_v58  ;;  %v4092_v6 = vmul.f32 %v4086_v60, %v5884_v58 }
0x1844   :  { %v6915_v38 = vsub.f32 %v4333_v33, %v4341_v11  ;;  %v4098_v50 = vsub.f32 %v4068_v52, %v4092_v6 }
0x1846   :  { %v4345_v25 = vmul.f32 %v6915_v38, %v6915_v38  ;;  %v4104_v56 = vmul.f32 %v4098_v50, %v4098_v50 }
0x1848   :  { %v4347_v16 = vsel %vm240_vm1, %v4345_v25, 0.0  ;;  %v4120_v26 = vsel %vm240_vm1, %v4104_v56, 0.0 }
0x1849   :  { %4348 = vadd.xlane.f32.xlu0 %v4347_v16  ;;  %4121 = vadd.xlane.f32.xlu1 %v4120_v26 }
0x189f   :  { %v4340_v9 = vpop.xlane.xlu1 %4339 }
0x18a0   :  { %v4342_v1 = vmul.f32 %v4340_v9, %v5884_v58 }
0x18a2   :  { %v6922_v10 = vsub.f32 %v4334_v28, %v4342_v1 }
0x18a4   :  { %v4346_v0 = vmul.f32 %v6922_v10, %v6922_v10 }
0x18a6   :  { %v4350_v49 = vsel %vm240_vm1, %v4346_v0, 0.0 }
0x18a7   :  { %4351 = vadd.xlane.f32.xlu2 %v4350_v49 }
0x18b4   :  { %v4119_v32 = vpop.xlane.xlu0 %4118 }
0x18b5   :  { %v4127_v53 = vmul.f32 %v4119_v32, %v5884_v58 }
0x18b7   :  { %v4133_v8 = vadd.f32 1e-05, %v4127_v53 }
0x18b9   :  { %5118 = vrsqrt.f32 %v4133_v8  ;;  %vm4181_vm5 = vweird.f32 %v4133_v8 }
0x18bc   :  { %v4122_v36 = vpop.xlane.xlu1 %4121  ;;  %v4349_v27 = vpop.xlane.xlu0 %4348 }
0x18bd   :  { %v4128_v31 = vmul.f32 %v4122_v36, %v5884_v58  ;;  %v4353_v48 = vmul.f32 %v4349_v27, %v5884_v58 }
0x18bf   :  { %v5119_v46 = vpop.eup %5118  ;;  %v4134_v42 = vadd.f32 1e-05, %v4128_v31  ;;  %v4355_v47 = vadd.f32 1e-05, %v4353_v48 }
0x18c0   :  { %v4176_v3 = vmul.f32 %v5119_v46, %v4133_v8  ;;  %vm4182_vm2 = vweird.f32 %v5119_v46 }
0x18c1   :  { %5120 = vrsqrt.f32 %v4134_v42  ;;  %vm4183_vm6 = vmor %vm4181_vm5, %vm4182_vm2  ;;  %vm4191_vm8 = vweird.f32 %v4134_v42  ;;  %vm4363_vm11 = vweird.f32 %v4355_v47 }
0x18c2   :  { %v4177_v40 = vmul.f32 %v5119_v46, %v4176_v3  ;;  %5122 = vrsqrt.f32 %v4355_v47 }
0x18c4   :  { %v4178_v57 = vmul.f32 0.5, %v4177_v40  ;;  %v4394_v40 = vld [vmem:[%s5352_s4 + $0x18] sm:$0xff] }
0x18c5   :  { %4450 = vmatpush.msrb.mxu3 %v4394_v40 }
0x18c6   :  { %v4179_v39 = vsub.f32 1.5, %v4178_v57  ;;  %v4393_v57 = vld [vmem:[%s5352_s4 + $0x10] sm:$0xff] }
0x18c7   :  { %v5121_v44 = vpop.eup %5120  ;;  %4451 = vmatpush.msrb.mxu3 %v4393_v57 }
0x18c8   :  { %v4180_v23 = vmul.f32 %v5119_v46, %v4179_v39  ;;  %v4186_v63 = vmul.f32 %v5121_v44, %v4134_v42  ;;  %vm4192_vm7 = vweird.f32 %v5121_v44  ;;  %v5123_v7 = vpop.eup %5122  ;;  %v4392_v39 = vld [vmem:[%s5352_s4 + $0x8] sm:$0xff] }
0x18c9   :  { %vm4193_vm9 = vmor %vm4191_vm8, %vm4192_vm7  ;;  %v4358_v14 = vmul.f32 %v5123_v7, %v4355_v47  ;;  %vm4364_vm10 = vweird.f32 %v5123_v7  ;;  %4452 = vmatpush.msrb.mxu3 %v4392_v39 }
0x18ca   :  { %v4184_v19 = vsel %vm4183_vm6, %v5119_v46, %v4180_v23  ;;  %v4187_v29 = vmul.f32 %v5121_v44, %v4186_v63  ;;  %vm4365_vm12 = vmor %vm4363_vm11, %vm4364_vm10  ;;  %vm4458_vm6 = vcmask 74752  }
0x18cb   :  { %v4199_v51 = vmul.f32 %v4184_v19, %v4097_v62  ;;  %v4359_v52 = vmul.f32 %v5123_v7, %v4358_v14 }
0x18cc   :  { %v4188_v34 = vmul.f32 0.5, %v4187_v29 }
0x18cd   :  { %v4208_v41 = vmul.f32 %v6843_v12, %v4199_v51  ;;  %v4360_v24 = vmul.f32 0.5, %v4359_v52 }
0x18ce   :  { %v4189_v22 = vsub.f32 1.5, %v4188_v34 }
0x18cf   :  { %v4217_v5 = vadd.f32 %v6846_v17, %v4208_v41  ;;  %v4361_v43 = vsub.f32 1.5, %v4360_v24 }
0x18d0   :  { %v4190_v61 = vmul.f32 %v5121_v44, %v4189_v22 }
0x18d1   :  { %4733 = vmatmul.msk.f32.gmra.mxu2 %vm240_vm1, %v4217_v5  ;;  %v4362_v4 = vmul.f32 %v5123_v7, %v4361_v43  ;;  %v4889_v5 = vld [vmem:[%s6991_s15] ss:$0 sm:$0xff] }
0x18d2   :  { %v4194_v54 = vsel %vm4193_vm9, %v5121_v44, %v4190_v61 }
0x18d3   :  { %v4200_v20 = vmul.f32 %v4194_v54, %v4098_v50  ;;  %v4366_v59 = vsel %vm4365_vm12, %v5123_v7, %v4362_v4  ;;  %v4888_v50 = vld [vmem:[%s6990_s11] ss:$0 sm:$0xff] }
0x18d4   :  { %v4377_v37 = vmul.f32 %v4366_v59, %v6915_v38  ;;  %v4890_v54 = vld [vmem:[%s5347_s27] ss:$0 sm:$0xff]  ;;  %s5142_s27 = scalar_lea.hbm %s5141_s0, 2 }
0x18d5   :  { %v4209_v55 = vmul.f32 %v6843_v12, %v4200_v20  ;;  %p5143_p0 = scmp.ne.s32.totalorder %s5141_s0, %s5142_s27  ;;  %p5146_p2 = scmp.lt.s32.totalorder %s5144_s13, %s5142_s27 }
0x18d6   :  { %v4382_v11 = vmul.f32 %v4887_v15, %v4377_v37 }
0x18d7   :  { %v4218_v2 = vadd.f32 %v6846_v17, %v4209_v55  ;;  %p5147_p3 = por %p5146_p2, %p5145_p1 }
0x18d8   :  { %v4387_v56 = vadd.f32 %v4888_v50, %v4382_v11 }
0x18d9   :  { %4734 = vmatmul.msk.f32.gmra.mxu2 %vm240_vm1, %v4218_v2  ;;  %p5148_p4 = pnand %p5147_p3, %p5143_p0 }
0x191a   :  { %v4352_v33 = vpop.xlane.xlu2 %4351 }
0x191b   :  { %v4354_v30 = vmul.f32 %v4352_v33, %v5884_v58 }
0x191d   :  { %v4356_v35 = vadd.f32 1e-05, %v4354_v30 }
0x191f   :  { %5124 = vrsqrt.f32 %v4356_v35  ;;  %vm4373_vm14 = vweird.f32 %v4356_v35 }
0x1925   :  { %v5125_v12 = vpop.eup %5124 }
0x1926   :  { %v4368_v17 = vmul.f32 %v5125_v12, %v4356_v35  ;;  %vm4374_vm13 = vweird.f32 %v5125_v12 }
0x1927   :  { %vm4375_vm4 = vmor %vm4373_vm14, %vm4374_vm13 }
0x1928   :  { %v4369_v28 = vmul.f32 %v5125_v12, %v4368_v17 }
0x192a   :  { %v4370_v45 = vmul.f32 0.5, %v4369_v28 }
0x192c   :  { %v4371_v21 = vsub.f32 1.5, %v4370_v45 }
0x192e   :  { %v4372_v62 = vmul.f32 %v5125_v12, %v4371_v21 }
0x1930   :  { %v4376_v18 = vsel %vm4375_vm4, %v5125_v12, %v4372_v62 }
0x1931   :  { %v4378_v60 = vmul.f32 %v4376_v18, %v6922_v10 }
0x1933   :  { %v4383_v6 = vmul.f32 %v4887_v15, %v4378_v60 }
0x1935   :  { %v4388_v25 = vadd.f32 %v4888_v50, %v4383_v6 }
0x1937   :  { %v4397_v16 = vrot.slane %v4388_v25, 7 }
0x1939   :  { %v4400_v26 = vsel %vm4399_vm15, %v4387_v56, %v4397_v16 }
0x193a   :  { %v4402_v9 = vsel %vm4401_vm3, %v4400_v26, 0.0 }
0x193b   :  { %4403 = vadd.xlane.f32.xlu1 %v4402_v9 }
0x1954   :  { %v4269_v1 = vpop.f32.mrf.mxu2 }
0x1955   :  { %v4270_v38 = vadd.f32 %v6885_v13, %v4269_v1 }
0x1957   :  { %v4279_v0 = vmax.f32 %v4270_v38, 0.0 }
0x1959   :  { %4739 = vmatmul.msk.f32.gmra.mxu0 %vm151_vm0, %v4279_v0 }
0x195c   :  { %v4272_v10 = vpop.f32.mrf.mxu2 }
0x195d   :  { %v4273_v49 = vadd.f32 %v6885_v13, %v4272_v10  ;;  %v4391_v13 = vld [vmem:[%s5352_s4] sm:$0xff]  ;;  %s5198_s4 = smov [#allocation2]  }
0x195e   :  { %4453 = vmatpush.msrb.mxu3 %v4391_v13  ;;  %s4465_s16 = sshll.u32 %s5198_s4, 4  ;;  %s4466_s16 = int_to_ptr.vmem [resolvable:$true] %s4465_s16 }
0x195f   :  { %v4280_v32 = vmax.f32 %v4273_v49, 0.0 }
0x1961   :  { %4740 = vmatmul.msk.f32.gmra.mxu0 %vm151_vm0, %v4280_v32 }
0x19ae   :  { %v4404_v53 = vpop.xlane.xlu1 %4403 }
0x19af   :  { %v4405_v8 = vmul.f32 %v4404_v53, %v5884_v58 }
0x19b1   :  { %v4406_v36 = vsub.f32 %v4400_v26, %v4405_v8 }
0x19b3   :  { %v4407_v31 = vmul.f32 %v4406_v36, %v4406_v36 }
0x19b5   :  { %v4408_v46 = vsel %vm4401_vm3, %v4407_v31, 0.0 }
0x19b6   :  { %4409 = vadd.xlane.f32.xlu2 %v4408_v46 }
0x19d6   :  { %v4329_v42 = vpop.f32.mrf.mxu0 }
0x19de   :  { %v4331_v3 = vpop.f32.mrf.mxu0 }
0x1a29   :  { %v4410_v44 = vpop.xlane.xlu2 %4409 }
0x1a2a   :  { %v4411_v23 = vmul.f32 %v4410_v44, %v5884_v58  ;;  %v4891_v58 = vld [vmem:[%s5357_s12] ss:$0 sm:$0xff] }
0x1a2c   :  { %v4412_v63 = vadd.f32 1e-05, %v4411_v23 }
0x1a2e   :  { %5126 = vrsqrt.f32 %v4412_v63  ;;  %vm4419_vm2 = vweird.f32 %v4412_v63 }
0x1a34   :  { %v5127_v19 = vpop.eup %5126 }
0x1a35   :  { %v4414_v29 = vmul.f32 %v5127_v19, %v4412_v63  ;;  %vm4420_vm0 = vweird.f32 %v5127_v19 }
0x1a36   :  { %vm4421_vm5 = vmor %vm4419_vm2, %vm4420_vm0 }
0x1a37   :  { %v4415_v51 = vmul.f32 %v5127_v19, %v4414_v29 }
0x1a39   :  { %v4416_v34 = vmul.f32 0.5, %v4415_v51 }
0x1a3b   :  { %v4417_v41 = vsub.f32 1.5, %v4416_v34 }
0x1a3d   :  { %v4418_v22 = vmul.f32 %v5127_v19, %v4417_v41 }
0x1a3f   :  { %v4422_v61 = vsel %vm4421_vm5, %v5127_v19, %v4418_v22 }
0x1a40   :  { %v4423_v20 = vmul.f32 %v4422_v61, %v4406_v36 }
0x1a42   :  { %v4427_v55 = vmul.f32 %v4889_v5, %v4423_v20 }
0x1a44   :  { %v4431_v2 = vadd.f32 %v4890_v54, %v4427_v55 }
0x1a46   :  { %4741 = vmatmul.msk.f32.vlgmr.msrb.gmra.mxu3 %vm240_vm1, %v4431_v2 }
0x1ac9   :  { %v4455_v27 = vpop.f32.mrf.mxu3 }
0x1aca   :  { %v4456_v48 = vadd.f32 %v4891_v58, %v4455_v27 }
0x1acc   :  { %4459 = vst.msk [vmem:[#allocation2] sm:$0x3] %vm4458_vm6, %v4456_v48 }
0x1acd   :  { %5151 = shalt.err (!%p5148_p4)
}
0x1ace   :  { %4470 = dma.vmem_to_hbm [thread:$0]  %s4466_s16, 32, %s4468_s18, [#allocation3]  }
0x1acf   :  { %5152 = dma.done.wait [#allocation3], 32  }
0x1ad0   :  { %5153 = vsyncadd [#allocation3], 4294967264 }
0x1ad1   :  { %4475 = vsyncpa [#allocation3], 1 }

</bundles_post_ra>
